<compile_context>
chip_gen: v7x
topology: tpu7x:2x2x1
jax: 0.10.0
libtpu: 0.0.40
codegen_flags: <defaults>
</compile_context>

<pallas_src>
import functools

import jax
import jax.numpy as jnp
from jax.experimental import pallas as pl
from jax.experimental.pallas import tpu as pltpu

# ----------------------- scaled-down OCRNet config -----------------------
OUT_STRIDE = 8          # config default
IN_CH = 3
HIGH_CH = 64            # stands in for resnet101 layer4 channels (2048)
LOW_CH = 32             # stands in for resnet101 layer3 channels (1024)
MID = 128               # stands in for the 512-channel OCR width
KEY = 64                # stands in for key_channels=256
NUM_CLASSES = 5
BN_EPS = 1e-5
GATHER_SCALE = 1.0      # SpatialGatherModule(scale=1)


# =========================== tiling helpers ===========================
def _pick_tile(dim, pref, align):
    """Largest tile <= pref that is a multiple of `align` and divides `dim`;
    falls back to the full dimension (always a legal block shape).
    `pref` is sized for v7x's 64 MiB VMEM; v5e/v6e have more headroom."""
    if dim <= pref:
        return dim
    t = (pref // align) * align
    while t >= align:
        if dim % t == 0:
            return t
        t -= align
    return dim


# =========================== tiled matmul (+BN affine +ReLU) ===========================
def _matmul_affine_kernel(apply_relu, a_ref, w_ref, s_ref, b_ref, o_ref, acc_ref):
    k = pl.program_id(1)

    @pl.when(k == 0)
    def _():
        acc_ref[...] = jnp.zeros_like(acc_ref)

    acc_ref[...] += jnp.dot(a_ref[...], w_ref[...], preferred_element_type=jnp.float32)

    # epilogue only on the last K step (affine + ReLU kept out of the inner loop)
    @pl.when(k == pl.num_programs(1) - 1)
    def _():
        out = acc_ref[...] * s_ref[...] + b_ref[...]
        if apply_relu:
            out = jnp.maximum(out, 0.0)
        o_ref[...] = out.astype(o_ref.dtype)


def matmul_affine(a, w, scale, bias, *, relu, out_dtype=jnp.bfloat16,
                  tm_pref=256, tk_pref=512):
    """out = [relu]((a @ w) * scale + bias), tiled over (M, K) with f32 accumulation."""
    M, K = a.shape
    Kw, N = w.shape
    assert K == Kw
    tm = _pick_tile(M, tm_pref, 16)
    tk = _pick_tile(K, tk_pref, 128)
    return pl.pallas_call(
        functools.partial(_matmul_affine_kernel, relu),
        out_shape=jax.ShapeDtypeStruct((M, N), out_dtype),
        grid=(M // tm, K // tk),
        in_specs=[
            pl.BlockSpec((tm, tk), lambda i, k: (i, k)),
            pl.BlockSpec((tk, N), lambda i, k: (k, 0)),
            pl.BlockSpec((1, N), lambda i, k: (0, 0)),
            pl.BlockSpec((1, N), lambda i, k: (0, 0)),
        ],
        out_specs=pl.BlockSpec((tm, N), lambda i, k: (i, 0)),
        scratch_shapes=[pltpu.VMEM((tm, N), jnp.float32)],
        compiler_params=pltpu.CompilerParams(
            dimension_semantics=("parallel", "arbitrary")),
    )(a, w, scale.reshape(1, N), bias.reshape(1, N))


# =========================== fused 3x3 conv (+BN +ReLU [+1x1 head]) ===========================
def _conv3x3_kernel(apply_relu, has_proj, n_out, row_stride,
                    x_ref, w_ref, s_ref, b_ref, *rest):
    if has_proj:
        w2_ref, b2_ref, o_ref = rest
    else:
        (o_ref,) = rest
    x = x_ref[0]                                   # ((H+2)*W, 3*Cin) bf16
    cout = w_ref.shape[-1]
    acc = jnp.zeros((n_out, cout), jnp.float32)
    # dy taps: dot the full padded block, then take the aligned row window of the result.
    for dy in range(3):
        z = jnp.dot(x, w_ref[dy], preferred_element_type=jnp.float32)
        acc = acc + z[dy * row_stride: dy * row_stride + n_out, :]
    h = acc * s_ref[...] + b_ref[...]
    if apply_relu:
        h = jnp.maximum(h, 0.0)
    if has_proj:   # fold the tiny-N (num_classes) 1x1 head into the epilogue
        h = jnp.dot(h.astype(jnp.bfloat16), w2_ref[...],
                    preferred_element_type=jnp.float32) + b2_ref[...]
    o_ref[0] = h.astype(o_ref.dtype)


def conv3x3_affine(x_nhwc, w9, scale, bias, *, relu=True, proj=None,
                   out_dtype=jnp.bfloat16):
    """3x3 conv (stride 1, pad 1) + folded BN (+ReLU) [+ fused 1x1 projection].

    The dx taps are folded into channels in glue (3x traffic instead of a 9x im2col),
    the dy taps are accumulated in-kernel.  w9: (3, 3*Cin, Cout) indexed by dy with
    rows ordered (dx, cin)."""
    B, H, W, C = x_nhwc.shape
    assert W % 8 == 0, "toy/real widths are multiples of 8"
    Cout = w9.shape[-1]
    xp = jnp.pad(x_nhwc, ((0, 0), (1, 1), (1, 1), (0, 0)))                 # (B, H+2, W+2, C)
    x3 = jnp.concatenate([xp[:, :, dx:dx + W, :] for dx in range(3)], axis=-1)
    x3 = x3.reshape(B, (H + 2) * W, 3 * C)                                 # (B, (H+2)*W, 3C)
    HW = H * W
    n_in = (H + 2) * W

    has_proj = proj is not None
    in_specs = [
        pl.BlockSpec((1, n_in, 3 * C), lambda b: (b, 0, 0)),
        pl.BlockSpec((3, 3 * C, Cout), lambda b: (0, 0, 0)),
        pl.BlockSpec((1, Cout), lambda b: (0, 0)),
        pl.BlockSpec((1, Cout), lambda b: (0, 0)),
    ]
    args = [x3, w9, scale.reshape(1, Cout), bias.reshape(1, Cout)]
    if has_proj:
        w2, b2 = proj
        n_out_ch = w2.shape[-1]
        in_specs += [pl.BlockSpec((Cout, n_out_ch), lambda b: (0, 0)),
                     pl.BlockSpec((1, n_out_ch), lambda b: (0, 0))]
        args += [w2, b2.reshape(1, n_out_ch)]
    else:
        n_out_ch = Cout

    # TODO(synk): at real resolutions tile the row axis (with a 2-row halo) instead of
    # taking the whole padded image per batch, to keep the block inside VMEM.
    return pl.pallas_call(
        functools.partial(_conv3x3_kernel, relu, has_proj, HW, W),
        out_shape=jax.ShapeDtypeStruct((B, HW, n_out_ch), out_dtype),
        grid=(B,),
        in_specs=in_specs,
        out_specs=pl.BlockSpec((1, HW, n_out_ch), lambda b: (b, 0, 0)),
        compiler_params=pltpu.CompilerParams(dimension_semantics=("parallel",)),
    )(*args)


# =========================== fused f_pixel (two 1x1 conv+BN+ReLU) ===========================
def _mlp2_kernel(a_ref, w1_ref, s1_ref, b1_ref, w2_ref, s2_ref, b2_ref, o_ref):
    h = jnp.dot(a_ref[...], w1_ref[...], preferred_element_type=jnp.float32)
    h = jnp.maximum(h * s1_ref[...] + b1_ref[...], 0.0)
    h = jnp.dot(h.astype(jnp.bfloat16), w2_ref[...], preferred_element_type=jnp.float32)
    h = jnp.maximum(h * s2_ref[...] + b2_ref[...], 0.0)
    o_ref[...] = h.astype(o_ref.dtype)


def mlp2_affine(a, w1, s1, b1, w2, s2, b2, *, out_dtype=jnp.bfloat16, tm_pref=256):
    M, K = a.shape
    N1 = w1.shape[1]
    N2 = w2.shape[1]
    tm = _pick_tile(M, tm_pref, 16)
    return pl.pallas_call(
        _mlp2_kernel,
        out_shape=jax.ShapeDtypeStruct((M, N2), out_dtype),
        grid=(M // tm,),
        in_specs=[
            pl.BlockSpec((tm, K), lambda i: (i, 0)),
            pl.BlockSpec((K, N1), lambda i: (0, 0)),
            pl.BlockSpec((1, N1), lambda i: (0, 0)),
            pl.BlockSpec((1, N1), lambda i: (0, 0)),
            pl.BlockSpec((N1, N2), lambda i: (0, 0)),
            pl.BlockSpec((1, N2), lambda i: (0, 0)),
            pl.BlockSpec((1, N2), lambda i: (0, 0)),
        ],
        out_specs=pl.BlockSpec((tm, N2), lambda i: (i, 0)),
        compiler_params=pltpu.CompilerParams(dimension_semantics=("parallel",)),
    )(a, w1, s1.reshape(1, N1), b1.reshape(1, N1),
      w2, s2.reshape(1, N2), b2.reshape(1, N2))


# =========================== fused f_object + f_down on the proxy ===========================
def _proxy_proj_kernel(p_ref, wo1, so1, bo1, wo2, so2, bo2, wd, sdr, bdr, k_ref, v_ref):
    p = p_ref[...]
    h = jnp.dot(p, wo1[...], preferred_element_type=jnp.float32)
    h = jnp.maximum(h * so1[...] + bo1[...], 0.0)
    kk = jnp.dot(h.astype(jnp.bfloat16), wo2[...], preferred_element_type=jnp.float32)
    kk = jnp.maximum(kk * so2[...] + bo2[...], 0.0)
    v = jnp.dot(p, wd[...], preferred_element_type=jnp.float32)
    v = jnp.maximum(v * sdr[...] + bdr[...], 0.0)
    k_ref[...] = kk.astype(k_ref.dtype)
    v_ref[...] = v.astype(v_ref.dtype)


def proxy_proj(proxy_tok, wo1, so1, bo1, wo2, so2, bo2, wd, sdr, bdr):
    M, C = proxy_tok.shape
    K1 = wo1.shape[1]
    Kd = wd.shape[1]
    spec = lambda shape: pl.BlockSpec(shape, lambda i, _z=(0,) * len(shape): _z)
    return pl.pallas_call(
        _proxy_proj_kernel,
        out_shape=(jax.ShapeDtypeStruct((M, K1), jnp.bfloat16),
                   jax.ShapeDtypeStruct((M, Kd), jnp.bfloat16)),
        grid=(1,),
        in_specs=[
            spec((M, C)),
            spec((C, K1)), spec((1, K1)), spec((1, K1)),
            spec((K1, K1)), spec((1, K1)), spec((1, K1)),
            spec((C, Kd)), spec((1, Kd)), spec((1, Kd)),
        ],
        out_specs=(spec((M, K1)), spec((M, Kd))),
        compiler_params=pltpu.CompilerParams(dimension_semantics=("arbitrary",)),
    )(proxy_tok,
      wo1, so1.reshape(1, K1), bo1.reshape(1, K1),
      wo2, so2.reshape(1, K1), bo2.reshape(1, K1),
      wd, sdr.reshape(1, Kd), bdr.reshape(1, Kd))


# =========================== SpatialGatherModule ===========================
def _spatial_gather_kernel(probs_ref, feats_ref, o_ref):
    p = GATHER_SCALE * probs_ref[0]                        # (NC, HW) f32
    p = p - jnp.max(p, axis=-1, keepdims=True)
    e = jnp.exp(p)
    sm = e * pl.reciprocal(jnp.sum(e, axis=-1, keepdims=True), approx=True)
    o_ref[0] = jnp.dot(sm.astype(jnp.bfloat16), feats_ref[0],
                       preferred_element_type=jnp.float32).astype(o_ref.dtype)


def spatial_gather(probs, feats):
    # probs: (B, NC, HW) f32, feats: (B, HW, C) bf16 -> (B, NC, C) bf16
    B, Kc, HW = probs.shape
    _, _, C = feats.shape
    return pl.pallas_call(
        _spatial_gather_kernel,
        out_shape=jax.ShapeDtypeStruct((B, Kc, C), jnp.bfloat16),
        grid=(B,),
        in_specs=[
            pl.BlockSpec((1, Kc, HW), lambda b: (b, 0, 0)),
            pl.BlockSpec((1, HW, C), lambda b: (b, 0, 0)),
        ],
        out_specs=pl.BlockSpec((1, Kc, C), lambda b: (b, 0, 0)),
        compiler_params=pltpu.CompilerParams(dimension_semantics=("parallel",)),
    )(probs, feats)


# ======== ObjectAttention + f_up + SpatialOCR fuse + conv_out (one kernel) ========
def _attn_ocr_kernel(q_ref, k_ref, v_ref, x_ref,
                     fuw, fus, fub, wc, wf, fs, fb, ow, ob, o_ref):
    q = q_ref[0]                                           # (tq, KEY) bf16
    k = k_ref[0]                                           # (KEY, NC) bf16
    v = v_ref[0]                                           # (NC, KEY) bf16
    sim = jnp.dot(q, k, preferred_element_type=jnp.float32) * (q.shape[-1] ** -0.5)
    sim = sim - jnp.max(sim, axis=-1, keepdims=True)
    e = jnp.exp(sim)
    att = e * pl.reciprocal(jnp.sum(e, axis=-1, keepdims=True), approx=True)
    ctx = jnp.dot(att.astype(jnp.bfloat16), v, preferred_element_type=jnp.float32)
    # f_up: 1x1 conv KEY->MID + BN + ReLU
    ctx_up = jnp.dot(ctx.astype(jnp.bfloat16), fuw[...], preferred_element_type=jnp.float32)
    ctx_up = jnp.maximum(ctx_up * fus[...] + fub[...], 0.0)
    # SpatialOCR fuse conv with split weights (no concat materialized)
    fused = (jnp.dot(ctx_up.astype(jnp.bfloat16), wc[...], preferred_element_type=jnp.float32)
             + jnp.dot(x_ref[0], wf[...], preferred_element_type=jnp.float32))
    ocr = jnp.maximum(fused * fs[...] + fb[...], 0.0)
    # conv_out (MID -> num_classes, bias)
    logits = jnp.dot(ocr.astype(jnp.bfloat16), ow[...],
                     preferred_element_type=jnp.float32) + ob[...]
    o_ref[0] = logits.astype(o_ref.dtype)


def attention_ocr_head(query, key_mat, value, xmid, p):
    B, HW, KC = query.shape
    NC = key_mat.shape[-1]
    MIDc = xmid.shape[-1]
    NCls = p['out_w'].shape[-1]
    tq = _pick_tile(HW, 512, 16)
    wspec = lambda shape: pl.BlockSpec(shape, lambda b, t, _z=(0,) * len(shape): _z)
    return pl.pallas_call(
        _attn_ocr_kernel,
        out_shape=jax.ShapeDtypeStruct((B, HW, NCls), jnp.float32),
        grid=(B, HW // tq),
        in_specs=[
            pl.BlockSpec((1, tq, KC), lambda b, t: (b, t, 0)),
            pl.BlockSpec((1, KC, NC), lambda b, t: (b, 0, 0)),
            pl.BlockSpec((1, NC, KC), lambda b, t: (b, 0, 0)),
            pl.BlockSpec((1, tq, MIDc), lambda b, t: (b, t, 0)),
            wspec((KC, MIDc)),     # fu_w
            wspec((1, MIDc)),      # fu_s
            wspec((1, MIDc)),      # fu_b
            wspec((MIDc, MIDc)),   # fuse_w[:MID]  (context half)
            wspec((MIDc, MIDc)),   # fuse_w[MID:]  (feats half)
            wspec((1, MIDc)),      # fuse_s
            wspec((1, MIDc)),      # fuse_b
            wspec((MIDc, NCls)),   # out_w
            wspec((1, NCls)),      # out_b
        ],
        out_specs=pl.BlockSpec((1, tq, NCls), lambda b, t: (b, t, 0)),
        compiler_params=pltpu.CompilerParams(
            dimension_semantics=("parallel", "parallel")),
    )(query, key_mat, value, xmid,
      p['fu_w'], p['fu_s'].reshape(1, MIDc), p['fu_b'].reshape(1, MIDc),
      p['fuse_wc'], p['fuse_wf'],
      p['fuse_s'].reshape(1, MIDc), p['fuse_b'].reshape(1, MIDc),
      p['out_w'], p['out_b'].reshape(1, NCls))


# =========================== JAX glue helpers ===========================
def bilinear_matrix(src, dst):
    """align_corners=True bilinear interpolation as a (dst, src) linear map."""
    if dst == 1:
        idx = jnp.zeros((1,), jnp.float32)
    else:
        idx = jnp.arange(dst, dtype=jnp.float32) * (src - 1) / (dst - 1)
    lo = jnp.floor(idx).astype(jnp.int32)
    hi = jnp.minimum(lo + 1, src - 1)
    w = idx - lo.astype(jnp.float32)
    m = jnp.zeros((dst, src), jnp.float32)
    m = m.at[jnp.arange(dst), lo].add(1.0 - w)
    m = m.at[jnp.arange(dst), hi].add(w)
    return m


def fold_bn(gamma, beta, mean, var, conv_bias=None, eps=BN_EPS):
    scale = gamma / jnp.sqrt(var + eps)
    bias = beta - mean * scale
    if conv_bias is not None:
        bias = bias + conv_bias * scale
    return scale, bias


# =========================== parameters ===========================
def init_params(key):
    ks = iter(jax.random.split(key, 64))

    def convw(cout, cin, k):
        return 0.08 * jax.random.normal(next(ks), (cout, cin, k, k), jnp.float32)

    def convb(cout):
        return 0.01 * jax.random.normal(next(ks), (cout,), jnp.float32)

    def bn(c):
        gamma = 1.0 + 0.05 * jax.random.normal(next(ks), (c,), jnp.float32)
        beta = 0.05 * jax.random.normal(next(ks), (c,), jnp.float32)
        return gamma, beta, jnp.zeros((c,), jnp.float32), jnp.ones((c,), jnp.float32)

    def w1x1(cout, cin):   # torch (Cout,Cin,1,1) -> (Cin,Cout) bf16
        return convw(cout, cin, 1)[:, :, 0, 0].T.astype(jnp.bfloat16)

    def w3x3(cout, cin):   # torch (Cout,Cin,3,3) -> (3, 3*Cin, Cout), dy-major, row=(dx,cin)
        w = convw(cout, cin, 3)
        return jnp.transpose(w, (2, 3, 1, 0)).reshape(3, 3 * cin, cout).astype(jnp.bfloat16)

    p = {}

    # TODO(synk): torchvision ResNet-101 backbone (IntermediateLayerGetter) is an external
    # pretrained model; replaced by a deterministic space-to-depth + shared 1x1-conv stub.
    sd_ch = OUT_STRIDE * OUT_STRIDE * IN_CH
    p['bb_w'] = (0.03 * jax.random.normal(next(ks), (sd_ch, LOW_CH + HIGH_CH), jnp.float32)
                 ).astype(jnp.bfloat16)
    p['bb_s'] = jnp.ones((LOW_CH + HIGH_CH,), jnp.float32)
    p['bb_b'] = jnp.zeros((LOW_CH + HIGH_CH,), jnp.float32)

    # conv_high_map: Conv3x3(HIGH->MID, bias) + BN + ReLU
    p['chm_w'] = w3x3(MID, HIGH_CH)
    p['chm_s'], p['chm_b'] = fold_bn(*bn(MID), conv_bias=convb(MID))

    # interm_prediction_head: Conv3x3(LOW->MID, bias)+BN+ReLU+Dropout(0) ; Conv1x1(MID->NC, bias)
    p['ip_w3'] = w3x3(MID, LOW_CH)
    p['ip_s3'], p['ip_b3'] = fold_bn(*bn(MID), conv_bias=convb(MID))
    p['ip_w1'] = w1x1(NUM_CLASSES, MID)
    p['ip_b1'] = convb(NUM_CLASSES)

    # ObjectAttentionBlock2D (in=MID, key=KEY): f_pixel / f_object / f_down / f_up
    for name, cin in [('fp', MID), ('fo', MID)]:
        p[f'{name}1_w'] = w1x1(KEY, cin)
        p[f'{name}1_s'], p[f'{name}1_b'] = fold_bn(*bn(KEY))
        p[f'{name}2_w'] = w1x1(KEY, KEY)
        p[f'{name}2_s'], p[f'{name}2_b'] = fold_bn(*bn(KEY))
    p['fd_w'] = w1x1(KEY, MID)
    p['fd_s'], p['fd_b'] = fold_bn(*bn(KEY))
    p['fu_w'] = w1x1(MID, KEY)
    p['fu_s'], p['fu_b'] = fold_bn(*bn(MID))

    # SpatialOCR fuse: Conv1x1(2*MID -> MID, no bias) + BN + ReLU.  Split so the concat
    # never materializes: rows [:MID] act on the attention context, rows [MID:] on feats.
    fuse_w = w1x1(MID, 2 * MID)
    p['fuse_wc'] = fuse_w[:MID]
    p['fuse_wf'] = fuse_w[MID:]
    p['fuse_s'], p['fuse_b'] = fold_bn(*bn(MID))

    # conv_out: Conv1x1(MID -> NC, bias)
    p['out_w'] = w1x1(NUM_CLASSES, MID)
    p['out_b'] = convb(NUM_CLASSES)
    return p


# =========================== forward ===========================
def ocrnet_forward(x, params):
    """x: NCHW float32 -> (interm_up_logits, up_logits), both NCHW at input resolution."""
    B, Cin, Hin, Win = x.shape
    s = OUT_STRIDE
    Hf, Wf = Hin // s, Win // s
    HW = Hf * Wf

    # ----- backbone stub: space-to-depth + ONE shared 1x1 conv producing low & high -----
    x_nhwc = jnp.transpose(x, (0, 2, 3, 1))
    sd = x_nhwc.reshape(B, Hf, s, Wf, s, Cin).transpose(0, 1, 3, 2, 4, 5)
    tok = sd.reshape(B * HW, s * s * Cin).astype(jnp.bfloat16)
    feats = matmul_affine(tok, params['bb_w'], params['bb_s'], params['bb_b'],
                          relu=True, out_dtype=jnp.bfloat16)            # (B*HW, LOW+HIGH)
    low_nhwc = feats[:, :LOW_CH].reshape(B, Hf, Wf, LOW_CH)
    high_nhwc = feats[:, LOW_CH:].reshape(B, Hf, Wf, HIGH_CH)

    # ----- interm_prediction_head: 3x3+BN+ReLU fused with the 1x1 class head -----
    interm_tok = conv3x3_affine(low_nhwc, params['ip_w3'], params['ip_s3'], params['ip_b3'],
                                relu=True, proj=(params['ip_w1'], params['ip_b1']),
                                out_dtype=jnp.float32)                  # (B, HW, NC) f32

    # ----- conv_high_map: 3x3+BN+ReLU -> OCR feature map -----
    xmid = conv3x3_affine(high_nhwc, params['chm_w'], params['chm_s'], params['chm_b'],
                          relu=True, out_dtype=jnp.bfloat16)            # (B, HW, MID) bf16

    # ----- SpatialGatherModule: softmax over spatial, soft-weighted class context -----
    probs = jnp.transpose(interm_tok, (0, 2, 1))                        # (B, NC, HW)
    proxy = spatial_gather(probs, xmid)                                 # (B, NC, MID)
    proxy_tok = proxy.reshape(B * NUM_CLASSES, MID)

    # ----- ObjectAttentionBlock2D projections (fused 1x1 chains) -----
    query = mlp2_affine(xmid.reshape(B * HW, MID),
                        params['fp1_w'], params['fp1_s'], params['fp1_b'],
                        params['fp2_w'], params['fp2_s'], params['fp2_b'],
                        out_dtype=jnp.bfloat16).reshape(B, HW, KEY)
    key_tok, value_tok = proxy_proj(proxy_tok,
                                    params['fo1_w'], params['fo1_s'], params['fo1_b'],
                                    params['fo2_w'], params['fo2_s'], params['fo2_b'],
                                    params['fd_w'], params['fd_s'], params['fd_b'])
    key_mat = jnp.transpose(key_tok.reshape(B, NUM_CLASSES, KEY), (0, 2, 1))  # (B,KEY,NC)
    value = value_tok.reshape(B, NUM_CLASSES, KEY)                            # (B,NC,KEY)

    # ----- attention + f_up + SpatialOCR fuse + conv_out, fused in one kernel -----
    logits_tok = attention_ocr_head(query, key_mat, value, xmid, params)      # (B,HW,NC)

    logits = jnp.transpose(logits_tok.reshape(B, Hf, Wf, NUM_CLASSES), (0, 3, 1, 2))
    interm_nchw = jnp.transpose(interm_tok.reshape(B, Hf, Wf, NUM_CLASSES), (0, 3, 1, 2))

    # glue: align_corners=True bilinear upsample as two small linear maps
    Mh = bilinear_matrix(Hf, Hin)
    Mw = bilinear_matrix(Wf, Win)
    up_logits = jnp.einsum('oh,pw,bchw->bcop', Mh, Mw, logits)
    interm_up_logits = jnp.einsum('oh,pw,bchw->bcop', Mh, Mw, interm_nchw)

    return interm_up_logits, up_logits


# =========================== main ===========================
if __name__ == "__main__":
    root = jax.random.PRNGKey(0)
    kx, kp = jax.random.split(root)
    x = jax.random.normal(kx, (2, IN_CH, 64, 64), jnp.float32)
    params = init_params(kp)

    fwd = jax.jit(ocrnet_forward)
    interm_up, up = fwd(x, params)
    jax.block_until_ready((interm_up, up))

    assert interm_up.shape == (2, NUM_CLASSES, 64, 64)
    assert up.shape == (2, NUM_CLASSES, 64, 64)
    assert bool(jnp.all(jnp.isfinite(up))) and bool(jnp.all(jnp.isfinite(interm_up)))
    print("KERNEL_OK")
</pallas_src>

<mosaic_0001>
module attributes {stable_mosaic.version = 11 : i64} {
  func.func private @main(%arg0: i32) attributes {dimension_semantics = [#tpu.dimension_semantics<core_parallel>], iteration_bounds = array<i64: 2>, tpu.core_type = #tpu.core_type<sc_scalar_subcore>, window_params = []} {
    return
  }
}

module attributes {stable_mosaic.version = 11 : i64} {
  func.func private @main(%arg0: i32) attributes {dimension_semantics = [#tpu.dimension_semantics<core_parallel>], iteration_bounds = array<i64: 2>, tpu.core_type = #tpu.core_type<sc_scalar_subcore>, window_params = []} {
    return
  }
}

module attributes {stable_mosaic.version = 11 : i64} {
  func.func @_matmul_affine_kernel(%arg0: i32, %arg1: i32, %arg2: memref<128x192xbf16, #tpu.memory_space<vmem>>, %arg3: memref<192x96xbf16, #tpu.memory_space<vmem>>, %arg4: memref<1x96xf32, #tpu.memory_space<vmem>>, %arg5: memref<1x96xf32, #tpu.memory_space<vmem>>, %arg6: memref<128x96xbf16, #tpu.memory_space<vmem>>, %arg7: memref<128x96xf32, #tpu.memory_space<vmem>>) attributes {dimension_semantics = [#tpu.dimension_semantics<parallel>, #tpu.dimension_semantics<arbitrary>], iteration_bounds = array<i64: 1, 1>, scalar_prefetch = 0 : i64, scratch_operands = 1 : i64, tpu.core_type = #tpu.core_type<tc>, window_params = [{transform_indices = @transform_0, window_bounds = array<i64: 128, 192>}, {transform_indices = @transform_1, window_bounds = array<i64: 192, 96>}, {pipeline_mode = #tpu.pipeline_mode<synchronous>, transform_indices = @transform_2, window_bounds = array<i64: 1, 96>}, {pipeline_mode = #tpu.pipeline_mode<synchronous>, transform_indices = @transform_3, window_bounds = array<i64: 1, 96>}, {transform_indices = @transform_4, window_bounds = array<i64: 128, 96>}]} {
    %c0_i32 = arith.constant 0 : i32
    %0 = arith.cmpi eq, %arg1, %c0_i32 : i32
    %1 = arith.extui %0 : i1 to i32
    %c0_i32_0 = arith.constant 0 : i32
    %2 = arith.cmpi ne, %1, %c0_i32_0 : i32
    scf.if %2 {
      %cst_10 = arith.constant 0.000000e+00 : f32
      %12 = vector.broadcast %cst_10 : f32 to vector<128x96xf32>
      %c0_11 = arith.constant 0 : index
      %c0_12 = arith.constant 0 : index
      %13 = vector.load %arg7[%c0_11, %c0_12] : memref<128x96xf32, #tpu.memory_space<vmem>>, vector<128x96xf32>
      tpu.vector_store %arg7[%c0_11, %c0_12], %12 {strides = array<i32>} : memref<128x96xf32, #tpu.memory_space<vmem>>, vector<128x96xf32>,
    } else {
    }
    %c0 = arith.constant 0 : index
    %c0_1 = arith.constant 0 : index
    %3 = vector.load %arg7[%c0, %c0_1] : memref<128x96xf32, #tpu.memory_space<vmem>>, vector<128x96xf32>
    %c0_2 = arith.constant 0 : index
    %c0_3 = arith.constant 0 : index
    %4 = vector.load %arg2[%c0_2, %c0_3] : memref<128x192xbf16, #tpu.memory_space<vmem>>, vector<128x192xbf16>
    %c0_4 = arith.constant 0 : index
    %c0_5 = arith.constant 0 : index
    %5 = vector.load %arg3[%c0_4, %c0_5] : memref<192x96xbf16, #tpu.memory_space<vmem>>, vector<192x96xbf16>
    %cst = arith.constant dense<0.000000e+00> : vector<128x96xf32>
    %6 = tpu.matmul %4, %5, %cst {dimension_numbers = #tpu.dot_dimension_numbers<[1], [0], [0], [1], [0, 0, 1, 1], [], []>} : vector<128x192xbf16>, vector<192x96xbf16>, vector<128x96xf32> -> vector<128x96xf32>
    %7 = arith.addf %3, %6 : vector<128x96xf32>
    %c0_6 = arith.constant 0 : index
    %c0_7 = arith.constant 0 : index
    %8 = vector.load %arg7[%c0_6, %c0_7] : memref<128x96xf32, #tpu.memory_space<vmem>>, vector<128x96xf32>
    tpu.vector_store %arg7[%c0_6, %c0_7], %7 {strides = array<i32>} : memref<128x96xf32, #tpu.memory_space<vmem>>, vector<128x96xf32>,
    %c0_i32_8 = arith.constant 0 : i32
    %9 = arith.cmpi eq, %arg1, %c0_i32_8 : i32
    %10 = arith.extui %9 : i1 to i32
    %c0_i32_9 = arith.constant 0 : i32
    %11 = arith.cmpi ne, %10, %c0_i32_9 : i32
    scf.if %11 {
      %c0_10 = arith.constant 0 : index
      %c0_11 = arith.constant 0 : index
      %12 = vector.load %arg7[%c0_10, %c0_11] : memref<128x96xf32, #tpu.memory_space<vmem>>, vector<128x96xf32>
      %c0_12 = arith.constant 0 : index
      %c0_13 = arith.constant 0 : index
      %13 = vector.load %arg4[%c0_12, %c0_13] : memref<1x96xf32, #tpu.memory_space<vmem>>, vector<1x96xf32>
      %14 = vector.broadcast %13 : vector<1x96xf32> to vector<128x96xf32>
      %15 = arith.mulf %12, %14 : vector<128x96xf32>
      %c0_14 = arith.constant 0 : index
      %c0_15 = arith.constant 0 : index
      %16 = vector.load %arg5[%c0_14, %c0_15] : memref<1x96xf32, #tpu.memory_space<vmem>>, vector<1x96xf32>
      %17 = vector.broadcast %16 : vector<1x96xf32> to vector<128x96xf32>
      %18 = arith.addf %15, %17 : vector<128x96xf32>
      %cst_16 = arith.constant 0.000000e+00 : f32
      %19 = vector.broadcast %cst_16 : f32 to vector<128x96xf32>
      %20 = arith.maximumf %18, %19 : vector<128x96xf32>
      %21 = arith.truncf %20 : vector<128x96xf32> to vector<128x96xbf16>
      %c0_17 = arith.constant 0 : index
      %c0_18 = arith.constant 0 : index
      %22 = vector.load %arg6[%c0_17, %c0_18] : memref<128x96xbf16, #tpu.memory_space<vmem>>, vector<128x96xbf16>
      tpu.vector_store %arg6[%c0_17, %c0_18], %21 {strides = array<i32>} : memref<128x96xbf16, #tpu.memory_space<vmem>>, vector<128x96xbf16>,
    } else {
    }
    return
  }
  func.func @transform_0(%arg0: i32, %arg1: i32) -> (i32, i32) {
    %c0_i32 = arith.constant 0 : i32
    return %arg0, %arg1 : i32, i32
  }
  func.func @transform_1(%arg0: i32, %arg1: i32) -> (i32, i32) {
    %c0_i32 = arith.constant 0 : i32
    %c0_i32_0 = arith.constant 0 : i32
    return %arg1, %c0_i32 : i32, i32
  }
  func.func @transform_2(%arg0: i32, %arg1: i32) -> (i32, i32) {
    %c0_i32 = arith.constant 0 : i32
    %c0_i32_0 = arith.constant 0 : i32
    %c0_i32_1 = arith.constant 0 : i32
    return %c0_i32, %c0_i32_0 : i32, i32
  }
  func.func @transform_3(%arg0: i32, %arg1: i32) -> (i32, i32) {
    %c0_i32 = arith.constant 0 : i32
    %c0_i32_0 = arith.constant 0 : i32
    %c0_i32_1 = arith.constant 0 : i32
    return %c0_i32, %c0_i32_0 : i32, i32
  }
  func.func @transform_4(%arg0: i32, %arg1: i32) -> (i32, i32) {
    %c0_i32 = arith.constant 0 : i32
    %c0_i32_0 = arith.constant 0 : i32
    return %arg0, %c0_i32 : i32, i32
  }
}

module attributes {stable_mosaic.version = 11 : i64} {
  func.func @_conv3x3_kernel(%arg0: i32, %arg1: memref<1x80x96xbf16, #tpu.memory_space<vmem>>, %arg2: memref<3x96x128xbf16, #tpu.memory_space<vmem>>, %arg3: memref<1x128xf32, #tpu.memory_space<vmem>>, %arg4: memref<1x128xf32, #tpu.memory_space<vmem>>, %arg5: memref<128x5xbf16, #tpu.memory_space<vmem>>, %arg6: memref<1x5xf32, #tpu.memory_space<vmem>>, %arg7: memref<1x64x5xf32, #tpu.memory_space<vmem>>) attributes {dimension_semantics = [#tpu.dimension_semantics<parallel>], iteration_bounds = array<i64: 2>, scalar_prefetch = 0 : i64, scratch_operands = 0 : i64, tpu.core_type = #tpu.core_type<tc>, window_params = [{transform_indices = @transform_0, window_bounds = array<i64: 1, 80, 96>}, {pipeline_mode = #tpu.pipeline_mode<synchronous>, transform_indices = @transform_1, window_bounds = array<i64: 3, 96, 128>}, {pipeline_mode = #tpu.pipeline_mode<synchronous>, transform_indices = @transform_2, window_bounds = array<i64: 1, 128>}, {pipeline_mode = #tpu.pipeline_mode<synchronous>, transform_indices = @transform_3, window_bounds = array<i64: 1, 128>}, {pipeline_mode = #tpu.pipeline_mode<synchronous>, transform_indices = @transform_4, window_bounds = array<i64: 128, 5>}, {pipeline_mode = #tpu.pipeline_mode<synchronous>, transform_indices = @transform_5, window_bounds = array<i64: 1, 5>}, {transform_indices = @transform_6, window_bounds = array<i64: 1, 64, 5>}]} {
    %c0 = arith.constant 0 : index
    %c0_0 = arith.constant 0 : index
    %c0_1 = arith.constant 0 : index
    %0 = vector.load %arg1[%c0, %c0_0, %c0_1] : memref<1x80x96xbf16, #tpu.memory_space<vmem>>, vector<1x80x96xbf16>
    %1 = vector.shape_cast %0 : vector<1x80x96xbf16> to vector<80x96xbf16>
    %cst = arith.constant 0.000000e+00 : f32
    %2 = vector.broadcast %cst : f32 to vector<64x128xf32>
    %c0_2 = arith.constant 0 : index
    %c0_3 = arith.constant 0 : index
    %c0_4 = arith.constant 0 : index
    %3 = vector.load %arg2[%c0_2, %c0_3, %c0_4] : memref<3x96x128xbf16, #tpu.memory_space<vmem>>, vector<1x96x128xbf16>
    %4 = vector.shape_cast %3 : vector<1x96x128xbf16> to vector<96x128xbf16>
    %cst_5 = arith.constant dense<0.000000e+00> : vector<80x128xf32>
    %5 = tpu.matmul %1, %4, %cst_5 {dimension_numbers = #tpu.dot_dimension_numbers<[1], [0], [0], [1], [0, 0, 1, 1], [], []>} : vector<80x96xbf16>, vector<96x128xbf16>, vector<80x128xf32> -> vector<80x128xf32>
    %6 = vector.extract_strided_slice %5 {offsets = [0, 0], sizes = [64, 128], strides = [1, 1]} : vector<80x128xf32> to vector<64x128xf32>
    %7 = arith.addf %2, %6 : vector<64x128xf32>
    %c1 = arith.constant 1 : index
    %c0_6 = arith.constant 0 : index
    %c0_7 = arith.constant 0 : index
    %8 = vector.load %arg2[%c1, %c0_6, %c0_7] : memref<3x96x128xbf16, #tpu.memory_space<vmem>>, vector<1x96x128xbf16>
    %9 = vector.shape_cast %8 : vector<1x96x128xbf16> to vector<96x128xbf16>
    %cst_8 = arith.constant dense<0.000000e+00> : vector<80x128xf32>
    %10 = tpu.matmul %1, %9, %cst_8 {dimension_numbers = #tpu.dot_dimension_numbers<[1], [0], [0], [1], [0, 0, 1, 1], [], []>} : vector<80x96xbf16>, vector<96x128xbf16>, vector<80x128xf32> -> vector<80x128xf32>
    %11 = vector.extract_strided_slice %10 {offsets = [8, 0], sizes = [64, 128], strides = [1, 1]} : vector<80x128xf32> to vector<64x128xf32>
    %12 = arith.addf %7, %11 : vector<64x128xf32>
    %c2 = arith.constant 2 : index
    %c0_9 = arith.constant 0 : index
    %c0_10 = arith.constant 0 : index
    %13 = vector.load %arg2[%c2, %c0_9, %c0_10] : memref<3x96x128xbf16, #tpu.memory_space<vmem>>, vector<1x96x128xbf16>
    %14 = vector.shape_cast %13 : vector<1x96x128xbf16> to vector<96x128xbf16>
    %cst_11 = arith.constant dense<0.000000e+00> : vector<80x128xf32>
    %15 = tpu.matmul %1, %14, %cst_11 {dimension_numbers = #tpu.dot_dimension_numbers<[1], [0], [0], [1], [0, 0, 1, 1], [], []>} : vector<80x96xbf16>, vector<96x128xbf16>, vector<80x128xf32> -> vector<80x128xf32>
    %16 = vector.extract_strided_slice %15 {offsets = [16, 0], sizes = [64, 128], strides = [1, 1]} : vector<80x128xf32> to vector<64x128xf32>
    %17 = arith.addf %12, %16 : vector<64x128xf32>
    %c0_12 = arith.constant 0 : index
    %c0_13 = arith.constant 0 : index
    %18 = vector.load %arg3[%c0_12, %c0_13] : memref<1x128xf32, #tpu.memory_space<vmem>>, vector<1x128xf32>
    %19 = vector.broadcast %18 : vector<1x128xf32> to vector<64x128xf32>
    %20 = arith.mulf %17, %19 : vector<64x128xf32>
    %c0_14 = arith.constant 0 : index
    %c0_15 = arith.constant 0 : index
    %21 = vector.load %arg4[%c0_14, %c0_15] : memref<1x128xf32, #tpu.memory_space<vmem>>, vector<1x128xf32>
    %22 = vector.broadcast %21 : vector<1x128xf32> to vector<64x128xf32>
    %23 = arith.addf %20, %22 : vector<64x128xf32>
    %cst_16 = arith.constant 0.000000e+00 : f32
    %24 = vector.broadcast %cst_16 : f32 to vector<64x128xf32>
    %25 = arith.maximumf %23, %24 : vector<64x128xf32>
    %26 = arith.truncf %25 : vector<64x128xf32> to vector<64x128xbf16>
    %c0_17 = arith.constant 0 : index
    %c0_18 = arith.constant 0 : index
    %27 = vector.load %arg5[%c0_17, %c0_18] : memref<128x5xbf16, #tpu.memory_space<vmem>>, vector<128x5xbf16>
    %cst_19 = arith.constant dense<0.000000e+00> : vector<64x5xf32>
    %28 = tpu.matmul %26, %27, %cst_19 {dimension_numbers = #tpu.dot_dimension_numbers<[1], [0], [0], [1], [0, 0, 1, 1], [], []>} : vector<64x128xbf16>, vector<128x5xbf16>, vector<64x5xf32> -> vector<64x5xf32>
    %c0_20 = arith.constant 0 : index
    %c0_21 = arith.constant 0 : index
    %29 = vector.load %arg6[%c0_20, %c0_21] : memref<1x5xf32, #tpu.memory_space<vmem>>, vector<1x5xf32>
    %30 = vector.broadcast %29 : vector<1x5xf32> to vector<64x5xf32>
    %31 = arith.addf %28, %30 : vector<64x5xf32>
    %c0_22 = arith.constant 0 : index
    %c0_23 = arith.constant 0 : index
    %c0_24 = arith.constant 0 : index
    %32 = vector.load %arg7[%c0_22, %c0_23, %c0_24] : memref<1x64x5xf32, #tpu.memory_space<vmem>>, vector<1x64x5xf32>
    %33 = vector.shape_cast %32 : vector<1x64x5xf32> to vector<64x5xf32>
    %34 = vector.shape_cast %31 : vector<64x5xf32> to vector<1x64x5xf32>
    tpu.vector_store %arg7[%c0_22, %c0_23, %c0_24], %34 {strides = array<i32>} : memref<1x64x5xf32, #tpu.memory_space<vmem>>, vector<1x64x5xf32>,
    return
  }
  func.func @transform_0(%arg0: i32) -> (i32, i32, i32) {
    %c0_i32 = arith.constant 0 : i32
    %c0_i32_0 = arith.constant 0 : i32
    %c0_i32_1 = arith.constant 0 : i32
    return %arg0, %c0_i32, %c0_i32_0 : i32, i32, i32
  }
  func.func @transform_1(%arg0: i32) -> (i32, i32, i32) {
    %c0_i32 = arith.constant 0 : i32
    %c0_i32_0 = arith.constant 0 : i32
    %c0_i32_1 = arith.constant 0 : i32
    %c0_i32_2 = arith.constant 0 : i32
    return %c0_i32, %c0_i32_0, %c0_i32_1 : i32, i32, i32
  }
  func.func @transform_2(%arg0: i32) -> (i32, i32) {
    %c0_i32 = arith.constant 0 : i32
    %c0_i32_0 = arith.constant 0 : i32
    %c0_i32_1 = arith.constant 0 : i32
    return %c0_i32, %c0_i32_0 : i32, i32
  }
  func.func @transform_3(%arg0: i32) -> (i32, i32) {
    %c0_i32 = arith.constant 0 : i32
    %c0_i32_0 = arith.constant 0 : i32
    %c0_i32_1 = arith.constant 0 : i32
    return %c0_i32, %c0_i32_0 : i32, i32
  }
  func.func @transform_4(%arg0: i32) -> (i32, i32) {
    %c0_i32 = arith.constant 0 : i32
    %c0_i32_0 = arith.constant 0 : i32
    %c0_i32_1 = arith.constant 0 : i32
    return %c0_i32, %c0_i32_0 : i32, i32
  }
  func.func @transform_5(%arg0: i32) -> (i32, i32) {
    %c0_i32 = arith.constant 0 : i32
    %c0_i32_0 = arith.constant 0 : i32
    %c0_i32_1 = arith.constant 0 : i32
    return %c0_i32, %c0_i32_0 : i32, i32
  }
  func.func @transform_6(%arg0: i32) -> (i32, i32, i32) {
    %c0_i32 = arith.constant 0 : i32
    %c0_i32_0 = arith.constant 0 : i32
    %c0_i32_1 = arith.constant 0 : i32
    return %arg0, %c0_i32, %c0_i32_0 : i32, i32, i32
  }
}

module attributes {stable_mosaic.version = 11 : i64} {
  func.func @_conv3x3_kernel(%arg0: i32, %arg1: memref<1x80x192xbf16, #tpu.memory_space<vmem>>, %arg2: memref<3x192x128xbf16, #tpu.memory_space<vmem>>, %arg3: memref<1x128xf32, #tpu.memory_space<vmem>>, %arg4: memref<1x128xf32, #tpu.memory_space<vmem>>, %arg5: memref<1x64x128xbf16, #tpu.memory_space<vmem>>) attributes {dimension_semantics = [#tpu.dimension_semantics<parallel>], iteration_bounds = array<i64: 2>, scalar_prefetch = 0 : i64, scratch_operands = 0 : i64, tpu.core_type = #tpu.core_type<tc>, window_params = [{transform_indices = @transform_0, window_bounds = array<i64: 1, 80, 192>}, {pipeline_mode = #tpu.pipeline_mode<synchronous>, transform_indices = @transform_1, window_bounds = array<i64: 3, 192, 128>}, {pipeline_mode = #tpu.pipeline_mode<synchronous>, transform_indices = @transform_2, window_bounds = array<i64: 1, 128>}, {pipeline_mode = #tpu.pipeline_mode<synchronous>, transform_indices = @transform_3, window_bounds = array<i64: 1, 128>}, {transform_indices = @transform_4, window_bounds = array<i64: 1, 64, 128>}]} {
    %c0 = arith.constant 0 : index
    %c0_0 = arith.constant 0 : index
    %c0_1 = arith.constant 0 : index
    %0 = vector.load %arg1[%c0, %c0_0, %c0_1] : memref<1x80x192xbf16, #tpu.memory_space<vmem>>, vector<1x80x192xbf16>
    %1 = vector.shape_cast %0 : vector<1x80x192xbf16> to vector<80x192xbf16>
    %cst = arith.constant 0.000000e+00 : f32
    %2 = vector.broadcast %cst : f32 to vector<64x128xf32>
    %c0_2 = arith.constant 0 : index
    %c0_3 = arith.constant 0 : index
    %c0_4 = arith.constant 0 : index
    %3 = vector.load %arg2[%c0_2, %c0_3, %c0_4] : memref<3x192x128xbf16, #tpu.memory_space<vmem>>, vector<1x192x128xbf16>
    %4 = vector.shape_cast %3 : vector<1x192x128xbf16> to vector<192x128xbf16>
    %cst_5 = arith.constant dense<0.000000e+00> : vector<80x128xf32>
    %5 = tpu.matmul %1, %4, %cst_5 {dimension_numbers = #tpu.dot_dimension_numbers<[1], [0], [0], [1], [0, 0, 1, 1], [], []>} : vector<80x192xbf16>, vector<192x128xbf16>, vector<80x128xf32> -> vector<80x128xf32>
    %6 = vector.extract_strided_slice %5 {offsets = [0, 0], sizes = [64, 128], strides = [1, 1]} : vector<80x128xf32> to vector<64x128xf32>
    %7 = arith.addf %2, %6 : vector<64x128xf32>
    %c1 = arith.constant 1 : index
    %c0_6 = arith.constant 0 : index
    %c0_7 = arith.constant 0 : index
    %8 = vector.load %arg2[%c1, %c0_6, %c0_7] : memref<3x192x128xbf16, #tpu.memory_space<vmem>>, vector<1x192x128xbf16>
    %9 = vector.shape_cast %8 : vector<1x192x128xbf16> to vector<192x128xbf16>
    %cst_8 = arith.constant dense<0.000000e+00> : vector<80x128xf32>
    %10 = tpu.matmul %1, %9, %cst_8 {dimension_numbers = #tpu.dot_dimension_numbers<[1], [0], [0], [1], [0, 0, 1, 1], [], []>} : vector<80x192xbf16>, vector<192x128xbf16>, vector<80x128xf32> -> vector<80x128xf32>
    %11 = vector.extract_strided_slice %10 {offsets = [8, 0], sizes = [64, 128], strides = [1, 1]} : vector<80x128xf32> to vector<64x128xf32>
    %12 = arith.addf %7, %11 : vector<64x128xf32>
    %c2 = arith.constant 2 : index
    %c0_9 = arith.constant 0 : index
    %c0_10 = arith.constant 0 : index
    %13 = vector.load %arg2[%c2, %c0_9, %c0_10] : memref<3x192x128xbf16, #tpu.memory_space<vmem>>, vector<1x192x128xbf16>
    %14 = vector.shape_cast %13 : vector<1x192x128xbf16> to vector<192x128xbf16>
    %cst_11 = arith.constant dense<0.000000e+00> : vector<80x128xf32>
    %15 = tpu.matmul %1, %14, %cst_11 {dimension_numbers = #tpu.dot_dimension_numbers<[1], [0], [0], [1], [0, 0, 1, 1], [], []>} : vector<80x192xbf16>, vector<192x128xbf16>, vector<80x128xf32> -> vector<80x128xf32>
    %16 = vector.extract_strided_slice %15 {offsets = [16, 0], sizes = [64, 128], strides = [1, 1]} : vector<80x128xf32> to vector<64x128xf32>
    %17 = arith.addf %12, %16 : vector<64x128xf32>
    %c0_12 = arith.constant 0 : index
    %c0_13 = arith.constant 0 : index
    %18 = vector.load %arg3[%c0_12, %c0_13] : memref<1x128xf32, #tpu.memory_space<vmem>>, vector<1x128xf32>
    %19 = vector.broadcast %18 : vector<1x128xf32> to vector<64x128xf32>
    %20 = arith.mulf %17, %19 : vector<64x128xf32>
    %c0_14 = arith.constant 0 : index
    %c0_15 = arith.constant 0 : index
    %21 = vector.load %arg4[%c0_14, %c0_15] : memref<1x128xf32, #tpu.memory_space<vmem>>, vector<1x128xf32>
    %22 = vector.broadcast %21 : vector<1x128xf32> to vector<64x128xf32>
    %23 = arith.addf %20, %22 : vector<64x128xf32>
    %cst_16 = arith.constant 0.000000e+00 : f32
    %24 = vector.broadcast %cst_16 : f32 to vector<64x128xf32>
    %25 = arith.maximumf %23, %24 : vector<64x128xf32>
    %26 = arith.truncf %25 : vector<64x128xf32> to vector<64x128xbf16>
    %c0_17 = arith.constant 0 : index
    %c0_18 = arith.constant 0 : index
    %c0_19 = arith.constant 0 : index
    %27 = vector.load %arg5[%c0_17, %c0_18, %c0_19] : memref<1x64x128xbf16, #tpu.memory_space<vmem>>, vector<1x64x128xbf16>
    %28 = vector.shape_cast %27 : vector<1x64x128xbf16> to vector<64x128xbf16>
    %29 = vector.shape_cast %26 : vector<64x128xbf16> to vector<1x64x128xbf16>
    tpu.vector_store %arg5[%c0_17, %c0_18, %c0_19], %29 {strides = array<i32>} : memref<1x64x128xbf16, #tpu.memory_space<vmem>>, vector<1x64x128xbf16>,
    return
  }
  func.func @transform_0(%arg0: i32) -> (i32, i32, i32) {
    %c0_i32 = arith.constant 0 : i32
    %c0_i32_0 = arith.constant 0 : i32
    %c0_i32_1 = arith.constant 0 : i32
    return %arg0, %c0_i32, %c0_i32_0 : i32, i32, i32
  }
  func.func @transform_1(%arg0: i32) -> (i32, i32, i32) {
    %c0_i32 = arith.constant 0 : i32
    %c0_i32_0 = arith.constant 0 : i32
    %c0_i32_1 = arith.constant 0 : i32
    %c0_i32_2 = arith.constant 0 : i32
    return %c0_i32, %c0_i32_0, %c0_i32_1 : i32, i32, i32
  }
  func.func @transform_2(%arg0: i32) -> (i32, i32) {
    %c0_i32 = arith.constant 0 : i32
    %c0_i32_0 = arith.constant 0 : i32
    %c0_i32_1 = arith.constant 0 : i32
    return %c0_i32, %c0_i32_0 : i32, i32
  }
  func.func @transform_3(%arg0: i32) -> (i32, i32) {
    %c0_i32 = arith.constant 0 : i32
    %c0_i32_0 = arith.constant 0 : i32
    %c0_i32_1 = arith.constant 0 : i32
    return %c0_i32, %c0_i32_0 : i32, i32
  }
  func.func @transform_4(%arg0: i32) -> (i32, i32, i32) {
    %c0_i32 = arith.constant 0 : i32
    %c0_i32_0 = arith.constant 0 : i32
    %c0_i32_1 = arith.constant 0 : i32
    return %arg0, %c0_i32, %c0_i32_0 : i32, i32, i32
  }
}

module attributes {stable_mosaic.version = 11 : i64} {
  func.func @_spatial_gather_kernel(%arg0: i32, %arg1: memref<1x5x64xf32, #tpu.memory_space<vmem>>, %arg2: memref<1x64x128xbf16, #tpu.memory_space<vmem>>, %arg3: memref<1x5x128xbf16, #tpu.memory_space<vmem>>) attributes {dimension_semantics = [#tpu.dimension_semantics<parallel>], iteration_bounds = array<i64: 2>, scalar_prefetch = 0 : i64, scratch_operands = 0 : i64, tpu.core_type = #tpu.core_type<tc>, window_params = [{transform_indices = @transform_0, window_bounds = array<i64: 1, 5, 64>}, {transform_indices = @transform_1, window_bounds = array<i64: 1, 64, 128>}, {transform_indices = @transform_2, window_bounds = array<i64: 1, 5, 128>}]} {
    %c0 = arith.constant 0 : index
    %c0_0 = arith.constant 0 : index
    %c0_1 = arith.constant 0 : index
    %0 = vector.load %arg1[%c0, %c0_0, %c0_1] : memref<1x5x64xf32, #tpu.memory_space<vmem>>, vector<1x5x64xf32>
    %1 = vector.shape_cast %0 : vector<1x5x64xf32> to vector<5x64xf32>
    %cst = arith.constant 1.000000e+00 : f32
    %2 = vector.broadcast %cst : f32 to vector<5x64xf32>
    %3 = arith.mulf %2, %1 : vector<5x64xf32>
    %cst_2 = arith.constant dense<0xFF800000> : vector<5xf32>
    %4 = vector.multi_reduction <maximumf>, %3, %cst_2 [1] : vector<5x64xf32> to vector<5xf32>
    %5 = vector.shape_cast %4 : vector<5xf32> to vector<5x1xf32>
    %6 = vector.broadcast %5 : vector<5x1xf32> to vector<5x64xf32>
    %7 = arith.subf %3, %6 : vector<5x64xf32>
    %8 = math.exp %7 : vector<5x64xf32>
    %cst_3 = arith.constant dense<0.000000e+00> : vector<5xf32>
    %9 = vector.multi_reduction <add>, %8, %cst_3 [1] : vector<5x64xf32> to vector<5xf32>
    %10 = vector.shape_cast %9 : vector<5xf32> to vector<5x1xf32>
    %11 = tpu.reciprocal %10 {approx = true} : vector<5x1xf32> -> vector<5x1xf32>
    %12 = vector.broadcast %11 : vector<5x1xf32> to vector<5x64xf32>
    %13 = arith.mulf %8, %12 : vector<5x64xf32>
    %14 = arith.truncf %13 : vector<5x64xf32> to vector<5x64xbf16>
    %c0_4 = arith.constant 0 : index
    %c0_5 = arith.constant 0 : index
    %c0_6 = arith.constant 0 : index
    %15 = vector.load %arg2[%c0_4, %c0_5, %c0_6] : memref<1x64x128xbf16, #tpu.memory_space<vmem>>, vector<1x64x128xbf16>
    %16 = vector.shape_cast %15 : vector<1x64x128xbf16> to vector<64x128xbf16>
    %cst_7 = arith.constant dense<0.000000e+00> : vector<5x128xf32>
    %17 = tpu.matmul %14, %16, %cst_7 {dimension_numbers = #tpu.dot_dimension_numbers<[1], [0], [0], [1], [0, 0, 1, 1], [], []>} : vector<5x64xbf16>, vector<64x128xbf16>, vector<5x128xf32> -> vector<5x128xf32>
    %18 = arith.truncf %17 : vector<5x128xf32> to vector<5x128xbf16>
    %c0_8 = arith.constant 0 : index
    %c0_9 = arith.constant 0 : index
    %c0_10 = arith.constant 0 : index
    %19 = vector.load %arg3[%c0_8, %c0_9, %c0_10] : memref<1x5x128xbf16, #tpu.memory_space<vmem>>, vector<1x5x128xbf16>
    %20 = vector.shape_cast %19 : vector<1x5x128xbf16> to vector<5x128xbf16>
    %21 = vector.shape_cast %18 : vector<5x128xbf16> to vector<1x5x128xbf16>
    tpu.vector_store %arg3[%c0_8, %c0_9, %c0_10], %21 {strides = array<i32>} : memref<1x5x128xbf16, #tpu.memory_space<vmem>>, vector<1x5x128xbf16>,
    return
  }
  func.func @transform_0(%arg0: i32) -> (i32, i32, i32) {
    %c0_i32 = arith.constant 0 : i32
    %c0_i32_0 = arith.constant 0 : i32
    %c0_i32_1 = arith.constant 0 : i32
    return %arg0, %c0_i32, %c0_i32_0 : i32, i32, i32
  }
  func.func @transform_1(%arg0: i32) -> (i32, i32, i32) {
    %c0_i32 = arith.constant 0 : i32
    %c0_i32_0 = arith.constant 0 : i32
    %c0_i32_1 = arith.constant 0 : i32
    return %arg0, %c0_i32, %c0_i32_0 : i32, i32, i32
  }
  func.func @transform_2(%arg0: i32) -> (i32, i32, i32) {
    %c0_i32 = arith.constant 0 : i32
    %c0_i32_0 = arith.constant 0 : i32
    %c0_i32_1 = arith.constant 0 : i32
    return %arg0, %c0_i32, %c0_i32_0 : i32, i32, i32
  }
}

module attributes {stable_mosaic.version = 11 : i64} {
  func.func @_proxy_proj_kernel(%arg0: i32, %arg1: memref<10x128xbf16, #tpu.memory_space<vmem>>, %arg2: memref<128x64xbf16, #tpu.memory_space<vmem>>, %arg3: memref<1x64xf32, #tpu.memory_space<vmem>>, %arg4: memref<1x64xf32, #tpu.memory_space<vmem>>, %arg5: memref<64x64xbf16, #tpu.memory_space<vmem>>, %arg6: memref<1x64xf32, #tpu.memory_space<vmem>>, %arg7: memref<1x64xf32, #tpu.memory_space<vmem>>, %arg8: memref<128x64xbf16, #tpu.memory_space<vmem>>, %arg9: memref<1x64xf32, #tpu.memory_space<vmem>>, %arg10: memref<1x64xf32, #tpu.memory_space<vmem>>, %arg11: memref<10x64xbf16, #tpu.memory_space<vmem>>, %arg12: memref<10x64xbf16, #tpu.memory_space<vmem>>) attributes {dimension_semantics = [#tpu.dimension_semantics<arbitrary>], iteration_bounds = array<i64: 1>, scalar_prefetch = 0 : i64, scratch_operands = 0 : i64, tpu.core_type = #tpu.core_type<tc>, window_params = [{pipeline_mode = #tpu.pipeline_mode<synchronous>, transform_indices = @transform_0, window_bounds = array<i64: 10, 128>}, {pipeline_mode = #tpu.pipeline_mode<synchronous>, transform_indices = @transform_1, window_bounds = array<i64: 128, 64>}, {pipeline_mode = #tpu.pipeline_mode<synchronous>, transform_indices = @transform_2, window_bounds = array<i64: 1, 64>}, {pipeline_mode = #tpu.pipeline_mode<synchronous>, transform_indices = @transform_3, window_bounds = array<i64: 1, 64>}, {pipeline_mode = #tpu.pipeline_mode<synchronous>, transform_indices = @transform_4, window_bounds = array<i64: 64, 64>}, {pipeline_mode = #tpu.pipeline_mode<synchronous>, transform_indices = @transform_5, window_bounds = array<i64: 1, 64>}, {pipeline_mode = #tpu.pipeline_mode<synchronous>, transform_indices = @transform_6, window_bounds = array<i64: 1, 64>}, {pipeline_mode = #tpu.pipeline_mode<synchronous>, transform_indices = @transform_7, window_bounds = array<i64: 128, 64>}, {pipeline_mode = #tpu.pipeline_mode<synchronous>, transform_indices = @transform_8, window_bounds = array<i64: 1, 64>}, {pipeline_mode = #tpu.pipeline_mode<synchronous>, transform_indices = @transform_9, window_bounds = array<i64: 1, 64>}, {pipeline_mode = #tpu.pipeline_mode<synchronous>, transform_indices = @transform_10, window_bounds = array<i64: 10, 64>}, {pipeline_mode = #tpu.pipeline_mode<synchronous>, transform_indices = @transform_11, window_bounds = array<i64: 10, 64>}]} {
    %c0 = arith.constant 0 : index
    %c0_0 = arith.constant 0 : index
    %0 = vector.load %arg1[%c0, %c0_0] : memref<10x128xbf16, #tpu.memory_space<vmem>>, vector<10x128xbf16>
    %c0_1 = arith.constant 0 : index
    %c0_2 = arith.constant 0 : index
    %1 = vector.load %arg2[%c0_1, %c0_2] : memref<128x64xbf16, #tpu.memory_space<vmem>>, vector<128x64xbf16>
    %cst = arith.constant dense<0.000000e+00> : vector<10x64xf32>
    %2 = tpu.matmul %0, %1, %cst {dimension_numbers = #tpu.dot_dimension_numbers<[1], [0], [0], [1], [0, 0, 1, 1], [], []>} : vector<10x128xbf16>, vector<128x64xbf16>, vector<10x64xf32> -> vector<10x64xf32>
    %c0_3 = arith.constant 0 : index
    %c0_4 = arith.constant 0 : index
    %3 = vector.load %arg3[%c0_3, %c0_4] : memref<1x64xf32, #tpu.memory_space<vmem>>, vector<1x64xf32>
    %4 = vector.broadcast %3 : vector<1x64xf32> to vector<10x64xf32>
    %5 = arith.mulf %2, %4 : vector<10x64xf32>
    %c0_5 = arith.constant 0 : index
    %c0_6 = arith.constant 0 : index
    %6 = vector.load %arg4[%c0_5, %c0_6] : memref<1x64xf32, #tpu.memory_space<vmem>>, vector<1x64xf32>
    %7 = vector.broadcast %6 : vector<1x64xf32> to vector<10x64xf32>
    %8 = arith.addf %5, %7 : vector<10x64xf32>
    %cst_7 = arith.constant 0.000000e+00 : f32
    %9 = vector.broadcast %cst_7 : f32 to vector<10x64xf32>
    %10 = arith.maximumf %8, %9 : vector<10x64xf32>
    %11 = arith.truncf %10 : vector<10x64xf32> to vector<10x64xbf16>
    %c0_8 = arith.constant 0 : index
    %c0_9 = arith.constant 0 : index
    %12 = vector.load %arg5[%c0_8, %c0_9] : memref<64x64xbf16, #tpu.memory_space<vmem>>, vector<64x64xbf16>
    %cst_10 = arith.constant dense<0.000000e+00> : vector<10x64xf32>
    %13 = tpu.matmul %11, %12, %cst_10 {dimension_numbers = #tpu.dot_dimension_numbers<[1], [0], [0], [1], [0, 0, 1, 1], [], []>} : vector<10x64xbf16>, vector<64x64xbf16>, vector<10x64xf32> -> vector<10x64xf32>
    %c0_11 = arith.constant 0 : index
    %c0_12 = arith.constant 0 : index
    %14 = vector.load %arg6[%c0_11, %c0_12] : memref<1x64xf32, #tpu.memory_space<vmem>>, vector<1x64xf32>
    %15 = vector.broadcast %14 : vector<1x64xf32> to vector<10x64xf32>
    %16 = arith.mulf %13, %15 : vector<10x64xf32>
    %c0_13 = arith.constant 0 : index
    %c0_14 = arith.constant 0 : index
    %17 = vector.load %arg7[%c0_13, %c0_14] : memref<1x64xf32, #tpu.memory_space<vmem>>, vector<1x64xf32>
    %18 = vector.broadcast %17 : vector<1x64xf32> to vector<10x64xf32>
    %19 = arith.addf %16, %18 : vector<10x64xf32>
    %cst_15 = arith.constant 0.000000e+00 : f32
    %20 = vector.broadcast %cst_15 : f32 to vector<10x64xf32>
    %21 = arith.maximumf %19, %20 : vector<10x64xf32>
    %c0_16 = arith.constant 0 : index
    %c0_17 = arith.constant 0 : index
    %22 = vector.load %arg8[%c0_16, %c0_17] : memref<128x64xbf16, #tpu.memory_space<vmem>>, vector<128x64xbf16>
    %cst_18 = arith.constant dense<0.000000e+00> : vector<10x64xf32>
    %23 = tpu.matmul %0, %22, %cst_18 {dimension_numbers = #tpu.dot_dimension_numbers<[1], [0], [0], [1], [0, 0, 1, 1], [], []>} : vector<10x128xbf16>, vector<128x64xbf16>, vector<10x64xf32> -> vector<10x64xf32>
    %c0_19 = arith.constant 0 : index
    %c0_20 = arith.constant 0 : index
    %24 = vector.load %arg9[%c0_19, %c0_20] : memref<1x64xf32, #tpu.memory_space<vmem>>, vector<1x64xf32>
    %25 = vector.broadcast %24 : vector<1x64xf32> to vector<10x64xf32>
    %26 = arith.mulf %23, %25 : vector<10x64xf32>
    %c0_21 = arith.constant 0 : index
    %c0_22 = arith.constant 0 : index
    %27 = vector.load %arg10[%c0_21, %c0_22] : memref<1x64xf32, #tpu.memory_space<vmem>>, vector<1x64xf32>
    %28 = vector.broadcast %27 : vector<1x64xf32> to vector<10x64xf32>
    %29 = arith.addf %26, %28 : vector<10x64xf32>
    %cst_23 = arith.constant 0.000000e+00 : f32
    %30 = vector.broadcast %cst_23 : f32 to vector<10x64xf32>
    %31 = arith.maximumf %29, %30 : vector<10x64xf32>
    %32 = arith.truncf %21 : vector<10x64xf32> to vector<10x64xbf16>
    %c0_24 = arith.constant 0 : index
    %c0_25 = arith.constant 0 : index
    %33 = vector.load %arg11[%c0_24, %c0_25] : memref<10x64xbf16, #tpu.memory_space<vmem>>, vector<10x64xbf16>
    tpu.vector_store %arg11[%c0_24, %c0_25], %32 {strides = array<i32>} : memref<10x64xbf16, #tpu.memory_space<vmem>>, vector<10x64xbf16>,
    %34 = arith.truncf %31 : vector<10x64xf32> to vector<10x64xbf16>
    %c0_26 = arith.constant 0 : index
    %c0_27 = arith.constant 0 : index
    %35 = vector.load %arg12[%c0_26, %c0_27] : memref<10x64xbf16, #tpu.memory_space<vmem>>, vector<10x64xbf16>
    tpu.vector_store %arg12[%c0_26, %c0_27], %34 {strides = array<i32>} : memref<10x64xbf16, #tpu.memory_space<vmem>>, vector<10x64xbf16>,
    return
  }
  func.func @transform_0(%arg0: i32) -> (i32, i32) {
    %c0_i32 = arith.constant 0 : i32
    %c0_i32_0 = arith.constant 0 : i32
    %c0_i32_1 = arith.constant 0 : i32
    return %c0_i32, %c0_i32_0 : i32, i32
  }
  func.func @transform_1(%arg0: i32) -> (i32, i32) {
    %c0_i32 = arith.constant 0 : i32
    %c0_i32_0 = arith.constant 0 : i32
    %c0_i32_1 = arith.constant 0 : i32
    return %c0_i32, %c0_i32_0 : i32, i32
  }
  func.func @transform_2(%arg0: i32) -> (i32, i32) {
    %c0_i32 = arith.constant 0 : i32
    %c0_i32_0 = arith.constant 0 : i32
    %c0_i32_1 = arith.constant 0 : i32
    return %c0_i32, %c0_i32_0 : i32, i32
  }
  func.func @transform_3(%arg0: i32) -> (i32, i32) {
    %c0_i32 = arith.constant 0 : i32
    %c0_i32_0 = arith.constant 0 : i32
    %c0_i32_1 = arith.constant 0 : i32
    return %c0_i32, %c0_i32_0 : i32, i32
  }
  func.func @transform_4(%arg0: i32) -> (i32, i32) {
    %c0_i32 = arith.constant 0 : i32
    %c0_i32_0 = arith.constant 0 : i32
    %c0_i32_1 = arith.constant 0 : i32
    return %c0_i32, %c0_i32_0 : i32, i32
  }
  func.func @transform_5(%arg0: i32) -> (i32, i32) {
    %c0_i32 = arith.constant 0 : i32
    %c0_i32_0 = arith.constant 0 : i32
    %c0_i32_1 = arith.constant 0 : i32
    return %c0_i32, %c0_i32_0 : i32, i32
  }
  func.func @transform_6(%arg0: i32) -> (i32, i32) {
    %c0_i32 = arith.constant 0 : i32
    %c0_i32_0 = arith.constant 0 : i32
    %c0_i32_1 = arith.constant 0 : i32
    return %c0_i32, %c0_i32_0 : i32, i32
  }
  func.func @transform_7(%arg0: i32) -> (i32, i32) {
    %c0_i32 = arith.constant 0 : i32
    %c0_i32_0 = arith.constant 0 : i32
    %c0_i32_1 = arith.constant 0 : i32
    return %c0_i32, %c0_i32_0 : i32, i32
  }
  func.func @transform_8(%arg0: i32) -> (i32, i32) {
    %c0_i32 = arith.constant 0 : i32
    %c0_i32_0 = arith.constant 0 : i32
    %c0_i32_1 = arith.constant 0 : i32
    return %c0_i32, %c0_i32_0 : i32, i32
  }
  func.func @transform_9(%arg0: i32) -> (i32, i32) {
    %c0_i32 = arith.constant 0 : i32
    %c0_i32_0 = arith.constant 0 : i32
    %c0_i32_1 = arith.constant 0 : i32
    return %c0_i32, %c0_i32_0 : i32, i32
  }
  func.func @transform_10(%arg0: i32) -> (i32, i32) {
    %c0_i32 = arith.constant 0 : i32
    %c0_i32_0 = arith.constant 0 : i32
    %c0_i32_1 = arith.constant 0 : i32
    return %c0_i32, %c0_i32_0 : i32, i32
  }
  func.func @transform_11(%arg0: i32) -> (i32, i32) {
    %c0_i32 = arith.constant 0 : i32
    %c0_i32_0 = arith.constant 0 : i32
    %c0_i32_1 = arith.constant 0 : i32
    return %c0_i32, %c0_i32_0 : i32, i32
  }
}

module attributes {stable_mosaic.version = 11 : i64} {
  func.func @_mlp2_kernel(%arg0: i32, %arg1: memref<128x128xbf16, #tpu.memory_space<vmem>>, %arg2: memref<128x64xbf16, #tpu.memory_space<vmem>>, %arg3: memref<1x64xf32, #tpu.memory_space<vmem>>, %arg4: memref<1x64xf32, #tpu.memory_space<vmem>>, %arg5: memref<64x64xbf16, #tpu.memory_space<vmem>>, %arg6: memref<1x64xf32, #tpu.memory_space<vmem>>, %arg7: memref<1x64xf32, #tpu.memory_space<vmem>>, %arg8: memref<128x64xbf16, #tpu.memory_space<vmem>>) attributes {dimension_semantics = [#tpu.dimension_semantics<parallel>], iteration_bounds = array<i64: 1>, scalar_prefetch = 0 : i64, scratch_operands = 0 : i64, tpu.core_type = #tpu.core_type<tc>, window_params = [{transform_indices = @transform_0, window_bounds = array<i64: 128, 128>}, {pipeline_mode = #tpu.pipeline_mode<synchronous>, transform_indices = @transform_1, window_bounds = array<i64: 128, 64>}, {pipeline_mode = #tpu.pipeline_mode<synchronous>, transform_indices = @transform_2, window_bounds = array<i64: 1, 64>}, {pipeline_mode = #tpu.pipeline_mode<synchronous>, transform_indices = @transform_3, window_bounds = array<i64: 1, 64>}, {pipeline_mode = #tpu.pipeline_mode<synchronous>, transform_indices = @transform_4, window_bounds = array<i64: 64, 64>}, {pipeline_mode = #tpu.pipeline_mode<synchronous>, transform_indices = @transform_5, window_bounds = array<i64: 1, 64>}, {pipeline_mode = #tpu.pipeline_mode<synchronous>, transform_indices = @transform_6, window_bounds = array<i64: 1, 64>}, {transform_indices = @transform_7, window_bounds = array<i64: 128, 64>}]} {
    %c0 = arith.constant 0 : index
    %c0_0 = arith.constant 0 : index
    %0 = vector.load %arg1[%c0, %c0_0] : memref<128x128xbf16, #tpu.memory_space<vmem>>, vector<128x128xbf16>
    %c0_1 = arith.constant 0 : index
    %c0_2 = arith.constant 0 : index
    %1 = vector.load %arg2[%c0_1, %c0_2] : memref<128x64xbf16, #tpu.memory_space<vmem>>, vector<128x64xbf16>
    %cst = arith.constant dense<0.000000e+00> : vector<128x64xf32>
    %2 = tpu.matmul %0, %1, %cst {dimension_numbers = #tpu.dot_dimension_numbers<[1], [0], [0], [1], [0, 0, 1, 1], [], []>} : vector<128x128xbf16>, vector<128x64xbf16>, vector<128x64xf32> -> vector<128x64xf32>
    %c0_3 = arith.constant 0 : index
    %c0_4 = arith.constant 0 : index
    %3 = vector.load %arg3[%c0_3, %c0_4] : memref<1x64xf32, #tpu.memory_space<vmem>>, vector<1x64xf32>
    %4 = vector.broadcast %3 : vector<1x64xf32> to vector<128x64xf32>
    %5 = arith.mulf %2, %4 : vector<128x64xf32>
    %c0_5 = arith.constant 0 : index
    %c0_6 = arith.constant 0 : index
    %6 = vector.load %arg4[%c0_5, %c0_6] : memref<1x64xf32, #tpu.memory_space<vmem>>, vector<1x64xf32>
    %7 = vector.broadcast %6 : vector<1x64xf32> to vector<128x64xf32>
    %8 = arith.addf %5, %7 : vector<128x64xf32>
    %cst_7 = arith.constant 0.000000e+00 : f32
    %9 = vector.broadcast %cst_7 : f32 to vector<128x64xf32>
    %10 = arith.maximumf %8, %9 : vector<128x64xf32>
    %11 = arith.truncf %10 : vector<128x64xf32> to vector<128x64xbf16>
    %c0_8 = arith.constant 0 : index
    %c0_9 = arith.constant 0 : index
    %12 = vector.load %arg5[%c0_8, %c0_9] : memref<64x64xbf16, #tpu.memory_space<vmem>>, vector<64x64xbf16>
    %cst_10 = arith.constant dense<0.000000e+00> : vector<128x64xf32>
    %13 = tpu.matmul %11, %12, %cst_10 {dimension_numbers = #tpu.dot_dimension_numbers<[1], [0], [0], [1], [0, 0, 1, 1], [], []>} : vector<128x64xbf16>, vector<64x64xbf16>, vector<128x64xf32> -> vector<128x64xf32>
    %c0_11 = arith.constant 0 : index
    %c0_12 = arith.constant 0 : index
    %14 = vector.load %arg6[%c0_11, %c0_12] : memref<1x64xf32, #tpu.memory_space<vmem>>, vector<1x64xf32>
    %15 = vector.broadcast %14 : vector<1x64xf32> to vector<128x64xf32>
    %16 = arith.mulf %13, %15 : vector<128x64xf32>
    %c0_13 = arith.constant 0 : index
    %c0_14 = arith.constant 0 : index
    %17 = vector.load %arg7[%c0_13, %c0_14] : memref<1x64xf32, #tpu.memory_space<vmem>>, vector<1x64xf32>
    %18 = vector.broadcast %17 : vector<1x64xf32> to vector<128x64xf32>
    %19 = arith.addf %16, %18 : vector<128x64xf32>
    %cst_15 = arith.constant 0.000000e+00 : f32
    %20 = vector.broadcast %cst_15 : f32 to vector<128x64xf32>
    %21 = arith.maximumf %19, %20 : vector<128x64xf32>
    %22 = arith.truncf %21 : vector<128x64xf32> to vector<128x64xbf16>
    %c0_16 = arith.constant 0 : index
    %c0_17 = arith.constant 0 : index
    %23 = vector.load %arg8[%c0_16, %c0_17] : memref<128x64xbf16, #tpu.memory_space<vmem>>, vector<128x64xbf16>
    tpu.vector_store %arg8[%c0_16, %c0_17], %22 {strides = array<i32>} : memref<128x64xbf16, #tpu.memory_space<vmem>>, vector<128x64xbf16>,
    return
  }
  func.func @transform_0(%arg0: i32) -> (i32, i32) {
    %c0_i32 = arith.constant 0 : i32
    %c0_i32_0 = arith.constant 0 : i32
    return %arg0, %c0_i32 : i32, i32
  }
  func.func @transform_1(%arg0: i32) -> (i32, i32) {
    %c0_i32 = arith.constant 0 : i32
    %c0_i32_0 = arith.constant 0 : i32
    %c0_i32_1 = arith.constant 0 : i32
    return %c0_i32, %c0_i32_0 : i32, i32
  }
  func.func @transform_2(%arg0: i32) -> (i32, i32) {
    %c0_i32 = arith.constant 0 : i32
    %c0_i32_0 = arith.constant 0 : i32
    %c0_i32_1 = arith.constant 0 : i32
    return %c0_i32, %c0_i32_0 : i32, i32
  }
  func.func @transform_3(%arg0: i32) -> (i32, i32) {
    %c0_i32 = arith.constant 0 : i32
    %c0_i32_0 = arith.constant 0 : i32
    %c0_i32_1 = arith.constant 0 : i32
    return %c0_i32, %c0_i32_0 : i32, i32
  }
  func.func @transform_4(%arg0: i32) -> (i32, i32) {
    %c0_i32 = arith.constant 0 : i32
    %c0_i32_0 = arith.constant 0 : i32
    %c0_i32_1 = arith.constant 0 : i32
    return %c0_i32, %c0_i32_0 : i32, i32
  }
  func.func @transform_5(%arg0: i32) -> (i32, i32) {
    %c0_i32 = arith.constant 0 : i32
    %c0_i32_0 = arith.constant 0 : i32
    %c0_i32_1 = arith.constant 0 : i32
    return %c0_i32, %c0_i32_0 : i32, i32
  }
  func.func @transform_6(%arg0: i32) -> (i32, i32) {
    %c0_i32 = arith.constant 0 : i32
    %c0_i32_0 = arith.constant 0 : i32
    %c0_i32_1 = arith.constant 0 : i32
    return %c0_i32, %c0_i32_0 : i32, i32
  }
  func.func @transform_7(%arg0: i32) -> (i32, i32) {
    %c0_i32 = arith.constant 0 : i32
    %c0_i32_0 = arith.constant 0 : i32
    return %arg0, %c0_i32 : i32, i32
  }
}

module attributes {stable_mosaic.version = 11 : i64} {
  func.func @_attn_ocr_kernel(%arg0: i32, %arg1: i32, %arg2: memref<1x64x64xbf16, #tpu.memory_space<vmem>>, %arg3: memref<1x64x5xbf16, #tpu.memory_space<vmem>>, %arg4: memref<1x5x64xbf16, #tpu.memory_space<vmem>>, %arg5: memref<1x64x128xbf16, #tpu.memory_space<vmem>>, %arg6: memref<64x128xbf16, #tpu.memory_space<vmem>>, %arg7: memref<1x128xf32, #tpu.memory_space<vmem>>, %arg8: memref<1x128xf32, #tpu.memory_space<vmem>>, %arg9: memref<128x128xbf16, #tpu.memory_space<vmem>>, %arg10: memref<128x128xbf16, #tpu.memory_space<vmem>>, %arg11: memref<1x128xf32, #tpu.memory_space<vmem>>, %arg12: memref<1x128xf32, #tpu.memory_space<vmem>>, %arg13: memref<128x5xbf16, #tpu.memory_space<vmem>>, %arg14: memref<1x5xf32, #tpu.memory_space<vmem>>, %arg15: memref<1x64x5xf32, #tpu.memory_space<vmem>>) attributes {dimension_semantics = [#tpu.dimension_semantics<parallel>, #tpu.dimension_semantics<parallel>], iteration_bounds = array<i64: 2, 1>, scalar_prefetch = 0 : i64, scratch_operands = 0 : i64, tpu.core_type = #tpu.core_type<tc>, window_params = [{transform_indices = @transform_0, window_bounds = array<i64: 1, 64, 64>}, {transform_indices = @transform_1, window_bounds = array<i64: 1, 64, 5>}, {transform_indices = @transform_2, window_bounds = array<i64: 1, 5, 64>}, {transform_indices = @transform_3, window_bounds = array<i64: 1, 64, 128>}, {pipeline_mode = #tpu.pipeline_mode<synchronous>, transform_indices = @transform_4, window_bounds = array<i64: 64, 128>}, {pipeline_mode = #tpu.pipeline_mode<synchronous>, transform_indices = @transform_5, window_bounds = array<i64: 1, 128>}, {pipeline_mode = #tpu.pipeline_mode<synchronous>, transform_indices = @transform_6, window_bounds = array<i64: 1, 128>}, {pipeline_mode = #tpu.pipeline_mode<synchronous>, transform_indices = @transform_7, window_bounds = array<i64: 128, 128>}, {pipeline_mode = #tpu.pipeline_mode<synchronous>, transform_indices = @transform_8, window_bounds = array<i64: 128, 128>}, {pipeline_mode = #tpu.pipeline_mode<synchronous>, transform_indices = @transform_9, window_bounds = array<i64: 1, 128>}, {pipeline_mode = #tpu.pipeline_mode<synchronous>, transform_indices = @transform_10, window_bounds = array<i64: 1, 128>}, {pipeline_mode = #tpu.pipeline_mode<synchronous>, transform_indices = @transform_11, window_bounds = array<i64: 128, 5>}, {pipeline_mode = #tpu.pipeline_mode<synchronous>, transform_indices = @transform_12, window_bounds = array<i64: 1, 5>}, {transform_indices = @transform_13, window_bounds = array<i64: 1, 64, 5>}]} {
    %c0 = arith.constant 0 : index
    %c0_0 = arith.constant 0 : index
    %c0_1 = arith.constant 0 : index
    %0 = vector.load %arg2[%c0, %c0_0, %c0_1] : memref<1x64x64xbf16, #tpu.memory_space<vmem>>, vector<1x64x64xbf16>
    %1 = vector.shape_cast %0 : vector<1x64x64xbf16> to vector<64x64xbf16>
    %c0_2 = arith.constant 0 : index
    %c0_3 = arith.constant 0 : index
    %c0_4 = arith.constant 0 : index
    %2 = vector.load %arg3[%c0_2, %c0_3, %c0_4] : memref<1x64x5xbf16, #tpu.memory_space<vmem>>, vector<1x64x5xbf16>
    %3 = vector.shape_cast %2 : vector<1x64x5xbf16> to vector<64x5xbf16>
    %c0_5 = arith.constant 0 : index
    %c0_6 = arith.constant 0 : index
    %c0_7 = arith.constant 0 : index
    %4 = vector.load %arg4[%c0_5, %c0_6, %c0_7] : memref<1x5x64xbf16, #tpu.memory_space<vmem>>, vector<1x5x64xbf16>
    %5 = vector.shape_cast %4 : vector<1x5x64xbf16> to vector<5x64xbf16>
    %cst = arith.constant dense<0.000000e+00> : vector<64x5xf32>
    %6 = tpu.matmul %1, %3, %cst {dimension_numbers = #tpu.dot_dimension_numbers<[1], [0], [0], [1], [0, 0, 1, 1], [], []>} : vector<64x64xbf16>, vector<64x5xbf16>, vector<64x5xf32> -> vector<64x5xf32>
    %cst_8 = arith.constant 1.250000e-01 : f32
    %7 = vector.broadcast %cst_8 : f32 to vector<64x5xf32>
    %8 = arith.mulf %6, %7 : vector<64x5xf32>
    %cst_9 = arith.constant dense<0xFF800000> : vector<64xf32>
    %9 = vector.multi_reduction <maximumf>, %8, %cst_9 [1] : vector<64x5xf32> to vector<64xf32>
    %10 = vector.shape_cast %9 : vector<64xf32> to vector<64x1xf32>
    %11 = vector.broadcast %10 : vector<64x1xf32> to vector<64x5xf32>
    %12 = arith.subf %8, %11 : vector<64x5xf32>
    %13 = math.exp %12 : vector<64x5xf32>
    %cst_10 = arith.constant dense<0.000000e+00> : vector<64xf32>
    %14 = vector.multi_reduction <add>, %13, %cst_10 [1] : vector<64x5xf32> to vector<64xf32>
    %15 = vector.shape_cast %14 : vector<64xf32> to vector<64x1xf32>
    %16 = tpu.reciprocal %15 {approx = true} : vector<64x1xf32> -> vector<64x1xf32>
    %17 = vector.broadcast %16 : vector<64x1xf32> to vector<64x5xf32>
    %18 = arith.mulf %13, %17 : vector<64x5xf32>
    %19 = arith.truncf %18 : vector<64x5xf32> to vector<64x5xbf16>
    %cst_11 = arith.constant dense<0.000000e+00> : vector<64x64xf32>
    %20 = tpu.matmul %19, %5, %cst_11 {dimension_numbers = #tpu.dot_dimension_numbers<[1], [0], [0], [1], [0, 0, 1, 1], [], []>} : vector<64x5xbf16>, vector<5x64xbf16>, vector<64x64xf32> -> vector<64x64xf32>
    %21 = arith.truncf %20 : vector<64x64xf32> to vector<64x64xbf16>
    %c0_12 = arith.constant 0 : index
    %c0_13 = arith.constant 0 : index
    %22 = vector.load %arg6[%c0_12, %c0_13] : memref<64x128xbf16, #tpu.memory_space<vmem>>, vector<64x128xbf16>
    %cst_14 = arith.constant dense<0.000000e+00> : vector<64x128xf32>
    %23 = tpu.matmul %21, %22, %cst_14 {dimension_numbers = #tpu.dot_dimension_numbers<[1], [0], [0], [1], [0, 0, 1, 1], [], []>} : vector<64x64xbf16>, vector<64x128xbf16>, vector<64x128xf32> -> vector<64x128xf32>
    %c0_15 = arith.constant 0 : index
    %c0_16 = arith.constant 0 : index
    %24 = vector.load %arg7[%c0_15, %c0_16] : memref<1x128xf32, #tpu.memory_space<vmem>>, vector<1x128xf32>
    %25 = vector.broadcast %24 : vector<1x128xf32> to vector<64x128xf32>
    %26 = arith.mulf %23, %25 : vector<64x128xf32>
    %c0_17 = arith.constant 0 : index
    %c0_18 = arith.constant 0 : index
    %27 = vector.load %arg8[%c0_17, %c0_18] : memref<1x128xf32, #tpu.memory_space<vmem>>, vector<1x128xf32>
    %28 = vector.broadcast %27 : vector<1x128xf32> to vector<64x128xf32>
    %29 = arith.addf %26, %28 : vector<64x128xf32>
    %cst_19 = arith.constant 0.000000e+00 : f32
    %30 = vector.broadcast %cst_19 : f32 to vector<64x128xf32>
    %31 = arith.maximumf %29, %30 : vector<64x128xf32>
    %32 = arith.truncf %31 : vector<64x128xf32> to vector<64x128xbf16>
    %c0_20 = arith.constant 0 : index
    %c0_21 = arith.constant 0 : index
    %33 = vector.load %arg9[%c0_20, %c0_21] : memref<128x128xbf16, #tpu.memory_space<vmem>>, vector<128x128xbf16>
    %cst_22 = arith.constant dense<0.000000e+00> : vector<64x128xf32>
    %34 = tpu.matmul %32, %33, %cst_22 {dimension_numbers = #tpu.dot_dimension_numbers<[1], [0], [0], [1], [0, 0, 1, 1], [], []>} : vector<64x128xbf16>, vector<128x128xbf16>, vector<64x128xf32> -> vector<64x128xf32>
    %c0_23 = arith.constant 0 : index
    %c0_24 = arith.constant 0 : index
    %c0_25 = arith.constant 0 : index
    %35 = vector.load %arg5[%c0_23, %c0_24, %c0_25] : memref<1x64x128xbf16, #tpu.memory_space<vmem>>, vector<1x64x128xbf16>
    %36 = vector.shape_cast %35 : vector<1x64x128xbf16> to vector<64x128xbf16>
    %c0_26 = arith.constant 0 : index
    %c0_27 = arith.constant 0 : index
    %37 = vector.load %arg10[%c0_26, %c0_27] : memref<128x128xbf16, #tpu.memory_space<vmem>>, vector<128x128xbf16>
    %cst_28 = arith.constant dense<0.000000e+00> : vector<64x128xf32>
    %38 = tpu.matmul %36, %37, %cst_28 {dimension_numbers = #tpu.dot_dimension_numbers<[1], [0], [0], [1], [0, 0, 1, 1], [], []>} : vector<64x128xbf16>, vector<128x128xbf16>, vector<64x128xf32> -> vector<64x128xf32>
    %39 = arith.addf %34, %38 : vector<64x128xf32>
    %c0_29 = arith.constant 0 : index
    %c0_30 = arith.constant 0 : index
    %40 = vector.load %arg11[%c0_29, %c0_30] : memref<1x128xf32, #tpu.memory_space<vmem>>, vector<1x128xf32>
    %41 = vector.broadcast %40 : vector<1x128xf32> to vector<64x128xf32>
    %42 = arith.mulf %39, %41 : vector<64x128xf32>
    %c0_31 = arith.constant 0 : index
    %c0_32 = arith.constant 0 : index
    %43 = vector.load %arg12[%c0_31, %c0_32] : memref<1x128xf32, #tpu.memory_space<vmem>>, vector<1x128xf32>
    %44 = vector.broadcast %43 : vector<1x128xf32> to vector<64x128xf32>
    %45 = arith.addf %42, %44 : vector<64x128xf32>
    %cst_33 = arith.constant 0.000000e+00 : f32
    %46 = vector.broadcast %cst_33 : f32 to vector<64x128xf32>
    %47 = arith.maximumf %45, %46 : vector<64x128xf32>
    %48 = arith.truncf %47 : vector<64x128xf32> to vector<64x128xbf16>
    %c0_34 = arith.constant 0 : index
    %c0_35 = arith.constant 0 : index
    %49 = vector.load %arg13[%c0_34, %c0_35] : memref<128x5xbf16, #tpu.memory_space<vmem>>, vector<128x5xbf16>
    %cst_36 = arith.constant dense<0.000000e+00> : vector<64x5xf32>
    %50 = tpu.matmul %48, %49, %cst_36 {dimension_numbers = #tpu.dot_dimension_numbers<[1], [0], [0], [1], [0, 0, 1, 1], [], []>} : vector<64x128xbf16>, vector<128x5xbf16>, vector<64x5xf32> -> vector<64x5xf32>
    %c0_37 = arith.constant 0 : index
    %c0_38 = arith.constant 0 : index
    %51 = vector.load %arg14[%c0_37, %c0_38] : memref<1x5xf32, #tpu.memory_space<vmem>>, vector<1x5xf32>
    %52 = vector.broadcast %51 : vector<1x5xf32> to vector<64x5xf32>
    %53 = arith.addf %50, %52 : vector<64x5xf32>
    %c0_39 = arith.constant 0 : index
    %c0_40 = arith.constant 0 : index
    %c0_41 = arith.constant 0 : index
    %54 = vector.load %arg15[%c0_39, %c0_40, %c0_41] : memref<1x64x5xf32, #tpu.memory_space<vmem>>, vector<1x64x5xf32>
    %55 = vector.shape_cast %54 : vector<1x64x5xf32> to vector<64x5xf32>
    %56 = vector.shape_cast %53 : vector<64x5xf32> to vector<1x64x5xf32>
    tpu.vector_store %arg15[%c0_39, %c0_40, %c0_41], %56 {strides = array<i32>} : memref<1x64x5xf32, #tpu.memory_space<vmem>>, vector<1x64x5xf32>,
    return
  }
  func.func @transform_0(%arg0: i32, %arg1: i32) -> (i32, i32, i32) {
    %c0_i32 = arith.constant 0 : i32
    %c0_i32_0 = arith.constant 0 : i32
    return %arg0, %arg1, %c0_i32 : i32, i32, i32
  }
  func.func @transform_1(%arg0: i32, %arg1: i32) -> (i32, i32, i32) {
    %c0_i32 = arith.constant 0 : i32
    %c0_i32_0 = arith.constant 0 : i32
    %c0_i32_1 = arith.constant 0 : i32
    return %arg0, %c0_i32, %c0_i32_0 : i32, i32, i32
  }
  func.func @transform_2(%arg0: i32, %arg1: i32) -> (i32, i32, i32) {
    %c0_i32 = arith.constant 0 : i32
    %c0_i32_0 = arith.constant 0 : i32
    %c0_i32_1 = arith.constant 0 : i32
    return %arg0, %c0_i32, %c0_i32_0 : i32, i32, i32
  }
  func.func @transform_3(%arg0: i32, %arg1: i32) -> (i32, i32, i32) {
    %c0_i32 = arith.constant 0 : i32
    %c0_i32_0 = arith.constant 0 : i32
    return %arg0, %arg1, %c0_i32 : i32, i32, i32
  }
  func.func @transform_4(%arg0: i32, %arg1: i32) -> (i32, i32) {
    %c0_i32 = arith.constant 0 : i32
    %c0_i32_0 = arith.constant 0 : i32
    %c0_i32_1 = arith.constant 0 : i32
    return %c0_i32, %c0_i32_0 : i32, i32
  }
  func.func @transform_5(%arg0: i32, %arg1: i32) -> (i32, i32) {
    %c0_i32 = arith.constant 0 : i32
    %c0_i32_0 = arith.constant 0 : i32
    %c0_i32_1 = arith.constant 0 : i32
    return %c0_i32, %c0_i32_0 : i32, i32
  }
  func.func @transform_6(%arg0: i32, %arg1: i32) -> (i32, i32) {
    %c0_i32 = arith.constant 0 : i32
    %c0_i32_0 = arith.constant 0 : i32
    %c0_i32_1 = arith.constant 0 : i32
    return %c0_i32, %c0_i32_0 : i32, i32
  }
  func.func @transform_7(%arg0: i32, %arg1: i32) -> (i32, i32) {
    %c0_i32 = arith.constant 0 : i32
    %c0_i32_0 = arith.constant 0 : i32
    %c0_i32_1 = arith.constant 0 : i32
    return %c0_i32, %c0_i32_0 : i32, i32
  }
  func.func @transform_8(%arg0: i32, %arg1: i32) -> (i32, i32) {
    %c0_i32 = arith.constant 0 : i32
    %c0_i32_0 = arith.constant 0 : i32
    %c0_i32_1 = arith.constant 0 : i32
    return %c0_i32, %c0_i32_0 : i32, i32
  }
  func.func @transform_9(%arg0: i32, %arg1: i32) -> (i32, i32) {
    %c0_i32 = arith.constant 0 : i32
    %c0_i32_0 = arith.constant 0 : i32
    %c0_i32_1 = arith.constant 0 : i32
    return %c0_i32, %c0_i32_0 : i32, i32
  }
  func.func @transform_10(%arg0: i32, %arg1: i32) -> (i32, i32) {
    %c0_i32 = arith.constant 0 : i32
    %c0_i32_0 = arith.constant 0 : i32
    %c0_i32_1 = arith.constant 0 : i32
    return %c0_i32, %c0_i32_0 : i32, i32
  }
  func.func @transform_11(%arg0: i32, %arg1: i32) -> (i32, i32) {
    %c0_i32 = arith.constant 0 : i32
    %c0_i32_0 = arith.constant 0 : i32
    %c0_i32_1 = arith.constant 0 : i32
    return %c0_i32, %c0_i32_0 : i32, i32
  }
  func.func @transform_12(%arg0: i32, %arg1: i32) -> (i32, i32) {
    %c0_i32 = arith.constant 0 : i32
    %c0_i32_0 = arith.constant 0 : i32
    %c0_i32_1 = arith.constant 0 : i32
    return %c0_i32, %c0_i32_0 : i32, i32
  }
  func.func @transform_13(%arg0: i32, %arg1: i32) -> (i32, i32, i32) {
    %c0_i32 = arith.constant 0 : i32
    %c0_i32_0 = arith.constant 0 : i32
    return %arg0, %arg1, %c0_i32 : i32, i32, i32
  }
}

</mosaic_0001>

<bundles_post_ra>
// kernel: ocrnet_forward.7
= control target key start
LH: loop header
LB: loop body
LE: loop exit
PB: predicated region body
PF: predicated region fallthrough
CT: control target
= control target key end

     0   :  { %vm22_vm0 = vcmask 785408   ;;  %v692_v0 = vmov 0   ;;  %v693_v2 = vmov 0.0   ;;  %vm239_vm1 = vcmask 523264   ;;  %s973_s1 = inlined_call_operand.vmem [shape: bf16[192,96], index: 1, kind: input, shape index: {}]   ;;  %s974_s0 = inlined_call_operand.vmem [shape: bf16[128,192], index: 0, kind: input, shape index: {}]   ;;  %s975_s2 = inlined_call_operand.vmem [shape: f32[1,96], index: 2, kind: input, shape index: {}]   ;;  %s976_s3 = inlined_call_operand.vmem [shape: f32[1,96], index: 3, kind: input, shape index: {}]   ;;  %s977_s4 = inlined_call_operand.vmem [shape: bf16[128,96], index: 4, kind: output, shape index: {}]  }
   0x1   :  { %264 = vmatprep.subr.bf16.mxu0 %v692_v0  ;;  %630 = vmatprep.subr.bf16.mxu1 %v692_v0  ;;  %v656_v1 = vld [vmem:[%s973_s1] sm:$0xff]   ;;  %23 = vst.msk [vmem:[#allocation2] sm:$0xff] %vm22_vm0, %v693_v2  ;;  %24 = vst.msk [vmem:[#allocation2 + $0x8] sm:$0xff] %vm22_vm0, %v693_v2  ;;  %v657_v3 = vld [vmem:[%s973_s1 + $0x8] sm:$0xff]   ;;  %vm539_vm2 = vcmask 781312  }
   0x2   :  { %25 = vst.msk [vmem:[#allocation2 + $0x10] sm:$0xff] %vm22_vm0, %v693_v2  ;;  %26 = vst.msk [vmem:[#allocation2 + $0x18] sm:$0xff] %vm22_vm0, %v693_v2  ;;  %265 = vmatpush1.bf16.msra.mxu0 %v656_v1  ;;  %642 = vmatpush1.bf16.msra.mxu1 %v656_v1  ;;  %v658_v4 = vld [vmem:[%s973_s1 + $0x10] sm:$0xff]   ;;  %v659_v5 = vld [vmem:[%s973_s1 + $0x18] sm:$0xff]  }
   0x3   :  { %27 = vst.msk [vmem:[#allocation2 + $0x20] sm:$0xff] %vm22_vm0, %v693_v2  ;;  %28 = vst.msk [vmem:[#allocation2 + $0x28] sm:$0xff] %vm22_vm0, %v693_v2  ;;  %266 = vmatprep.subr.bf16.mxu0 %v692_v0  ;;  %631 = vmatprep.subr.bf16.mxu1 %v692_v0  ;;  %v670_v6 = vld [vmem:[%s974_s0 + $0x4] ss:$8 sps:$4 sm:$0xff]   ;;  %v662_v10 = vld [vmem:[%s973_s1 + $0x30] sm:$0xff]  }
   0x4   :  { %29 = vst.msk [vmem:[#allocation2 + $0x30] sm:$0xff] %vm22_vm0, %v693_v2  ;;  %30 = vst.msk [vmem:[#allocation2 + $0x38] sm:$0xff] %vm22_vm0, %v693_v2  ;;  %v660_v7 = vld [vmem:[%s973_s1 + $0x20] sm:$0xff]   ;;  %588 = vmatprep.mubr.msk.bf16.mxu0 %vm239_vm1, %v670_v6  ;;  %v661_v9 = vld [vmem:[%s973_s1 + $0x28] sm:$0xff]  }
   0x5   :  { %31 = vst.msk [vmem:[#allocation2 + $0x40] sm:$0xff] %vm22_vm0, %v693_v2  ;;  %32 = vst.msk [vmem:[#allocation2 + $0x48] sm:$0xff] %vm22_vm0, %v693_v2  ;;  %v673_v8 = vld [vmem:[%s974_s0 + $0x44] ss:$8 sps:$4 sm:$0xff]   ;;  %v663_v11 = vld [vmem:[%s973_s1 + $0x38] sm:$0xff]  }
   0x6   :  { %33 = vst.msk [vmem:[#allocation2 + $0x50] sm:$0xff] %vm22_vm0, %v693_v2  ;;  %34 = vst.msk [vmem:[#allocation2 + $0x58] sm:$0xff] %vm22_vm0, %v693_v2  ;;  %267 = vmatpush1.bf16.msra.mxu0 %v657_v3  ;;  %643 = vmatpush1.bf16.msra.mxu1 %v657_v3  ;;  %v664_v12 = vld [vmem:[%s973_s1 + $0x40] sm:$0xff]   ;;  %v665_v13 = vld [vmem:[%s973_s1 + $0x48] sm:$0xff]  }
   0x7   :  { %35 = vst.msk [vmem:[#allocation2 + $0x60] sm:$0xff] %vm22_vm0, %v693_v2  ;;  %36 = vst.msk [vmem:[#allocation2 + $0x68] sm:$0xff] %vm22_vm0, %v693_v2  ;;  %268 = vmatprep.subr.bf16.mxu0 %v692_v0  ;;  %632 = vmatprep.subr.bf16.mxu1 %v692_v0  ;;  %v666_v14 = vld [vmem:[%s973_s1 + $0x50] sm:$0xff]   ;;  %v667_v15 = vld [vmem:[%s973_s1 + $0x58] sm:$0xff]  }
   0x8   :  { %37 = vst.msk [vmem:[#allocation2 + $0x70] sm:$0xff] %vm22_vm0, %v693_v2  ;;  %38 = vst.msk [vmem:[#allocation2 + $0x78] sm:$0xff] %vm22_vm0, %v693_v2  ;;  %592 = vmatprep.mubr.msk.bf16.mxu1 %vm239_vm1, %v673_v8  ;;  %v668_v16 = vld [vmem:[%s974_s0] ss:$8 sps:$4 sm:$0xff]   ;;  %v674_v18 = vld [vmem:[%s974_s0 + $0x14] ss:$8 sps:$4 sm:$0xff]  }
   0x9   :  { %v671_v17 = vld [vmem:[%s974_s0 + $0x40] ss:$8 sps:$4 sm:$0xff]   ;;  %v676_v19 = vld [vmem:[%s974_s0 + $0x54] ss:$8 sps:$4 sm:$0xff]   ;;  %v678_v20 = vld [vmem:[%s974_s0 + $0x10] ss:$8 sps:$4 sm:$0xff]  }
   0xa   :  { %269 = vmatpush1.bf16.msra.mxu0 %v658_v4  ;;  %644 = vmatpush1.bf16.msra.mxu1 %v658_v4  ;;  %v679_v21 = vld [vmem:[%s974_s0 + $0x50] ss:$8 sps:$4 sm:$0xff]   ;;  %v680_v22 = vld [vmem:[%s974_s0 + $0x24] ss:$8 sps:$4 sm:$0xff]   ;;  %v684_v24 = vld [vmem:[%s974_s0 + $0x20] ss:$8 sps:$4 sm:$0xff]  }
   0xb   :  { %270 = vmatprep.subr.bf16.mxu0 %v692_v0  ;;  %633 = vmatprep.subr.bf16.mxu1 %v692_v0  ;;  %v682_v23 = vld [vmem:[%s974_s0 + $0x64] ss:$8 sps:$4 sm:$0xff]   ;;  %v685_v25 = vld [vmem:[%s974_s0 + $0x60] ss:$8 sps:$4 sm:$0xff]   ;;  %v686_v26 = vld [vmem:[%s974_s0 + $0x34] ss:$8 sps:$4 sm:$0xff]  }
   0xc   :  { %v688_v27 = vld [vmem:[%s974_s0 + $0x74] ss:$8 sps:$4 sm:$0xff]   ;;  %v690_v28 = vld [vmem:[%s974_s0 + $0x30] ss:$8 sps:$4 sm:$0xff]   ;;  %v39_v30 = vld [vmem:[#allocation2] sm:$0xff] }
   0xd   :  { %v691_v29 = vld [vmem:[%s974_s0 + $0x70] ss:$8 sps:$4 sm:$0xff]   ;;  %v47_v31 = vld [vmem:[#allocation2 + $0x40] sm:$0xff]  ;;  %v40_v34 = vld [vmem:[#allocation2 + $0x8] sm:$0xff] }
   0xe   :  { %271 = vmatpush1.bf16.msra.mxu0 %v659_v5  ;;  %645 = vmatpush1.bf16.msra.mxu1 %v659_v5  ;;  %v48_v35 = vld [vmem:[#allocation2 + $0x48] sm:$0xff]  ;;  %v41_v46 = vld [vmem:[#allocation2 + $0x10] sm:$0xff]  ;;  %v858_v48 = vld [vmem:[%s975_s2] ss:$0 sm:$0xff] }
   0xf   :  { %272 = vmatprep.subr.bf16.mxu0 %v692_v0  ;;  %634 = vmatprep.subr.bf16.mxu1 %v692_v0  ;;  %v49_v47 = vld [vmem:[#allocation2 + $0x50] sm:$0xff]  ;;  %v42_v51 = vld [vmem:[#allocation2 + $0x18] sm:$0xff]  ;;  %v863_v58 = vld [vmem:[%s976_s3] ss:$0 sm:$0xff] }
  0x10   :  { %v50_v52 = vld [vmem:[#allocation2 + $0x58] sm:$0xff] }
  0x12   :  { %273 = vmatpush1.bf16.msra.mxu0 %v660_v7  ;;  %646 = vmatpush1.bf16.msra.mxu1 %v660_v7 }
  0x13   :  { %274 = vmatprep.subr.bf16.mxu0 %v692_v0  ;;  %635 = vmatprep.subr.bf16.mxu1 %v692_v0 }
  0x16   :  { %275 = vmatpush1.bf16.msra.mxu0 %v661_v9  ;;  %647 = vmatpush1.bf16.msra.mxu1 %v661_v9 }
  0x17   :  { %276 = vmatprep.subr.bf16.mxu0 %v692_v0  ;;  %636 = vmatprep.subr.bf16.mxu1 %v692_v0 }
  0x1a   :  { %277 = vmatpush1.bf16.msra.mxu0 %v662_v10  ;;  %648 = vmatpush1.bf16.msra.mxu1 %v662_v10 }
  0x1b   :  { %278 = vmatprep.subr.bf16.mxu0 %v692_v0  ;;  %637 = vmatprep.subr.bf16.mxu1 %v692_v0 }
  0x1e   :  { %279 = vmatpush1.bf16.msra.mxu0 %v663_v11  ;;  %649 = vmatpush1.bf16.msra.mxu1 %v663_v11 }
  0x1f   :  { %280 = vmatprep.subr.bf16.mxu0 %v692_v0  ;;  %638 = vmatprep.subr.bf16.mxu1 %v692_v0 }
  0x22   :  { %281 = vmatpush1.bf16.msra.mxu0 %v664_v12  ;;  %650 = vmatpush1.bf16.msra.mxu1 %v664_v12 }
  0x23   :  { %282 = vmatprep.subr.bf16.mxu0 %v692_v0  ;;  %639 = vmatprep.subr.bf16.mxu1 %v692_v0 }
  0x26   :  { %283 = vmatpush1.bf16.msra.mxu0 %v665_v13  ;;  %651 = vmatpush1.bf16.msra.mxu1 %v665_v13 }
  0x27   :  { %284 = vmatprep.subr.bf16.mxu0 %v692_v0  ;;  %640 = vmatprep.subr.bf16.mxu1 %v692_v0 }
  0x2a   :  { %285 = vmatpush1.bf16.msra.mxu0 %v666_v14  ;;  %652 = vmatpush1.bf16.msra.mxu1 %v666_v14  ;;  %v43_v14 = vld [vmem:[#allocation2 + $0x20] sm:$0xff] }
  0x2b   :  { %286 = vmatprep.subr.bf16.mxu0 %v692_v0  ;;  %641 = vmatprep.subr.bf16.mxu1 %v692_v0 }
  0x2e   :  { %287 = vmatpush1.bf16.msra.mxu0 %v667_v15  ;;  %653 = vmatpush1.bf16.msra.mxu1 %v667_v15  ;;  %v51_v15 = vld [vmem:[#allocation2 + $0x60] sm:$0xff] }
  0x31   :  { %297 = vmatmul.mubr.bf16.vlgmr.msra.gmra.mrb[0].mxu0 %v668_v16  ;;  %329 = vmatmul.mubr.bf16.vlgmr.msra.gmra.mrb[0].mxu1 %v671_v17 }
  0x32   :  { %589 = vmatprep.mubr.msk.bf16.mxu0 %vm239_vm1, %v674_v18  ;;  %593 = vmatprep.mubr.msk.bf16.mxu1 %vm239_vm1, %v676_v19 }
  0x39   :  { %305 = vmatmul.mubr.bf16.gmra.mrb[4].mxu0 %v678_v20  ;;  %337 = vmatmul.mubr.bf16.gmra.mrb[4].mxu1 %v679_v21 }
  0x3a   :  { %590 = vmatprep.mubr.msk.bf16.mxu0 %vm239_vm1, %v680_v22  ;;  %594 = vmatprep.mubr.msk.bf16.mxu1 %vm239_vm1, %v682_v23 }
  0x41   :  { %313 = vmatmul.mubr.bf16.gmra.mrb[8].mxu0 %v684_v24  ;;  %345 = vmatmul.mubr.bf16.gmra.mrb[8].mxu1 %v685_v25  ;;  %v44_v24 = vld [vmem:[#allocation2 + $0x28] sm:$0xff] }
  0x42   :  { %591 = vmatprep.mubr.msk.bf16.mxu0 %vm239_vm1, %v686_v26  ;;  %595 = vmatprep.mubr.msk.bf16.mxu1 %vm239_vm1, %v688_v27  ;;  %v52_v25 = vld [vmem:[#allocation2 + $0x68] sm:$0xff] }
  0x49   :  { %321 = vmatmul.mubr.bf16.gmra.mrb[12].mxu0 %v690_v28  ;;  %353 = vmatmul.mubr.bf16.gmra.mrb[12].mxu1 %v691_v29 }
 0x104   :  { %v298_v32 = vpop.f32.mrb[0].mxu0  ;;  %v330_v33 = vpop.f32.mrb[0].mxu1 }
 0x105   :  { %v361_v36 = vadd.f32 %v298_v32, %v39_v30  ;;  %v369_v37 = vadd.f32 %v330_v33, %v47_v31  ;;  %v300_v38 = vpop.f32.mrb[1].mxu0  ;;  %v332_v39 = vpop.f32.mrb[1].mxu1 }
 0x106   :  { %v301_v40 = vpop.f32.mrb[2].mxu0  ;;  %v333_v41 = vpop.f32.mrb[2].mxu1 }
 0x107   :  { %378 = vst.msk [vmem:[#allocation2] sm:$0xff] %vm22_vm0, %v361_v36  ;;  %386 = vst.msk [vmem:[#allocation2 + $0x40] sm:$0xff] %vm22_vm0, %v369_v37  ;;  %v362_v42 = vadd.f32 %v301_v40, %v40_v34  ;;  %v370_v43 = vadd.f32 %v333_v41, %v48_v35  ;;  %v303_v44 = vpop.f32.mrb[3].mxu0  ;;  %v335_v45 = vpop.f32.mrb[3].mxu1 }
 0x109   :  { %379 = vst.msk [vmem:[#allocation2 + $0x8] sm:$0xff] %vm22_vm0, %v362_v42  ;;  %387 = vst.msk [vmem:[#allocation2 + $0x48] sm:$0xff] %vm22_vm0, %v370_v43 }
 0x10c   :  { %v306_v49 = vpop.f32.mrb[4].mxu0  ;;  %v338_v50 = vpop.f32.mrb[4].mxu1 }
 0x10d   :  { %v363_v53 = vadd.f32 %v306_v49, %v41_v46  ;;  %v371_v54 = vadd.f32 %v338_v50, %v49_v47  ;;  %v308_v55 = vpop.f32.mrb[5].mxu0  ;;  %v340_v56 = vpop.f32.mrb[5].mxu1 }
 0x10e   :  { %v397_v57 = vld [vmem:[#allocation2] sm:$0xff]  ;;  %v309_v60 = vpop.f32.mrb[6].mxu0  ;;  %v341_v61 = vpop.f32.mrb[6].mxu1  ;;  %v46_v55 = vld [vmem:[#allocation2 + $0x38] sm:$0xff] }
 0x10f   :  { %v405_v59 = vld [vmem:[#allocation2 + $0x40] sm:$0xff]  ;;  %v420_v62 = vmul.f32 %v858_v48, %v397_v57  ;;  %380 = vst.msk [vmem:[#allocation2 + $0x10] sm:$0xff] %vm22_vm0, %v363_v53  ;;  %388 = vst.msk [vmem:[#allocation2 + $0x50] sm:$0xff] %vm22_vm0, %v371_v54  ;;  %v364_v0 = vadd.f32 %v309_v60, %v42_v51  ;;  %v372_v1 = vadd.f32 %v341_v61, %v50_v52  ;;  %v311_v2 = vpop.f32.mrb[7].mxu0  ;;  %v343_v3 = vpop.f32.mrb[7].mxu1  ;;  %v45_v51 = vld [vmem:[#allocation2 + $0x30] sm:$0xff] }
 0x110   :  { %v428_v63 = vmul.f32 %v858_v48, %v405_v59  ;;  %v398_v4 = vld [vmem:[#allocation2 + $0x8] sm:$0xff]  ;;  %v53_v52 = vld [vmem:[#allocation2 + $0x70] sm:$0xff]  ;;  %v54_v56 = vld [vmem:[#allocation2 + $0x78] sm:$0xff] }
 0x111   :  { %v406_v5 = vld [vmem:[#allocation2 + $0x48] sm:$0xff]  ;;  %v443_v6 = vadd.f32 %v863_v58, %v420_v62  ;;  %v421_v8 = vmul.f32 %v858_v48, %v398_v4  ;;  %381 = vst.msk [vmem:[#allocation2 + $0x18] sm:$0xff] %vm22_vm0, %v364_v0  ;;  %389 = vst.msk [vmem:[#allocation2 + $0x58] sm:$0xff] %vm22_vm0, %v372_v1 }
 0x112   :  { %v451_v7 = vadd.f32 %v863_v58, %v428_v63  ;;  %v429_v9 = vmul.f32 %v858_v48, %v406_v5 }
 0x113   :  { %v459_v10 = vmax.f32 %v443_v6, 0.0  ;;  %v444_v12 = vadd.f32 %v863_v58, %v421_v8 }
 0x114   :  { %v467_v11 = vmax.f32 %v451_v7, 0.0  ;;  %v452_v13 = vadd.f32 %v863_v58, %v429_v9  ;;  %v314_v16 = vpop.f32.mrb[8].mxu0  ;;  %v346_v17 = vpop.f32.mrb[8].mxu1 }
 0x115   :  { %v614_v18 = vpack.c.bf16 %v459_v10, %v459_v10  ;;  %v460_v20 = vmax.f32 %v444_v12, 0.0  ;;  %v316_v22 = vpop.f32.mrb[9].mxu0  ;;  %v348_v23 = vpop.f32.mrb[9].mxu1  ;;  %v365_v28 = vadd.f32 %v314_v16, %v43_v14  ;;  %v373_v29 = vadd.f32 %v346_v17, %v51_v15 }
 0x116   :  { %v622_v19 = vpack.c.bf16 %v467_v11, %v467_v11  ;;  %v468_v21 = vmax.f32 %v452_v13, 0.0  ;;  %v399_v26 = vld [vmem:[#allocation2 + $0x10] sm:$0xff]  ;;  %v317_v30 = vpop.f32.mrb[10].mxu0  ;;  %v349_v31 = vpop.f32.mrb[10].mxu1 }
 0x117   :  { %v407_v27 = vld [vmem:[#allocation2 + $0x50] sm:$0xff]  ;;  %540 = vst.msk [vmem:[%s977_s4] sm:$0xf] %vm539_vm2, %v614_v18  ;;  %v615_v32 = vpack.c.bf16 %v460_v20, %v460_v20  ;;  %v422_v34 = vmul.f32 %v858_v48, %v399_v26  ;;  %v319_v36 = vpop.f32.mrb[11].mxu0  ;;  %v351_v37 = vpop.f32.mrb[11].mxu1  ;;  %v366_v40 = vadd.f32 %v317_v30, %v44_v24  ;;  %v374_v41 = vadd.f32 %v349_v31, %v52_v25 }
 0x118   :  { %548 = vst.msk [vmem:[%s977_s4 + $0x20] sm:$0xf] %vm539_vm2, %v622_v19  ;;  %v623_v33 = vpack.c.bf16 %v468_v21, %v468_v21  ;;  %v430_v35 = vmul.f32 %v858_v48, %v407_v27  ;;  %v400_v38 = vld [vmem:[#allocation2 + $0x18] sm:$0xff] }
 0x119   :  { %v408_v39 = vld [vmem:[#allocation2 + $0x58] sm:$0xff]  ;;  %382 = vst.msk [vmem:[#allocation2 + $0x20] sm:$0xff] %vm22_vm0, %v365_v28  ;;  %390 = vst.msk [vmem:[#allocation2 + $0x60] sm:$0xff] %vm22_vm0, %v373_v29  ;;  %v445_v42 = vadd.f32 %v863_v58, %v422_v34  ;;  %v423_v44 = vmul.f32 %v858_v48, %v400_v38 }
 0x11a   :  { %541 = vst.msk [vmem:[%s977_s4 + $0x4] sm:$0xf] %vm539_vm2, %v615_v32  ;;  %549 = vst.msk [vmem:[%s977_s4 + $0x24] sm:$0xf] %vm539_vm2, %v623_v33  ;;  %v453_v43 = vadd.f32 %v863_v58, %v430_v35  ;;  %v431_v45 = vmul.f32 %v858_v48, %v408_v39 }
 0x11b   :  { %383 = vst.msk [vmem:[#allocation2 + $0x28] sm:$0xff] %vm22_vm0, %v366_v40  ;;  %391 = vst.msk [vmem:[#allocation2 + $0x68] sm:$0xff] %vm22_vm0, %v374_v41  ;;  %v461_v46 = vmax.f32 %v445_v42, 0.0  ;;  %v446_v49 = vadd.f32 %v863_v58, %v423_v44 }
 0x11c   :  { %v469_v47 = vmax.f32 %v453_v43, 0.0  ;;  %v454_v50 = vadd.f32 %v863_v58, %v431_v45  ;;  %v322_v53 = vpop.f32.mrb[12].mxu0  ;;  %v354_v54 = vpop.f32.mrb[12].mxu1 }
 0x11d   :  { %v616_v57 = vpack.c.bf16 %v461_v46, %v461_v46  ;;  %v462_v60 = vmax.f32 %v446_v49, 0.0  ;;  %v324_v62 = vpop.f32.mrb[13].mxu0  ;;  %v356_v63 = vpop.f32.mrb[13].mxu1  ;;  %v367_v0 = vadd.f32 %v322_v53, %v45_v51  ;;  %v375_v1 = vadd.f32 %v354_v54, %v53_v52 }
 0x11e   :  { %v624_v59 = vpack.c.bf16 %v469_v47, %v469_v47  ;;  %v470_v61 = vmax.f32 %v454_v50, 0.0  ;;  %v325_v2 = vpop.f32.mrb[14].mxu0  ;;  %v357_v3 = vpop.f32.mrb[14].mxu1 }
 0x11f   :  { %542 = vst.msk [vmem:[%s977_s4 + $0x8] sm:$0xf] %vm539_vm2, %v616_v57  ;;  %v617_v4 = vpack.c.bf16 %v462_v60, %v462_v60  ;;  %v368_v8 = vadd.f32 %v325_v2, %v46_v55  ;;  %v376_v9 = vadd.f32 %v357_v3, %v54_v56  ;;  %v327_v10 = vpop.f32.mrb[15].mxu0  ;;  %v359_v11 = vpop.f32.mrb[15].mxu1 }
 0x120   :  { %550 = vst.msk [vmem:[%s977_s4 + $0x28] sm:$0xf] %vm539_vm2, %v624_v59  ;;  %v625_v5 = vpack.c.bf16 %v470_v61, %v470_v61  ;;  %v401_v6 = vld [vmem:[#allocation2 + $0x20] sm:$0xff] }
 0x121   :  { %v409_v7 = vld [vmem:[#allocation2 + $0x60] sm:$0xff]  ;;  %v424_v12 = vmul.f32 %v858_v48, %v401_v6  ;;  %384 = vst.msk [vmem:[#allocation2 + $0x30] sm:$0xff] %vm22_vm0, %v367_v0  ;;  %392 = vst.msk [vmem:[#allocation2 + $0x70] sm:$0xff] %vm22_vm0, %v375_v1 }
 0x122   :  { %v432_v13 = vmul.f32 %v858_v48, %v409_v7  ;;  %543 = vst.msk [vmem:[%s977_s4 + $0xc] sm:$0xf] %vm539_vm2, %v617_v4  ;;  %551 = vst.msk [vmem:[%s977_s4 + $0x2c] sm:$0xf] %vm539_vm2, %v625_v5  ;;  %v402_v14 = vld [vmem:[#allocation2 + $0x28] sm:$0xff] }
 0x123   :  { %v410_v15 = vld [vmem:[#allocation2 + $0x68] sm:$0xff]  ;;  %385 = vst.msk [vmem:[#allocation2 + $0x38] sm:$0xff] %vm22_vm0, %v368_v8  ;;  %393 = vst.msk [vmem:[#allocation2 + $0x78] sm:$0xff] %vm22_vm0, %v376_v9  ;;  %v447_v16 = vadd.f32 %v863_v58, %v424_v12  ;;  %v425_v18 = vmul.f32 %v858_v48, %v402_v14 }
 0x124   :  { %v455_v17 = vadd.f32 %v863_v58, %v432_v13  ;;  %v433_v19 = vmul.f32 %v858_v48, %v410_v15 }
 0x125   :  { %v463_v20 = vmax.f32 %v447_v16, 0.0  ;;  %v448_v22 = vadd.f32 %v863_v58, %v425_v18 }
 0x126   :  { %v471_v21 = vmax.f32 %v455_v17, 0.0  ;;  %v456_v23 = vadd.f32 %v863_v58, %v433_v19 }
 0x127   :  { %v618_v24 = vpack.c.bf16 %v463_v20, %v463_v20  ;;  %v464_v26 = vmax.f32 %v448_v22, 0.0 }
 0x128   :  { %v626_v25 = vpack.c.bf16 %v471_v21, %v471_v21  ;;  %v472_v27 = vmax.f32 %v456_v23, 0.0  ;;  %v403_v28 = vld [vmem:[#allocation2 + $0x30] sm:$0xff] }
 0x129   :  { %v411_v29 = vld [vmem:[#allocation2 + $0x70] sm:$0xff]  ;;  %544 = vst.msk [vmem:[%s977_s4 + $0x10] sm:$0xf] %vm539_vm2, %v618_v24  ;;  %v619_v30 = vpack.c.bf16 %v464_v26, %v464_v26  ;;  %v426_v32 = vmul.f32 %v858_v48, %v403_v28 }
 0x12a   :  { %552 = vst.msk [vmem:[%s977_s4 + $0x30] sm:$0xf] %vm539_vm2, %v626_v25  ;;  %v627_v31 = vpack.c.bf16 %v472_v27, %v472_v27  ;;  %v434_v33 = vmul.f32 %v858_v48, %v411_v29  ;;  %v404_v34 = vld [vmem:[#allocation2 + $0x38] sm:$0xff] }
 0x12b   :  { %v412_v35 = vld [vmem:[#allocation2 + $0x78] sm:$0xff]  ;;  %v427_v36 = vmul.f32 %v858_v48, %v404_v34  ;;  %545 = vst.msk [vmem:[%s977_s4 + $0x14] sm:$0xf] %vm539_vm2, %v619_v30  ;;  %v449_v38 = vadd.f32 %v863_v58, %v426_v32 }
 0x12c   :  { %v435_v37 = vmul.f32 %v858_v48, %v412_v35  ;;  %553 = vst.msk [vmem:[%s977_s4 + $0x34] sm:$0xf] %vm539_vm2, %v627_v31  ;;  %v457_v39 = vadd.f32 %v863_v58, %v434_v33 }
 0x12d   :  { %v450_v40 = vadd.f32 %v863_v58, %v427_v36  ;;  %v465_v42 = vmax.f32 %v449_v38, 0.0 }
 0x12e   :  { %v458_v41 = vadd.f32 %v863_v58, %v435_v37  ;;  %v473_v48 = vmax.f32 %v457_v39, 0.0 }
 0x12f   :  { %v466_v43 = vmax.f32 %v450_v40, 0.0  ;;  %v620_v45 = vpack.c.bf16 %v465_v42, %v465_v42 }
 0x130   :  { %v474_v44 = vmax.f32 %v458_v41, 0.0  ;;  %v628_v46 = vpack.c.bf16 %v473_v48, %v473_v48 }
 0x131   :  { %v621_v47 = vpack.c.bf16 %v466_v43, %v466_v43  ;;  %546 = vst.msk [vmem:[%s977_s4 + $0x18] sm:$0xf] %vm539_vm2, %v620_v45 }
 0x132   :  { %v629_v49 = vpack.c.bf16 %v474_v44, %v474_v44  ;;  %554 = vst.msk [vmem:[%s977_s4 + $0x38] sm:$0xf] %vm539_vm2, %v628_v46 }
 0x133   :  { %547 = vst.msk [vmem:[%s977_s4 + $0x1c] sm:$0xf] %vm539_vm2, %v621_v47 }
 0x134   :  { %555 = vst.msk [vmem:[%s977_s4 + $0x3c] sm:$0xf] %vm539_vm2, %v629_v49 }

// kernel: ocrnet_forward.8
= control target key start
LH: loop header
LB: loop body
LE: loop exit
PB: predicated region body
PF: predicated region fallthrough
CT: control target
= control target key end

     0   :  { %s1265_s21 = smov 0   ;;  %s1451_s0 = inlined_call_operand.vmem [shape: bf16[2,80,96], index: 0, kind: input, shape index: {}]   ;;  %s1452_s1 = inlined_call_operand.vmem [shape: bf16[3,96,128], index: 1, kind: input, shape index: {}]   ;;  %s1453_s2 = inlined_call_operand.vmem [shape: f32[1,128], index: 2, kind: input, shape index: {}]   ;;  %s1454_s3 = inlined_call_operand.vmem [shape: f32[1,128], index: 3, kind: input, shape index: {}]   ;;  %s1455_s4 = inlined_call_operand.vmem [shape: bf16[128,5], index: 4, kind: input, shape index: {}]   ;;  %s1456_s5 = inlined_call_operand.vmem [shape: f32[1,5], index: 5, kind: input, shape index: {}]   ;;  %s1457_s6 = inlined_call_operand.vmem [shape: f32[2,64,5], index: 6, kind: output, shape index: {}]  }
   0x1 LB: > { %s929_s22 = sadd.s32 4294967295, %s1226_s21   ;;  %p933_p0 = scmp.ge.s32.totalorder %s1226_s21, 1  ;;  %s1226_s21 = sphi %s1265_s21, %s16_s21  }
   0x2   : > { %p212_p1 = scmp.lt.s32.totalorder %s1226_s21, 3 }
   0x4   : > { %p213_p2 = pnand %p933_p0, %p212_p1 }
   0x5   : > { %v1189_v0 = vld [vmem:[%s1452_s1] sm:$0xff] (!%p213_p2)   ;;  %v1228_v1 = vmov (!%p213_p2), 0.0   ;;  %v1190_v2 = vld [vmem:[%s1452_s1 + $0x30] sm:$0xff] (!%p213_p2)   ;;  %v1191_v3 = vld [vmem:[%s1452_s1 + $0x8] sm:$0xff] (!%p213_p2)   ;;  %vm1229_vm0 = vmmov (!%p213_p2), 0   ;;  %p242_p3 = scmp.lt.s32.totalorder (!%p213_p2), %s929_s22, 1 }
   0x6   : > { %216 = sbr.rel (%p213_p2) target bundleno = 544 (0x220), region = 44  ;;  %1058 = vmatprep.subr.bf16.mxu0 (!%p213_p2), %v1228_v1  ;;  %1090 = vmatprep.subr.bf16.mxu1 (!%p213_p2), %v1228_v1  ;;  %v1192_v4 = vld [vmem:[%s1452_s1 + $0x38] sm:$0xff] (!%p213_p2)   ;;  %v1193_v5 = vld [vmem:[%s1452_s1 + $0x10] sm:$0xff] (!%p213_p2)   ;;  %v1194_v6 = vld [vmem:[%s1452_s1 + $0x40] sm:$0xff] (!%p213_p2)   ;;  %vm336_vm1 = vcmask (!%p213_p2), 785408   ;;  %vm865_vm2 = vcmask (!%p213_p2), 39936  }
   0x7   : > { %1059 = vmatpush3.bf16.msra.mxu0 (!%p213_p2), %v1189_v0  ;;  %1070 = vmatprep.mubr.msk.bf16.mxu0 (!%p213_p2), %vm1229_vm0, %v1228_v1  ;;  %v1195_v7 = vld [vmem:[%s1452_s1 + $0x18] sm:$0xff] (!%p213_p2)   ;;  %v1196_v8 = vld [vmem:[%s1452_s1 + $0x48] sm:$0xff] (!%p213_p2)   ;;  %v1197_v9 = vld [vmem:[%s1452_s1 + $0x20] sm:$0xff] (!%p213_p2)  }
   0x8   : > { %1091 = vmatpush3.bf16.msra.mxu1 (!%p213_p2), %v1190_v2  ;;  %1060 = vmatprep.subr.bf16.mxu0 (!%p213_p2), %v1228_v1  ;;  %v1198_v10 = vld [vmem:[%s1452_s1 + $0x50] sm:$0xff] (!%p213_p2)   ;;  %v1199_v11 = vld [vmem:[%s1452_s1 + $0x28] sm:$0xff] (!%p213_p2)   ;;  %v1200_v12 = vld [vmem:[%s1452_s1 + $0x58] sm:$0xff] (!%p213_p2)  }
   0x9   : > { %1092 = vmatprep.subr.bf16.mxu1 (!%p213_p2), %v1228_v1  ;;  %1102 = vmatprep.mubr.msk.bf16.mxu1 (!%p213_p2), %vm1229_vm0, %v1228_v1  ;;  %v1202_v14 = vld [vmem:[%s1452_s1 + $0x60] sm:$0xff] (!%p213_p2)   ;;  %v1204_v15 = vld [vmem:[%s1452_s1 + $0x68] sm:$0xff] (!%p213_p2)   ;;  %v1205_v17 = vld [vmem:[%s1452_s1 + $0x70] sm:$0xff] (!%p213_p2)  }
   0xa   : > { %v1207_v18 = vld [vmem:[%s1452_s1 + $0x78] sm:$0xff] (!%p213_p2)   ;;  %v1209_v20 = vld [vmem:[%s1452_s1 + $0x80] sm:$0xff] (!%p213_p2)   ;;  %v1211_v21 = vld [vmem:[%s1452_s1 + $0x88] sm:$0xff] (!%p213_p2)  }
   0xb   : > { %1061 = vmatpush3.bf16.msra.mxu0 (!%p213_p2), %v1191_v3  ;;  %v1212_v24 = vld [vmem:[%s1455_s4] sm:$0xff] (!%p213_p2)   ;;  %v1213_v25 = vld [vmem:[%s1455_s4 + $0x8] sm:$0xff] (!%p213_p2)   ;;  %v1214_v26 = vld [vmem:[%s1455_s4 + $0x10] sm:$0xff] (!%p213_p2)  }
   0xc   : > { %1093 = vmatpush3.bf16.msra.mxu1 (!%p213_p2), %v1192_v4  ;;  %1062 = vmatprep.subr.bf16.mxu0 (!%p213_p2), %v1228_v1  ;;  %v1215_v27 = vld [vmem:[%s1455_s4 + $0x18] sm:$0xff] (!%p213_p2)   ;;  %v1216_v28 = vld [vmem:[%s1455_s4 + $0x20] sm:$0xff] (!%p213_p2)   ;;  %v1217_v29 = vld [vmem:[%s1455_s4 + $0x28] sm:$0xff] (!%p213_p2)  }
   0xd   : > { %s1459_s22 = smov (!%p242_p3, %s929_s22), 1  ;;  %1094 = vmatprep.subr.bf16.mxu1 %v1228_v1  ;;  %v1218_v30 = vld [vmem:[%s1455_s4 + $0x30] sm:$0xff]   ;;  %v1219_v31 = vld [vmem:[%s1455_s4 + $0x38] sm:$0xff]  }
   0xe   : > { %s1178_s11 = smul.u32 40, %s1459_s22  ;;  %s1012_s15 = sshll.u32 %s1459_s22, 6 }
   0xf   : > { %1063 = vmatpush3.bf16.msra.mxu0 %v1193_v5  ;;  %s251_s20 = scalar_lea.vmem %s1457_s6, %s1012_s15 }
  0x10   : > { %1095 = vmatpush3.bf16.msra.mxu1 %v1194_v6  ;;  %1064 = vmatprep.subr.bf16.mxu0 %v1228_v1  ;;  %s1314_s18 = scalar_lea.vmem %s1451_s0, %s1178_s11 }
  0x11   : > { %1096 = vmatprep.subr.bf16.mxu1 %v1228_v1  ;;  %v1201_v13 = vld [vmem:[%s1314_s18] sm:$0xff]   ;;  %v1203_v16 = vld [vmem:[%s1314_s18 + $0x8] sm:$0xff]   ;;  %v1206_v19 = vld [vmem:[%s1314_s18 + $0x10] sm:$0xff]  }
  0x12   : > { %v1208_v22 = vld [vmem:[%s1314_s18 + $0x18] sm:$0xff]   ;;  %v1210_v23 = vld [vmem:[%s1314_s18 + $0x20] sm:$0xff]  }
  0x13   : > { %1065 = vmatpush3.bf16.msra.mxu0 %v1195_v7 }
  0x14   : > { %1097 = vmatpush3.bf16.msra.mxu1 %v1196_v8  ;;  %1066 = vmatprep.subr.bf16.mxu0 %v1228_v1 }
  0x15   : > { %1098 = vmatprep.subr.bf16.mxu1 %v1228_v1 }
  0x17   : > { %1067 = vmatpush3.bf16.msra.mxu0 %v1197_v9 }
  0x18   : > { %1099 = vmatpush3.bf16.msra.mxu1 %v1198_v10  ;;  %1068 = vmatprep.subr.bf16.mxu0 %v1228_v1 }
  0x19   : > { %1100 = vmatprep.subr.bf16.mxu1 %v1228_v1 }
  0x1b   : > { %1069 = vmatpush3.bf16.msra.mxu0 %v1199_v11 }
  0x1c   : > { %1101 = vmatpush3.bf16.msra.mxu1 %v1200_v12  ;;  %1122 = vmatprep.subr.bf16.mxu0 %v1228_v1 }
  0x1d   : > { %1154 = vmatprep.subr.bf16.mxu1 %v1212_v24 }
  0x1e   : > { %1071 = vmatmul.mubr.msk.bf16.vlgmr.msra.gmra.mrb[0].mxu0 %vm336_vm1, %v1201_v13 }
  0x1f   : > { %1103 = vmatmul.mubr.msk.bf16.vlgmr.msra.gmra.mrb[0].mxu1 %vm336_vm1, %v1201_v13  ;;  %1123 = vmatpush3.bf16.msra.mxu0 %v1202_v14 }
  0x20   : > { %1074 = vmatprep.mubr.msk.bf16.mxu0 %vm1229_vm0, %v1228_v1  ;;  %1106 = vmatprep.mubr.msk.bf16.mxu1 %vm1229_vm0, %v1228_v1 }
  0x21   : > { %1124 = vmatprep.subr.bf16.mxu0 %v1228_v1  ;;  %1155 = vmatpush3.bf16.msra.mxu1 %v1212_v24  ;;  %v1000_v24 = vld [vmem:[%s1454_s3] ss:$0 sm:$0xff] }
  0x22   : > { %1156 = vmatprep.subr.bf16.mxu1 %v1213_v25 }
  0x23   : > { %1125 = vmatpush3.bf16.msra.mxu0 %v1204_v15 }
  0x24   : > { %1126 = vmatprep.subr.bf16.mxu0 %v1228_v1 }
  0x25   : > { %1157 = vmatpush3.bf16.msra.mxu1 %v1213_v25 }
  0x26   : > { %1075 = vmatmul.mubr.msk.bf16.gmra.mrb[4].mxu0 %vm336_vm1, %v1203_v16  ;;  %1158 = vmatprep.subr.bf16.mxu1 %v1214_v26 }
  0x27   : > { %1107 = vmatmul.mubr.msk.bf16.gmra.mrb[4].mxu1 %vm336_vm1, %v1203_v16  ;;  %1078 = vmatprep.mubr.msk.bf16.mxu0 %vm1229_vm0, %v1228_v1 }
  0x28   : > { %1110 = vmatprep.mubr.msk.bf16.mxu1 %vm1229_vm0, %v1228_v1  ;;  %1127 = vmatpush3.bf16.msra.mxu0 %v1205_v17 }
  0x29   : > { %1128 = vmatprep.subr.bf16.mxu0 %v1228_v1  ;;  %1159 = vmatpush3.bf16.msra.mxu1 %v1214_v26 }
  0x2a   : > { %1160 = vmatprep.subr.bf16.mxu1 %v1215_v27 }
  0x2c   : > { %1129 = vmatpush3.bf16.msra.mxu0 %v1207_v18 }
  0x2d   : > { %1130 = vmatprep.subr.bf16.mxu0 %v1228_v1  ;;  %1161 = vmatpush3.bf16.msra.mxu1 %v1215_v27 }
  0x2e   : > { %1079 = vmatmul.mubr.msk.bf16.gmra.mrb[8].mxu0 %vm336_vm1, %v1206_v19  ;;  %1162 = vmatprep.subr.bf16.mxu1 %v1216_v28 }
  0x2f   : > { %1111 = vmatmul.mubr.msk.bf16.gmra.mrb[8].mxu1 %vm336_vm1, %v1206_v19  ;;  %1082 = vmatprep.mubr.msk.bf16.mxu0 %vm1229_vm0, %v1228_v1 }
  0x30   : > { %1114 = vmatprep.mubr.msk.bf16.mxu1 %vm1229_vm0, %v1228_v1  ;;  %1131 = vmatpush3.bf16.msra.mxu0 %v1209_v20 }
  0x31   : > { %1132 = vmatprep.subr.bf16.mxu0 %v1228_v1  ;;  %1163 = vmatpush3.bf16.msra.mxu1 %v1216_v28 }
  0x32   : > { %1164 = vmatprep.subr.bf16.mxu1 %v1217_v29 }
  0x34   : > { %1133 = vmatpush3.bf16.msra.mxu0 %v1211_v21  ;;  %v999_v21 = vld [vmem:[%s1453_s2] ss:$0 sm:$0xff] }
  0x35   : > { %1165 = vmatpush3.bf16.msra.mxu1 %v1217_v29 }
  0x36   : > { %1083 = vmatmul.mubr.msk.bf16.gmra.mrb[12].mxu0 %vm336_vm1, %v1208_v22  ;;  %1166 = vmatprep.subr.bf16.mxu1 %v1218_v30 }
  0x37   : > { %1115 = vmatmul.mubr.msk.bf16.gmra.mrb[12].mxu1 %vm336_vm1, %v1208_v22  ;;  %1086 = vmatprep.mubr.msk.bf16.mxu0 %vm1229_vm0, %v1228_v1 }
  0x38   : > { %1118 = vmatprep.mubr.msk.bf16.mxu1 %vm1229_vm0, %v1228_v1 }
  0x39   : > { %1167 = vmatpush3.bf16.msra.mxu1 %v1218_v30 }
  0x3a   : > { %1168 = vmatprep.subr.bf16.mxu1 %v1219_v31 }
  0x3d   : > { %1169 = vmatpush3.bf16.msra.mxu1 %v1219_v31 }
  0x3e   : > { %1087 = vmatmul.mubr.msk.bf16.gmra.mrb[16].mxu0 %vm336_vm1, %v1210_v23 }
  0x3f   : > { %1119 = vmatmul.mubr.msk.bf16.gmra.mrb[16].mxu1 %vm336_vm1, %v1210_v23  ;;  %1134 = vmatprep.mubr.msk.bf16.mxu0 %vm1229_vm0, %v1228_v1 }
  0x46   : > { %1135 = vmatmul.mubr.msk.bf16.vlgmr.msra.gmra.mrb[20].mxu0 %vm336_vm1, %v1201_v13 }
  0x47   : > { %1138 = vmatprep.mubr.msk.bf16.mxu0 %vm1229_vm0, %v1228_v1 }
  0x4e   : > { %1139 = vmatmul.mubr.msk.bf16.gmra.mrb[24].mxu0 %vm336_vm1, %v1203_v16 }
  0x4f   : > { %1142 = vmatprep.mubr.msk.bf16.mxu0 %vm1229_vm0, %v1228_v1 }
  0x56   : > { %1143 = vmatmul.mubr.msk.bf16.gmra.mrb[28].mxu0 %vm336_vm1, %v1206_v19 }
  0x57   : > { %1146 = vmatprep.mubr.msk.bf16.mxu0 %vm1229_vm0, %v1228_v1 }
  0x5e   : > { %1147 = vmatmul.mubr.msk.bf16.gmra.mrb[32].mxu0 %vm336_vm1, %v1208_v22 }
  0x5f   : > { %1150 = vmatprep.mubr.msk.bf16.mxu0 %vm1229_vm0, %v1228_v1 }
  0x66   : > { %1151 = vmatmul.mubr.msk.bf16.gmra.mrb[36].mxu0 %vm336_vm1, %v1210_v23 }
  0xf1   : > { %v386_v32 = vpop.f32.mrb[0].mxu0 }
  0xf2   : > { %v514_v33 = vpop.f32.mrb[0].mxu1  ;;  %v1072_v34 = vpop.f32.mrb[1].mxu0 }
  0xf3   : > { %v1104_v35 = vpop.f32.mrb[1].mxu1  ;;  %v389_v36 = vpop.f32.mrb[2].mxu0 }
  0xf4   : > { %v516_v37 = vpop.f32.mrb[2].mxu1  ;;  %v1073_v38 = vpop.f32.mrb[3].mxu0 }
  0xf5   : > { %v551_v39 = vadd.f32 %v516_v37, %v386_v32  ;;  %v1105_v40 = vpop.f32.mrb[3].mxu1 }
  0xf9   : > { %v394_v41 = vpop.f32.mrb[4].mxu0 }
  0xfa   : > { %v521_v42 = vpop.f32.mrb[4].mxu1  ;;  %v1076_v43 = vpop.f32.mrb[5].mxu0 }
  0xfb   : > { %v552_v44 = vadd.f32 %v521_v42, %v389_v36  ;;  %v1108_v45 = vpop.f32.mrb[5].mxu1  ;;  %v397_v46 = vpop.f32.mrb[6].mxu0 }
  0xfc   : > { %v524_v47 = vpop.f32.mrb[6].mxu1  ;;  %v1077_v48 = vpop.f32.mrb[7].mxu0 }
  0xfd   : > { %v553_v49 = vadd.f32 %v524_v47, %v394_v41  ;;  %v1109_v50 = vpop.f32.mrb[7].mxu1 }
 0x101   : > { %v402_v51 = vpop.f32.mrb[8].mxu0 }
 0x102   : > { %v529_v52 = vpop.f32.mrb[8].mxu1  ;;  %v1080_v53 = vpop.f32.mrb[9].mxu0 }
 0x103   : > { %v554_v54 = vadd.f32 %v529_v52, %v397_v46  ;;  %v1112_v55 = vpop.f32.mrb[9].mxu1  ;;  %v405_v56 = vpop.f32.mrb[10].mxu0 }
 0x104   : > { %v532_v57 = vpop.f32.mrb[10].mxu1  ;;  %v1081_v58 = vpop.f32.mrb[11].mxu0 }
 0x105   : > { %v555_v59 = vadd.f32 %v532_v57, %v402_v51  ;;  %v1113_v60 = vpop.f32.mrb[11].mxu1 }
 0x109   : > { %v410_v61 = vpop.f32.mrb[12].mxu0 }
 0x10a   : > { %v537_v62 = vpop.f32.mrb[12].mxu1  ;;  %v1084_v63 = vpop.f32.mrb[13].mxu0 }
 0x10b   : > { %v556_v0 = vadd.f32 %v537_v62, %v405_v56  ;;  %v1116_v1 = vpop.f32.mrb[13].mxu1  ;;  %v413_v2 = vpop.f32.mrb[14].mxu0 }
 0x10c   : > { %v540_v3 = vpop.f32.mrb[14].mxu1  ;;  %v1085_v4 = vpop.f32.mrb[15].mxu0 }
 0x10d   : > { %v557_v5 = vadd.f32 %v540_v3, %v410_v61  ;;  %v1117_v6 = vpop.f32.mrb[15].mxu1 }
 0x111   : > { %v418_v7 = vpop.f32.mrb[16].mxu0 }
 0x112   : > { %v545_v8 = vpop.f32.mrb[16].mxu1  ;;  %v1088_v9 = vpop.f32.mrb[17].mxu0 }
 0x113   : > { %v558_v10 = vadd.f32 %v545_v8, %v413_v2  ;;  %v420_v11 = vpop.f32.mrb[18].mxu0  ;;  %v1120_v12 = vpop.f32.mrb[17].mxu1 }
 0x114   : > { %v1089_v13 = vpop.f32.mrb[19].mxu0  ;;  %v548_v14 = vpop.f32.mrb[18].mxu1  ;;  %v1001_v12 = vld [vmem:[%s1456_s5] ss:$0 sm:$0xff] }
 0x115   : > { %v1121_v15 = vpop.f32.mrb[19].mxu1 }
 0x119   : > { %v642_v16 = vpop.f32.mrb[20].mxu0 }
 0x11a   : > { %v1136_v17 = vpop.f32.mrb[21].mxu0 }
 0x11b   : > { %v644_v18 = vpop.f32.mrb[22].mxu0 }
 0x11c   : > { %v1137_v19 = vpop.f32.mrb[23].mxu0 }
 0x121   : > { %v648_v20 = vpop.f32.mrb[24].mxu0 }
 0x122   : > { %v679_v22 = vadd.f32 %v648_v20, %v551_v39  ;;  %v1140_v23 = vpop.f32.mrb[25].mxu0 }
 0x123   : > { %v651_v25 = vpop.f32.mrb[26].mxu0 }
 0x124   : > { %v694_v26 = vmul.f32 %v999_v21, %v679_v22  ;;  %v680_v27 = vadd.f32 %v651_v25, %v552_v44  ;;  %v1141_v28 = vpop.f32.mrb[27].mxu0 }
 0x126   : > { %v709_v29 = vadd.f32 %v1000_v24, %v694_v26  ;;  %v695_v30 = vmul.f32 %v999_v21, %v680_v27 }
 0x128   : > { %v710_v31 = vadd.f32 %v1000_v24, %v695_v30  ;;  %v717_v33 = vmax.f32 %v709_v29, 0.0 }
 0x129   : > { %v656_v32 = vpop.f32.mrb[28].mxu0 }
 0x12a   : > { %v718_v34 = vmax.f32 %v710_v31, 0.0  ;;  %v681_v35 = vadd.f32 %v656_v32, %v553_v49  ;;  %v1144_v36 = vpop.f32.mrb[29].mxu0 }
 0x12b   : > { %v659_v37 = vpop.f32.mrb[30].mxu0 }
 0x12c   : > { %v696_v38 = vmul.f32 %v999_v21, %v681_v35  ;;  %v682_v39 = vadd.f32 %v659_v37, %v554_v54  ;;  %v1145_v40 = vpop.f32.mrb[31].mxu0  ;;  %v725_v41 = vpack.c.bf16 %v718_v34, %v717_v33 }
 0x12e   : > { %v711_v42 = vadd.f32 %v1000_v24, %v696_v38  ;;  %v697_v43 = vmul.f32 %v999_v21, %v682_v39  ;;  %1170 = vmatprep.mubr.bf16.mxu1 %v725_v41 }
 0x130   : > { %v712_v45 = vadd.f32 %v1000_v24, %v697_v43  ;;  %v719_v44 = vmax.f32 %v711_v42, 0.0 }
 0x131   : > { %v664_v46 = vpop.f32.mrb[32].mxu0 }
 0x132   : > { %v720_v47 = vmax.f32 %v712_v45, 0.0  ;;  %v683_v48 = vadd.f32 %v664_v46, %v555_v59  ;;  %v1148_v50 = vpop.f32.mrb[33].mxu0 }
 0x133   : > { %v667_v51 = vpop.f32.mrb[34].mxu0 }
 0x134   : > { %v726_v52 = vpack.c.bf16 %v720_v47, %v719_v44  ;;  %v698_v53 = vmul.f32 %v999_v21, %v683_v48  ;;  %v684_v55 = vadd.f32 %v667_v51, %v556_v0  ;;  %v1149_v49 = vpop.f32.mrb[35].mxu0 }
 0x136   : > { %v713_v56 = vadd.f32 %v1000_v24, %v698_v53  ;;  %v699_v57 = vmul.f32 %v999_v21, %v684_v55  ;;  %1171 = vmatmul.mubr.bf16.vlgmr.msra.gmra.mrb[20].mxu1 %v726_v52 }
 0x138   : > { %v714_v54 = vadd.f32 %v1000_v24, %v699_v57  ;;  %v721_v60 = vmax.f32 %v713_v56, 0.0 }
 0x139   : > { %v672_v58 = vpop.f32.mrb[36].mxu0 }
 0x13a   : > { %v722_v61 = vmax.f32 %v714_v54, 0.0  ;;  %v685_v62 = vadd.f32 %v672_v58, %v557_v5  ;;  %v1152_v63 = vpop.f32.mrb[37].mxu0 }
 0x13b   : > { %v675_v1 = vpop.f32.mrb[38].mxu0 }
 0x13c   : > { %v700_v2 = vmul.f32 %v999_v21, %v685_v62  ;;  %v686_v3 = vadd.f32 %v675_v1, %v558_v10  ;;  %v1153_v59 = vpop.f32.mrb[39].mxu0  ;;  %v727_v4 = vpack.c.bf16 %v722_v61, %v721_v60 }
 0x13e   : > { %v715_v6 = vadd.f32 %v1000_v24, %v700_v2  ;;  %v701_v7 = vmul.f32 %v999_v21, %v686_v3  ;;  %1174 = vmatprep.mubr.bf16.mxu1 %v727_v4 }
 0x140   : > { %v716_v0 = vadd.f32 %v1000_v24, %v701_v7  ;;  %v723_v8 = vmax.f32 %v715_v6, 0.0 }
 0x142   : > { %v724_v9 = vmax.f32 %v716_v0, 0.0 }
 0x144   : > { %v728_v11 = vpack.c.bf16 %v724_v9, %v723_v8 }
 0x146   : > { %1175 = vmatmul.mubr.bf16.gmra.mrb[24].mxu1 %v728_v11 }
 0x209   : > { %v1172_v5 = vpop.f32.mrb[20].mxu1 }
 0x20a   : > { %v843_v10 = vadd.f32 %v1172_v5, %v1001_v12  ;;  %v834_v13 = vpop.f32.mrb[21].mxu1 }
 0x20b   : > { %v835_v14 = vadd.f32 %v1001_v12, %v834_v13  ;;  %v1173_v15 = vpop.f32.mrb[22].mxu1 }
 0x20c   : > { %868 = vst.msk [vmem:[%s251_s20 + $0x10] sm:$0xff] %vm865_vm2, %v843_v10  ;;  %v846_v16 = vadd.f32 %v1173_v15, %v1001_v12  ;;  %v837_v17 = vpop.f32.mrb[23].mxu1 }
 0x20d   : > { %866 = vst.msk [vmem:[%s251_s20] sm:$0xff] %vm865_vm2, %v835_v14  ;;  %v838_v18 = vadd.f32 %v1001_v12, %v837_v17 }
 0x20e   : > { %869 = vst.msk [vmem:[%s251_s20 + $0x18] sm:$0xff] %vm865_vm2, %v846_v16 }
 0x20f   : > { %867 = vst.msk [vmem:[%s251_s20 + $0x8] sm:$0xff] %vm865_vm2, %v838_v18 }
 0x219   : > { %v1176_v19 = vpop.f32.mrb[24].mxu1 }
 0x21a   : > { %v859_v20 = vadd.f32 %v1176_v19, %v1001_v12  ;;  %v850_v21 = vpop.f32.mrb[25].mxu1 }
 0x21b   : > { %v851_v22 = vadd.f32 %v1001_v12, %v850_v21  ;;  %v1177_v23 = vpop.f32.mrb[26].mxu1 }
 0x21c   : > { %872 = vst.msk [vmem:[%s251_s20 + $0x30] sm:$0xff] %vm865_vm2, %v859_v20  ;;  %v862_v24 = vadd.f32 %v1177_v23, %v1001_v12  ;;  %v853_v25 = vpop.f32.mrb[27].mxu1 }
 0x21d   : > { %870 = vst.msk [vmem:[%s251_s20 + $0x20] sm:$0xff] %vm865_vm2, %v851_v22  ;;  %v854_v26 = vadd.f32 %v1001_v12, %v853_v25 }
 0x21e   : > { %873 = vst.msk [vmem:[%s251_s20 + $0x38] sm:$0xff] %vm865_vm2, %v862_v24 }
 0x21f   : > { %871 = vst.msk [vmem:[%s251_s20 + $0x28] sm:$0xff] %vm865_vm2, %v854_v26 }
 0x220 PF: > { %s16_s21 = sadd.s32 1, %s1226_s21  }
 0x221   : > { %p13_p4 = scmp.ge.s32.totalorder %s16_s21, 4  }
 0x223   :  { %15 = sbr.rel (!%p13_p4) target bundleno = 1 (0x1), region = 76 }

// kernel: ocrnet_forward.10
= control target key start
LH: loop header
LB: loop body
LE: loop exit
PB: predicated region body
PF: predicated region fallthrough
CT: control target
= control target key end

     0   :  { %s399_s9 = smov 0   ;;  %s424_s0 = inlined_call_operand.vmem [shape: f32[2,5,64], index: 0, kind: input, shape index: {}]   ;;  %s425_s1 = inlined_call_operand.vmem [shape: bf16[2,64,128], index: 1, kind: input, shape index: {}]   ;;  %s426_s2 = inlined_call_operand.vmem [shape: bf16[2,5,128], index: 2, kind: output, shape index: {}]  }
   0x1 LB: > { %s322_s10 = sadd.s32 4294967295, %s380_s9   ;;  %p326_p0 = scmp.ge.s32.totalorder %s380_s9, 1  ;;  %s380_s9 = sphi %s399_s9, %s12_s9  }
   0x2   : > { %p121_p1 = scmp.lt.s32.totalorder %s380_s9, 3 }
   0x4   : > { %p122_p2 = pnand %p326_p0, %p121_p1 }
   0x5   : > { %p146_p3 = scmp.lt.s32.totalorder (!%p122_p2), %s322_s10, 1  ;;  %vm161_vm0 = vcmask (!%p122_p2), 520192   ;;  %v382_v2 = vmov (!%p122_p2), 0.0   ;;  %vm383_vm1 = vmmov (!%p122_p2), 0   ;;  %vm206_vm2 = vcmask (!%p122_p2), 523264  }
   0x6   : > { %125 = sbr.rel (%p122_p2) target bundleno = 549 (0x225), region = 28  ;;  %344 = vmatprep.subr.bf16.mxu0 (!%p122_p2), %v382_v2  ;;  %352 = vmatprep.mubr.msk.bf16.mxu0 (!%p122_p2), %vm383_vm1, %v382_v2  ;;  %vm251_vm3 = vcmask (!%p122_p2), 1042432   ;;  %vm252_vm4 = vsmask.f32 (!%p122_p2), 2304 }
   0x7   : > { %vm253_vm5 = vmand (!%p122_p2), %vm251_vm3, %vm252_vm4 }
   0xd   : > { %s428_s10 = smov (!%p146_p3, %s322_s10), 1 }
   0xe   : > { %s327_s11 = sshll.u32 %s428_s10, 3  ;;  %s338_s12 = sshll.u32 %s428_s10, 5 }
   0xf   : > { %s149_s15 = scalar_lea.vmem %s424_s0, %s327_s11  ;;  %s154_s18 = scalar_lea.vmem %s425_s1, %s338_s12 }
  0x10   : > { %v160_v0 = vld [vmem:[%s149_s15] sm:$0x1f]  ;;  %v367_v9 = vld [vmem:[%s154_s18 + $0x8] sm:$0xff]   ;;  %v368_v10 = vld [vmem:[%s154_s18 + $0x10] sm:$0xff]   ;;  %s330_s19 = sshll.u32 %s428_s10, 2 }
  0x11   : > { %v162_v1 = vsel %vm161_vm0, %v160_v0, -inf  ;;  %v366_v8 = vld [vmem:[%s154_s18] sm:$0xff]   ;;  %v369_v11 = vld [vmem:[%s154_s18 + $0x18] sm:$0xff]   ;;  %s158_s22 = scalar_lea.vmem %s426_s2, %s330_s19 }
  0x12   : > { %163 = vmax.xlane.f32.xlu0 %v162_v1  ;;  %345 = vmatpush3.bf16.msra.mxu0 %v366_v8  ;;  %v254_v17 = vld [vmem:[%s158_s22] sm:$0x7] }
  0x13   : > { %346 = vmatprep.subr.bf16.mxu0 %v382_v2 }
  0x16   : > { %347 = vmatpush3.bf16.msra.mxu0 %v367_v9 }
  0x17   : > { %348 = vmatprep.subr.bf16.mxu0 %v382_v2 }
  0x1a   : > { %349 = vmatpush3.bf16.msra.mxu0 %v368_v10 }
  0x1b   : > { %350 = vmatprep.subr.bf16.mxu0 %v382_v2 }
  0x1e   : > { %351 = vmatpush3.bf16.msra.mxu0 %v369_v11 }
  0x9f   : > { %v164_v3 = vpop.xlane.xlu0 %163 }
  0xa0   : > { %v165_v4 = vsub.f32 %v160_v0, %v164_v3 }
  0xa2   : > { %v166_v5 = vmul.f32 1.442695, %v165_v4 }
  0xa4   : > { %370 = vpow2.f32 %v166_v5 }
  0xae   : > { %v371_v6 = vpop.eup %370 }
  0xaf   : > { %v168_v7 = vsel %vm161_vm0, %v371_v6, 0.0 }
  0xb0   : > { %169 = vadd.xlane.f32.xlu0 %v168_v7 }
 0x13d   : > { %v170_v12 = vpop.xlane.xlu0 %169 }
 0x13e   : > { %372 = vrcp.f32 %v170_v12 }
 0x148   : > { %v373_v13 = vpop.eup %372 }
 0x149   : > { %v172_v14 = vmul.f32 %v373_v13, %v371_v6 }
 0x14b   : > { %v173_v15 = vpack.c.bf16 %v172_v14, %v172_v14 }
 0x14d   : > { %353 = vmatmul.mubr.msk.bf16.vlgmr.msra.gmra.mrb[0].mxu0 %vm206_vm2, %v173_v15 }
 0x220   : > { %v244_v16 = vpop.f32.mrb[0].mxu0 }
 0x221   : > { %v250_v18 = vpack.c.bf16 %v244_v16, %v244_v16  ;;  %v354_v19 = vpop.f32.mrb[1].mxu0 }
 0x222   : > { %v247_v20 = vpop.f32.mrb[2].mxu0 }
 0x223   : > { %v255_v21 = vsel %vm253_vm5, %v250_v18, %v254_v17  ;;  %v355_v22 = vpop.f32.mrb[3].mxu0 }
 0x224   : > { %256 = vst [vmem:[%s158_s22] sm:$0x7] %v255_v21 }
 0x225 PF: > { %s12_s9 = sadd.s32 1, %s380_s9  }
 0x226   : > { %p9_p4 = scmp.ge.s32.totalorder %s12_s9, 4  }
 0x228   :  { %11 = sbr.rel (!%p9_p4) target bundleno = 1 (0x1), region = 61 }

// kernel: ocrnet_forward.9
= control target key start
LH: loop header
LB: loop body
LE: loop exit
PB: predicated region body
PF: predicated region fallthrough
CT: control target
= control target key end

     0   :  { %s1210_s15 = smov 0   ;;  %s1465_s0 = inlined_call_operand.vmem [shape: bf16[2,80,192], index: 0, kind: input, shape index: {}]   ;;  %s1466_s1 = inlined_call_operand.vmem [shape: bf16[3,192,128], index: 1, kind: input, shape index: {}]   ;;  %s1467_s2 = inlined_call_operand.vmem [shape: f32[1,128], index: 2, kind: input, shape index: {}]   ;;  %s1468_s3 = inlined_call_operand.vmem [shape: f32[1,128], index: 3, kind: input, shape index: {}]   ;;  %s1469_s4 = inlined_call_operand.vmem [shape: bf16[2,64,128], index: 4, kind: output, shape index: {}]  }
   0x1 LB: > { %s930_s16 = sadd.s32 4294967295, %s1182_s15   ;;  %p934_p0 = scmp.ge.s32.totalorder %s1182_s15, 1  ;;  %s1182_s15 = sphi %s1210_s15, %s14_s15  }
   0x2   : > { %p162_p1 = scmp.lt.s32.totalorder %s1182_s15, 3 }
   0x4   : > { %p163_p2 = pnand %p934_p0, %p162_p1 }
   0x5   : > { %v1125_v0 = vld [vmem:[%s1466_s1] sm:$0xff] (!%p163_p2)   ;;  %v1184_v1 = vmov (!%p163_p2), 0   ;;  %v1127_v3 = vld [vmem:[%s1466_s1 + $0x8] sm:$0xff] (!%p163_p2)   ;;  %v1129_v5 = vld [vmem:[%s1466_s1 + $0x10] sm:$0xff] (!%p163_p2)   ;;  %p188_p3 = scmp.lt.s32.totalorder (!%p163_p2), %s930_s16, 1  ;;  %vm350_vm0 = vcmask (!%p163_p2), 523264  }
   0x6   : > { %166 = sbr.rel (%p163_p2) target bundleno = 343 (0x157), region = 36  ;;  %366 = vmatprep.subr.bf16.mxu0 (!%p163_p2), %v1184_v1  ;;  %542 = vmatprep.subr.bf16.mxu1 (!%p163_p2), %v1184_v1  ;;  %v1126_v2 = vld [vmem:[%s1466_s1 + $0x60] sm:$0xff] (!%p163_p2)   ;;  %v1128_v4 = vld [vmem:[%s1466_s1 + $0x68] sm:$0xff] (!%p163_p2)   ;;  %v1130_v6 = vld [vmem:[%s1466_s1 + $0x70] sm:$0xff] (!%p163_p2)  }
   0x7   : > { %367 = vmatpush1.bf16.msra.mxu0 (!%p163_p2), %v1125_v0  ;;  %543 = vmatpush1.bf16.msra.mxu1 (!%p163_p2), %v1126_v2  ;;  %v1131_v7 = vld [vmem:[%s1466_s1 + $0x18] sm:$0xff] (!%p163_p2)   ;;  %v1133_v9 = vld [vmem:[%s1466_s1 + $0x20] sm:$0xff] (!%p163_p2)   ;;  %v1135_v11 = vld [vmem:[%s1466_s1 + $0x28] sm:$0xff] (!%p163_p2)  }
   0x8   : > { %368 = vmatprep.subr.bf16.mxu0 (!%p163_p2), %v1184_v1  ;;  %544 = vmatprep.subr.bf16.mxu1 (!%p163_p2), %v1184_v1  ;;  %v1132_v8 = vld [vmem:[%s1466_s1 + $0x78] sm:$0xff] (!%p163_p2)   ;;  %v1134_v10 = vld [vmem:[%s1466_s1 + $0x80] sm:$0xff] (!%p163_p2)   ;;  %v1136_v12 = vld [vmem:[%s1466_s1 + $0x88] sm:$0xff] (!%p163_p2)  }
   0x9   : > { %v1137_v13 = vld [vmem:[%s1466_s1 + $0x30] sm:$0xff] (!%p163_p2)   ;;  %v1139_v16 = vld [vmem:[%s1466_s1 + $0x38] sm:$0xff] (!%p163_p2)   ;;  %v1141_v18 = vld [vmem:[%s1466_s1 + $0x40] sm:$0xff] (!%p163_p2)  }
   0xa   : > { %v1138_v14 = vld [vmem:[%s1466_s1 + $0x90] sm:$0xff] (!%p163_p2)   ;;  %v1140_v17 = vld [vmem:[%s1466_s1 + $0x98] sm:$0xff] (!%p163_p2)   ;;  %v1142_v19 = vld [vmem:[%s1466_s1 + $0xa0] sm:$0xff] (!%p163_p2)  }
   0xb   : > { %369 = vmatpush1.bf16.msra.mxu0 (!%p163_p2), %v1127_v3  ;;  %545 = vmatpush1.bf16.msra.mxu1 (!%p163_p2), %v1128_v4  ;;  %v1143_v20 = vld [vmem:[%s1466_s1 + $0x48] sm:$0xff] (!%p163_p2)   ;;  %v1145_v22 = vld [vmem:[%s1466_s1 + $0x50] sm:$0xff] (!%p163_p2)   ;;  %v1147_v24 = vld [vmem:[%s1466_s1 + $0x58] sm:$0xff] (!%p163_p2)  }
   0xc   : > { %370 = vmatprep.subr.bf16.mxu0 (!%p163_p2), %v1184_v1  ;;  %546 = vmatprep.subr.bf16.mxu1 (!%p163_p2), %v1184_v1  ;;  %v1144_v21 = vld [vmem:[%s1466_s1 + $0xa8] sm:$0xff] (!%p163_p2)   ;;  %v1146_v23 = vld [vmem:[%s1466_s1 + $0xb0] sm:$0xff] (!%p163_p2)   ;;  %v1148_v25 = vld [vmem:[%s1466_s1 + $0xb8] sm:$0xff] (!%p163_p2)  }
   0xd   : > { %s1471_s16 = smov (!%p188_p3, %s930_s16), 1  ;;  %v1152_v27 = vld [vmem:[%s1466_s1 + $0xc0] sm:$0xff]   ;;  %v1153_v29 = vld [vmem:[%s1466_s1 + $0xc8] sm:$0xff]   ;;  %v1157_v31 = vld [vmem:[%s1466_s1 + $0xd0] sm:$0xff]  }
   0xe   : > { %s1115_s11 = smul.u32 80, %s1471_s16  ;;  %v1158_v33 = vld [vmem:[%s1466_s1 + $0xd8] sm:$0xff]   ;;  %v1162_v35 = vld [vmem:[%s1466_s1 + $0xe0] sm:$0xff]   ;;  %v1163_v37 = vld [vmem:[%s1466_s1 + $0xe8] sm:$0xff]   ;;  %s1059_s26 = sshll.u32 %s1471_s16, 5 }
   0xf   : > { %371 = vmatpush1.bf16.msra.mxu0 %v1129_v5  ;;  %547 = vmatpush1.bf16.msra.mxu1 %v1130_v6  ;;  %v1167_v39 = vld [vmem:[%s1466_s1 + $0xf0] sm:$0xff]   ;;  %v1168_v41 = vld [vmem:[%s1466_s1 + $0xf8] sm:$0xff]   ;;  %v1172_v43 = vld [vmem:[%s1466_s1 + $0x100] sm:$0xff]   ;;  %s1453_s29 = scalar_lea.vmem %s1469_s4, %s1059_s26 }
  0x10   : > { %372 = vmatprep.subr.bf16.mxu0 %v1184_v1  ;;  %548 = vmatprep.subr.bf16.mxu1 %v1184_v1  ;;  %s1272_s20 = scalar_lea.vmem %s1465_s0, %s1115_s11  ;;  %v1173_v44 = vld [vmem:[%s1466_s1 + $0x108] sm:$0xff]   ;;  %v1174_v45 = vld [vmem:[%s1466_s1 + $0x110] sm:$0xff]   ;;  %v1175_v46 = vld [vmem:[%s1466_s1 + $0x118] sm:$0xff]  }
  0x11   : > { %v1283_v15 = vld [vmem:[%s1272_s20 + $0x4] ss:$8 sps:$4 sm:$0xff]   ;;  %v1330_v26 = vld [vmem:[%s1272_s20] ss:$8 sps:$4 sm:$0xff]   ;;  %v1338_v28 = vld [vmem:[%s1272_s20 + $0x14] ss:$8 sps:$4 sm:$0xff]  }
  0x12   : > { %960 = vmatprep.mubr.msk.bf16.mxu0 %vm350_vm0, %v1283_v15  ;;  %1001 = vmatprep.mubr.msk.bf16.mxu1 %vm350_vm0, %v1283_v15  ;;  %v1352_v30 = vld [vmem:[%s1272_s20 + $0x10] ss:$8 sps:$4 sm:$0xff]   ;;  %v1360_v32 = vld [vmem:[%s1272_s20 + $0x24] ss:$8 sps:$4 sm:$0xff]   ;;  %v1374_v34 = vld [vmem:[%s1272_s20 + $0x20] ss:$8 sps:$4 sm:$0xff]  }
  0x13   : > { %373 = vmatpush1.bf16.msra.mxu0 %v1131_v7  ;;  %549 = vmatpush1.bf16.msra.mxu1 %v1132_v8  ;;  %v1164_v36 = vld [vmem:[%s1272_s20 + $0x34] ss:$8 sps:$4 sm:$0xff]   ;;  %v1166_v38 = vld [vmem:[%s1272_s20 + $0x30] ss:$8 sps:$4 sm:$0xff]   ;;  %v1169_v40 = vld [vmem:[%s1272_s20 + $0x44] ss:$8 sps:$4 sm:$0xff]  }
  0x14   : > { %374 = vmatprep.subr.bf16.mxu0 %v1184_v1  ;;  %550 = vmatprep.subr.bf16.mxu1 %v1184_v1  ;;  %v1171_v42 = vld [vmem:[%s1272_s20 + $0x40] ss:$8 sps:$4 sm:$0xff]  }
  0x17   : > { %375 = vmatpush1.bf16.msra.mxu0 %v1133_v9  ;;  %551 = vmatpush1.bf16.msra.mxu1 %v1134_v10 }
  0x18   : > { %376 = vmatprep.subr.bf16.mxu0 %v1184_v1  ;;  %552 = vmatprep.subr.bf16.mxu1 %v1184_v1 }
  0x1b   : > { %377 = vmatpush1.bf16.msra.mxu0 %v1135_v11  ;;  %553 = vmatpush1.bf16.msra.mxu1 %v1136_v12 }
  0x1c   : > { %378 = vmatprep.subr.bf16.mxu0 %v1184_v1  ;;  %554 = vmatprep.subr.bf16.mxu1 %v1184_v1 }
  0x1f   : > { %379 = vmatpush1.bf16.msra.mxu0 %v1137_v13  ;;  %555 = vmatpush1.bf16.msra.mxu1 %v1138_v14 }
  0x20   : > { %380 = vmatprep.subr.bf16.mxu0 %v1184_v1  ;;  %556 = vmatprep.subr.bf16.mxu1 %v1184_v1 }
  0x23   : > { %381 = vmatpush1.bf16.msra.mxu0 %v1139_v16  ;;  %557 = vmatpush1.bf16.msra.mxu1 %v1140_v17 }
  0x24   : > { %382 = vmatprep.subr.bf16.mxu0 %v1184_v1  ;;  %558 = vmatprep.subr.bf16.mxu1 %v1184_v1 }
  0x27   : > { %383 = vmatpush1.bf16.msra.mxu0 %v1141_v18  ;;  %559 = vmatpush1.bf16.msra.mxu1 %v1142_v19 }
  0x28   : > { %384 = vmatprep.subr.bf16.mxu0 %v1184_v1  ;;  %560 = vmatprep.subr.bf16.mxu1 %v1184_v1 }
  0x2b   : > { %385 = vmatpush1.bf16.msra.mxu0 %v1143_v20  ;;  %561 = vmatpush1.bf16.msra.mxu1 %v1144_v21 }
  0x2c   : > { %386 = vmatprep.subr.bf16.mxu0 %v1184_v1  ;;  %562 = vmatprep.subr.bf16.mxu1 %v1184_v1 }
  0x2f   : > { %387 = vmatpush1.bf16.msra.mxu0 %v1145_v22  ;;  %563 = vmatpush1.bf16.msra.mxu1 %v1146_v23 }
  0x30   : > { %388 = vmatprep.subr.bf16.mxu0 %v1184_v1  ;;  %564 = vmatprep.subr.bf16.mxu1 %v1184_v1 }
  0x33   : > { %389 = vmatpush1.bf16.msra.mxu0 %v1147_v24  ;;  %565 = vmatpush1.bf16.msra.mxu1 %v1148_v25 }
  0x34   : > { %718 = vmatprep.subr.bf16.mxu0 %v1184_v1  ;;  %1091 = vmatprep.subr.bf16.mxu1 %v1184_v1 }
  0x36   : > { %399 = vmatmul.mubr.bf16.vlgmr.msra.gmra.mrb[0].mxu0 %v1330_v26  ;;  %575 = vmatmul.mubr.bf16.vlgmr.msra.gmra.mrb[0].mxu1 %v1330_v26 }
  0x37   : > { %719 = vmatpush1.bf16.msra.mxu0 %v1152_v27  ;;  %1103 = vmatpush1.bf16.msra.mxu1 %v1152_v27 }
  0x38   : > { %720 = vmatprep.subr.bf16.mxu0 %v1184_v1  ;;  %1092 = vmatprep.subr.bf16.mxu1 %v1184_v1 }
  0x39   : > { %1002 = vmatprep.mubr.msk.bf16.mxu1 %vm350_vm0, %v1338_v28  ;;  %961 = vmatprep.mubr.msk.bf16.mxu0 %vm350_vm0, %v1338_v28 }
  0x3b   : > { %721 = vmatpush1.bf16.msra.mxu0 %v1153_v29  ;;  %1104 = vmatpush1.bf16.msra.mxu1 %v1153_v29 }
  0x3c   : > { %722 = vmatprep.subr.bf16.mxu0 %v1184_v1  ;;  %1093 = vmatprep.subr.bf16.mxu1 %v1184_v1 }
  0x3e   : > { %407 = vmatmul.mubr.bf16.gmra.mrb[4].mxu0 %v1352_v30  ;;  %582 = vmatmul.mubr.bf16.gmra.mrb[4].mxu1 %v1352_v30 }
  0x3f   : > { %723 = vmatpush1.bf16.msra.mxu0 %v1157_v31  ;;  %1105 = vmatpush1.bf16.msra.mxu1 %v1157_v31 }
  0x40   : > { %724 = vmatprep.subr.bf16.mxu0 %v1184_v1  ;;  %1094 = vmatprep.subr.bf16.mxu1 %v1184_v1 }
  0x41   : > { %1003 = vmatprep.mubr.msk.bf16.mxu1 %vm350_vm0, %v1360_v32  ;;  %962 = vmatprep.mubr.msk.bf16.mxu0 %vm350_vm0, %v1360_v32 }
  0x43   : > { %725 = vmatpush1.bf16.msra.mxu0 %v1158_v33  ;;  %1106 = vmatpush1.bf16.msra.mxu1 %v1158_v33  ;;  %v1047_v33 = vld [vmem:[%s1467_s2] ss:$0 sm:$0xff] }
  0x44   : > { %726 = vmatprep.subr.bf16.mxu0 %v1184_v1  ;;  %1095 = vmatprep.subr.bf16.mxu1 %v1184_v1 }
  0x46   : > { %415 = vmatmul.mubr.bf16.gmra.mrb[8].mxu0 %v1374_v34  ;;  %590 = vmatmul.mubr.bf16.gmra.mrb[8].mxu1 %v1374_v34 }
  0x47   : > { %727 = vmatpush1.bf16.msra.mxu0 %v1162_v35  ;;  %1107 = vmatpush1.bf16.msra.mxu1 %v1162_v35 }
  0x48   : > { %728 = vmatprep.subr.bf16.mxu0 %v1184_v1  ;;  %1096 = vmatprep.subr.bf16.mxu1 %v1184_v1 }
  0x49   : > { %1004 = vmatprep.mubr.msk.bf16.mxu1 %vm350_vm0, %v1164_v36  ;;  %963 = vmatprep.mubr.msk.bf16.mxu0 %vm350_vm0, %v1164_v36 }
  0x4b   : > { %729 = vmatpush1.bf16.msra.mxu0 %v1163_v37  ;;  %1108 = vmatpush1.bf16.msra.mxu1 %v1163_v37 }
  0x4c   : > { %730 = vmatprep.subr.bf16.mxu0 %v1184_v1  ;;  %1097 = vmatprep.subr.bf16.mxu1 %v1184_v1 }
  0x4e   : > { %423 = vmatmul.mubr.bf16.gmra.mrb[12].mxu0 %v1166_v38  ;;  %598 = vmatmul.mubr.bf16.gmra.mrb[12].mxu1 %v1166_v38 }
  0x4f   : > { %731 = vmatpush1.bf16.msra.mxu0 %v1167_v39  ;;  %1109 = vmatpush1.bf16.msra.mxu1 %v1167_v39 }
  0x50   : > { %732 = vmatprep.subr.bf16.mxu0 %v1184_v1  ;;  %1098 = vmatprep.subr.bf16.mxu1 %v1184_v1 }
  0x51   : > { %1005 = vmatprep.mubr.msk.bf16.mxu1 %vm350_vm0, %v1169_v40  ;;  %964 = vmatprep.mubr.msk.bf16.mxu0 %vm350_vm0, %v1169_v40 }
  0x53   : > { %733 = vmatpush1.bf16.msra.mxu0 %v1168_v41  ;;  %1110 = vmatpush1.bf16.msra.mxu1 %v1168_v41 }
  0x54   : > { %734 = vmatprep.subr.bf16.mxu0 %v1184_v1  ;;  %1099 = vmatprep.subr.bf16.mxu1 %v1184_v1 }
  0x56   : > { %431 = vmatmul.mubr.bf16.gmra.mrb[16].mxu0 %v1171_v42  ;;  %606 = vmatmul.mubr.bf16.gmra.mrb[16].mxu1 %v1171_v42 }
  0x57   : > { %735 = vmatpush1.bf16.msra.mxu0 %v1172_v43  ;;  %1111 = vmatpush1.bf16.msra.mxu1 %v1172_v43 }
  0x58   : > { %736 = vmatprep.subr.bf16.mxu0 %v1184_v1  ;;  %1100 = vmatprep.subr.bf16.mxu1 %v1184_v1 }
  0x59   : > { %1042 = vmatprep.mubr.msk.bf16.mxu0 %vm350_vm0, %v1283_v15  ;;  %1045 = vmatprep.mubr.msk.bf16.mxu1 %vm350_vm0, %v1164_v36 }
  0x5b   : > { %737 = vmatpush1.bf16.msra.mxu0 %v1173_v44  ;;  %1112 = vmatpush1.bf16.msra.mxu1 %v1173_v44 }
  0x5c   : > { %738 = vmatprep.subr.bf16.mxu0 %v1184_v1  ;;  %1101 = vmatprep.subr.bf16.mxu1 %v1184_v1 }
  0x5f   : > { %739 = vmatpush1.bf16.msra.mxu0 %v1174_v45  ;;  %1113 = vmatpush1.bf16.msra.mxu1 %v1174_v45 }
  0x60   : > { %740 = vmatprep.subr.bf16.mxu0 %v1184_v1  ;;  %1102 = vmatprep.subr.bf16.mxu1 %v1184_v1 }
  0x63   : > { %741 = vmatpush1.bf16.msra.mxu0 %v1175_v46  ;;  %1114 = vmatpush1.bf16.msra.mxu1 %v1175_v46 }
  0x66   : > { %751 = vmatmul.mubr.bf16.vlgmr.msra.gmra.mrb[20].mxu0 %v1330_v26  ;;  %773 = vmatmul.mubr.bf16.vlgmr.msra.gmra.mrb[20].mxu1 %v1166_v38  ;;  %v1048_v38 = vld [vmem:[%s1468_s3] ss:$0 sm:$0xff] }
  0x67   : > { %1043 = vmatprep.mubr.msk.bf16.mxu0 %vm350_vm0, %v1338_v28  ;;  %1046 = vmatprep.mubr.msk.bf16.mxu1 %vm350_vm0, %v1169_v40 }
  0x6e   : > { %757 = vmatmul.mubr.bf16.gmra.mrb[24].mxu0 %v1352_v30  ;;  %781 = vmatmul.mubr.bf16.gmra.mrb[24].mxu1 %v1171_v42 }
  0x6f   : > { %1044 = vmatprep.mubr.msk.bf16.mxu0 %vm350_vm0, %v1360_v32 }
  0x76   : > { %765 = vmatmul.mubr.bf16.gmra.mrb[28].mxu0 %v1374_v34 }
 0x109   : > { %v400_v47 = vpop.f32.mrb[0].mxu0  ;;  %v576_v48 = vpop.f32.mrb[0].mxu1 }
 0x10a   : > { %v402_v49 = vpop.f32.mrb[1].mxu0  ;;  %v577_v50 = vpop.f32.mrb[1].mxu1 }
 0x10b   : > { %v403_v51 = vpop.f32.mrb[2].mxu0  ;;  %v578_v52 = vpop.f32.mrb[2].mxu1 }
 0x10c   : > { %v405_v53 = vpop.f32.mrb[3].mxu0  ;;  %v613_v54 = vadd.f32 %v578_v52, %v400_v47  ;;  %v580_v55 = vpop.f32.mrb[3].mxu1 }
 0x111   : > { %v408_v56 = vpop.f32.mrb[4].mxu0  ;;  %v583_v57 = vpop.f32.mrb[4].mxu1 }
 0x112   : > { %v410_v58 = vpop.f32.mrb[5].mxu0  ;;  %v1437_v59 = vadd.f32 %v583_v57, %v403_v51  ;;  %v585_v60 = vpop.f32.mrb[5].mxu1 }
 0x113   : > { %v411_v61 = vpop.f32.mrb[6].mxu0  ;;  %v586_v62 = vpop.f32.mrb[6].mxu1 }
 0x114   : > { %v413_v63 = vpop.f32.mrb[7].mxu0  ;;  %v1439_v0 = vadd.f32 %v586_v62, %v408_v56  ;;  %v588_v1 = vpop.f32.mrb[7].mxu1 }
 0x119   : > { %v416_v2 = vpop.f32.mrb[8].mxu0  ;;  %v591_v3 = vpop.f32.mrb[8].mxu1 }
 0x11a   : > { %v418_v4 = vpop.f32.mrb[9].mxu0  ;;  %v1441_v5 = vadd.f32 %v591_v3, %v411_v61  ;;  %v593_v6 = vpop.f32.mrb[9].mxu1 }
 0x11b   : > { %v419_v7 = vpop.f32.mrb[10].mxu0  ;;  %v594_v8 = vpop.f32.mrb[10].mxu1 }
 0x11c   : > { %v421_v9 = vpop.f32.mrb[11].mxu0  ;;  %v617_v10 = vadd.f32 %v594_v8, %v416_v2  ;;  %v596_v11 = vpop.f32.mrb[11].mxu1 }
 0x121   : > { %v424_v12 = vpop.f32.mrb[12].mxu0  ;;  %v599_v13 = vpop.f32.mrb[12].mxu1 }
 0x122   : > { %v426_v14 = vpop.f32.mrb[13].mxu0  ;;  %v618_v15 = vadd.f32 %v599_v13, %v419_v7  ;;  %v601_v16 = vpop.f32.mrb[13].mxu1 }
 0x123   : > { %v427_v17 = vpop.f32.mrb[14].mxu0  ;;  %v602_v18 = vpop.f32.mrb[14].mxu1 }
 0x124   : > { %v429_v19 = vpop.f32.mrb[15].mxu0  ;;  %v619_v20 = vadd.f32 %v602_v18, %v424_v12  ;;  %v604_v21 = vpop.f32.mrb[15].mxu1 }
 0x129   : > { %v432_v22 = vpop.f32.mrb[16].mxu0  ;;  %v607_v23 = vpop.f32.mrb[16].mxu1 }
 0x12a   : > { %v433_v24 = vpop.f32.mrb[17].mxu0  ;;  %v620_v25 = vadd.f32 %v607_v23, %v427_v17  ;;  %v609_v27 = vpop.f32.mrb[17].mxu1 }
 0x12b   : > { %v434_v26 = vpop.f32.mrb[18].mxu0  ;;  %v610_v29 = vpop.f32.mrb[18].mxu1 }
 0x12c   : > { %v435_v28 = vpop.f32.mrb[19].mxu0  ;;  %v611_v30 = vpop.f32.mrb[19].mxu1 }
 0x139   : > { %v752_v31 = vpop.f32.mrb[20].mxu0  ;;  %v774_v32 = vpop.f32.mrb[20].mxu1 }
 0x13a   : > { %v753_v34 = vpop.f32.mrb[21].mxu0  ;;  %v793_v35 = vadd.f32 %v774_v32, %v617_v10  ;;  %v776_v36 = vpop.f32.mrb[21].mxu1 }
 0x13b   : > { %v754_v37 = vpop.f32.mrb[22].mxu0  ;;  %v777_v39 = vpop.f32.mrb[22].mxu1 }
 0x13c   : > { %v755_v40 = vpop.f32.mrb[23].mxu0  ;;  %v808_v41 = vmul.f32 %v1047_v33, %v793_v35  ;;  %v794_v42 = vadd.f32 %v777_v39, %v618_v15  ;;  %v779_v43 = vpop.f32.mrb[23].mxu1 }
 0x13e   : > { %v823_v44 = vadd.f32 %v1048_v38, %v808_v41  ;;  %v809_v45 = vmul.f32 %v1047_v33, %v794_v42 }
 0x140   : > { %v824_v46 = vadd.f32 %v1048_v38, %v809_v45  ;;  %v831_v51 = vmax.f32 %v823_v44, 0.0 }
 0x141   : > { %v758_v47 = vpop.f32.mrb[24].mxu0  ;;  %v782_v49 = vpop.f32.mrb[24].mxu1 }
 0x142   : > { %v789_v48 = vadd.f32 %v758_v47, %v613_v54  ;;  %v760_v50 = vpop.f32.mrb[25].mxu0  ;;  %v832_v52 = vmax.f32 %v824_v46, 0.0  ;;  %v795_v53 = vadd.f32 %v782_v49, %v619_v20  ;;  %v784_v55 = vpop.f32.mrb[25].mxu1 }
 0x143   : > { %v761_v56 = vpop.f32.mrb[26].mxu0  ;;  %v785_v60 = vpop.f32.mrb[26].mxu1 }
 0x144   : > { %v804_v57 = vmul.f32 %v1047_v33, %v789_v48  ;;  %v790_v58 = vadd.f32 %v761_v56, %v1437_v59  ;;  %v763_v61 = vpop.f32.mrb[27].mxu0  ;;  %v1081_v62 = vpack.c.bf16 %v832_v52, %v831_v51  ;;  %v810_v54 = vmul.f32 %v1047_v33, %v795_v53  ;;  %v787_v1 = vpop.f32.mrb[27].mxu1 }
 0x145   : > { %v796_v63 = vadd.f32 %v785_v60, %v620_v25 }
 0x146   : > { %v819_v2 = vadd.f32 %v1048_v38, %v804_v57  ;;  %v805_v3 = vmul.f32 %v1047_v33, %v790_v58  ;;  %1089 = vst [vmem:[%s1453_s29 + $0x10] sm:$0xff] %v1081_v62   ;;  %v825_v4 = vadd.f32 %v1048_v38, %v810_v54 }
 0x147   : > { %v811_v6 = vmul.f32 %v1047_v33, %v796_v63 }
 0x148   : > { %v820_v7 = vadd.f32 %v1048_v38, %v805_v3  ;;  %v827_v10 = vmax.f32 %v819_v2, 0.0  ;;  %v833_v13 = vmax.f32 %v825_v4, 0.0 }
 0x149   : > { %v826_v8 = vadd.f32 %v1048_v38, %v811_v6  ;;  %v766_v9 = vpop.f32.mrb[28].mxu0 }
 0x14a   : > { %v828_v11 = vmax.f32 %v820_v7, 0.0  ;;  %v791_v59 = vadd.f32 %v766_v9, %v1439_v0  ;;  %v768_v12 = vpop.f32.mrb[29].mxu0 }
 0x14b   : > { %v834_v14 = vmax.f32 %v826_v8, 0.0  ;;  %v769_v15 = vpop.f32.mrb[30].mxu0 }
 0x14c   : > { %v1071_v16 = vpack.c.bf16 %v828_v11, %v827_v10  ;;  %v806_v17 = vmul.f32 %v1047_v33, %v791_v59  ;;  %v792_v18 = vadd.f32 %v769_v15, %v1441_v5  ;;  %v771_v19 = vpop.f32.mrb[31].mxu0 }
 0x14d   : > { %v1086_v20 = vpack.c.bf16 %v834_v14, %v833_v13 }
 0x14e   : > { %1072 = vst [vmem:[%s1453_s29] sm:$0xff] %v1071_v16   ;;  %v821_v21 = vadd.f32 %v1048_v38, %v806_v17  ;;  %v807_v22 = vmul.f32 %v1047_v33, %v792_v18 }
 0x14f   : > { %1090 = vst [vmem:[%s1453_s29 + $0x18] sm:$0xff] %v1086_v20  }
 0x150   : > { %v822_v23 = vadd.f32 %v1048_v38, %v807_v22  ;;  %v829_v24 = vmax.f32 %v821_v21, 0.0 }
 0x152   : > { %v830_v25 = vmax.f32 %v822_v23, 0.0 }
 0x154   : > { %v1076_v26 = vpack.c.bf16 %v830_v25, %v829_v24 }
 0x156   : > { %1088 = vst [vmem:[%s1453_s29 + $0x8] sm:$0xff] %v1076_v26  }
 0x157 PF: > { %s14_s15 = sadd.s32 1, %s1182_s15  }
 0x158   : > { %p11_p4 = scmp.ge.s32.totalorder %s14_s15, 4  }
 0x15a   :  { %13 = sbr.rel (!%p11_p4) target bundleno = 1 (0x1), region = 68 }

// kernel: ocrnet_forward.12
= control target key start
LH: loop header
LB: loop body
LE: loop exit
PB: predicated region body
PF: predicated region fallthrough
CT: control target
= control target key end

     0   :  { %v558_v0 = vmov 0.0   ;;  %vm559_vm0 = vmmov 0   ;;  %vm204_vm1 = vcmask 523264   ;;  %vm402_vm2 = vcmask 519168   ;;  %s743_s1 = inlined_call_operand.vmem [shape: bf16[128,64], index: 1, kind: input, shape index: {}]   ;;  %s744_s4 = inlined_call_operand.vmem [shape: bf16[64,64], index: 4, kind: input, shape index: {}]   ;;  %s745_s0 = inlined_call_operand.vmem [shape: bf16[10,128], index: 0, kind: input, shape index: {}]   ;;  %s746_s7 = inlined_call_operand.vmem [shape: bf16[128,64], index: 7, kind: input, shape index: {}]   ;;  %s747_s2 = inlined_call_operand.vmem [shape: f32[1,64], index: 2, kind: input, shape index: {}]   ;;  %s748_s3 = inlined_call_operand.vmem [shape: f32[1,64], index: 3, kind: input, shape index: {}]   ;;  %s749_s5 = inlined_call_operand.vmem [shape: f32[1,64], index: 5, kind: input, shape index: {}]   ;;  %s750_s6 = inlined_call_operand.vmem [shape: f32[1,64], index: 6, kind: input, shape index: {}]   ;;  %s751_s10 = inlined_call_operand.vmem [shape: bf16[10,64], index: 10, kind: output, shape index: {0}]   ;;  %s752_s8 = inlined_call_operand.vmem [shape: f32[1,64], index: 8, kind: input, shape index: {}]   ;;  %s753_s9 = inlined_call_operand.vmem [shape: f32[1,64], index: 9, kind: input, shape index: {}]   ;;  %s754_s11 = inlined_call_operand.vmem [shape: bf16[10,64], index: 11, kind: output, shape index: {1}]  }
   0x1   :  { %483 = vmatprep.subr.bf16.mxu0 %v558_v0  ;;  %v537_v1 = vld [vmem:[%s743_s1] sm:$0xff]   ;;  %499 = vmatprep.mubr.msk.bf16.mxu0 %vm559_vm0, %v558_v0  ;;  %v538_v2 = vld [vmem:[%s743_s1 + $0x8] sm:$0xff]   ;;  %v539_v3 = vld [vmem:[%s743_s1 + $0x10] sm:$0xff]   ;;  %vm404_vm3 = vcmask 516096  }
   0x2   :  { %503 = vmatprep.subr.bf16.mxu1 %v558_v0  ;;  %511 = vmatprep.mubr.msk.bf16.mxu1 %vm559_vm0, %v558_v0  ;;  %v540_v4 = vld [vmem:[%s743_s1 + $0x18] sm:$0xff]   ;;  %v546_v5 = vld [vmem:[%s744_s4] sm:$0xff]   ;;  %v547_v6 = vld [vmem:[%s744_s4 + $0x8] sm:$0xff]  }
   0x3   :  { %484 = vmatpush3.bf16.msra.mxu0 %v537_v1  ;;  %504 = vmatpush3.bf16.msra.mxu1 %v546_v5  ;;  %v541_v7 = vld [vmem:[%s743_s1 + $0x20] sm:$0xff]   ;;  %v542_v8 = vld [vmem:[%s743_s1 + $0x28] sm:$0xff]   ;;  %v543_v9 = vld [vmem:[%s743_s1 + $0x30] sm:$0xff]  }
   0x4   :  { %485 = vmatprep.subr.bf16.mxu0 %v558_v0  ;;  %505 = vmatprep.subr.bf16.mxu1 %v558_v0  ;;  %v544_v10 = vld [vmem:[%s743_s1 + $0x38] sm:$0xff]   ;;  %v545_v11 = vld [vmem:[%s745_s0] sm:$0x1f]   ;;  %v548_v12 = vld [vmem:[%s744_s4 + $0x10] sm:$0xff]  }
   0x5   :  { %v549_v13 = vld [vmem:[%s744_s4 + $0x18] sm:$0xff]   ;;  %v433_v14 = vld [vmem:[%s747_s2] ss:$0 sm:$0xff]  ;;  %v551_v28 = vld [vmem:[%s746_s7 + $0x8] sm:$0xff]  }
   0x6   :  { %v434_v16 = vld [vmem:[%s748_s3] ss:$0 sm:$0xff]  ;;  %v552_v29 = vld [vmem:[%s746_s7 + $0x10] sm:$0xff]   ;;  %v553_v30 = vld [vmem:[%s746_s7 + $0x18] sm:$0xff]  }
   0x7   :  { %486 = vmatpush3.bf16.msra.mxu0 %v538_v2  ;;  %506 = vmatpush3.bf16.msra.mxu1 %v547_v6  ;;  %v550_v26 = vld [vmem:[%s746_s7] sm:$0xff]   ;;  %v555_v32 = vld [vmem:[%s746_s7 + $0x28] sm:$0xff]   ;;  %v556_v33 = vld [vmem:[%s746_s7 + $0x30] sm:$0xff]  }
   0x8   :  { %487 = vmatprep.subr.bf16.mxu0 %v558_v0  ;;  %507 = vmatprep.subr.bf16.mxu1 %v558_v0  ;;  %v554_v31 = vld [vmem:[%s746_s7 + $0x20] sm:$0xff]   ;;  %v557_v34 = vld [vmem:[%s746_s7 + $0x38] sm:$0xff]  }
   0x9   :  { %v440_v35 = vld [vmem:[%s749_s5] ss:$0 sm:$0xff] }
   0xa   :  { %v441_v37 = vld [vmem:[%s750_s6] ss:$0 sm:$0xff] }
   0xb   :  { %488 = vmatpush3.bf16.msra.mxu0 %v539_v3  ;;  %508 = vmatpush3.bf16.msra.mxu1 %v548_v12  ;;  %v450_v49 = vld [vmem:[%s752_s8] ss:$0 sm:$0xff] }
   0xc   :  { %489 = vmatprep.subr.bf16.mxu0 %v558_v0  ;;  %509 = vmatprep.subr.bf16.mxu1 %v558_v0  ;;  %v451_v51 = vld [vmem:[%s753_s9] ss:$0 sm:$0xff] }
   0xf   :  { %490 = vmatpush3.bf16.msra.mxu0 %v540_v4  ;;  %510 = vmatpush3.bf16.msra.mxu1 %v549_v13 }
  0x10   :  { %491 = vmatprep.subr.bf16.mxu0 %v558_v0  ;;  %515 = vmatprep.subr.bf16.mxu1 %v558_v0 }
  0x13   :  { %492 = vmatpush3.bf16.msra.mxu0 %v541_v7 }
  0x14   :  { %493 = vmatprep.subr.bf16.mxu0 %v558_v0 }
  0x17   :  { %494 = vmatpush3.bf16.msra.mxu0 %v542_v8 }
  0x18   :  { %495 = vmatprep.subr.bf16.mxu0 %v558_v0 }
  0x1b   :  { %496 = vmatpush3.bf16.msra.mxu0 %v543_v9 }
  0x1c   :  { %497 = vmatprep.subr.bf16.mxu0 %v558_v0 }
  0x1f   :  { %498 = vmatpush3.bf16.msra.mxu0 %v544_v10 }
  0x22   :  { %500 = vmatmul.mubr.bf16.vlgmr.msra.gmra.mrb[0].mxu0 %v545_v11 }
  0xf5   :  { %v144_v15 = vpop.f32.mrb[0].mxu0 }
  0xf6   :  { %v158_v17 = vmul.f32 %v433_v14, %v144_v15  ;;  %v501_v18 = vpop.f32.mrb[1].mxu0 }
  0xf7   :  { %v147_v19 = vpop.f32.mrb[2].mxu0 }
  0xf8   :  { %v167_v20 = vadd.f32 %v434_v16, %v158_v17  ;;  %v159_v21 = vmul.f32 %v433_v14, %v147_v19  ;;  %v502_v22 = vpop.f32.mrb[3].mxu0 }
  0xfa   :  { %v168_v23 = vadd.f32 %v434_v16, %v159_v21  ;;  %v169_v24 = vmax.f32 %v167_v20, 0.0 }
  0xfc   :  { %v170_v25 = vmax.f32 %v168_v23, 0.0 }
  0xfe   :  { %v171_v27 = vpack.c.bf16 %v170_v25, %v169_v24 }
 0x100   :  { %512 = vmatmul.mubr.msk.bf16.vlgmr.msra.gmra.mrb[0].mxu1 %vm204_vm1, %v171_v27 }
 0x101   :  { %516 = vmatpush3.bf16.msra.mxu1 %v550_v26  ;;  %531 = vmatprep.mubr.msk.bf16.mxu1 %vm559_vm0, %v558_v0 }
 0x102   :  { %517 = vmatprep.subr.bf16.mxu1 %v558_v0 }
 0x105   :  { %518 = vmatpush3.bf16.msra.mxu1 %v551_v28 }
 0x106   :  { %519 = vmatprep.subr.bf16.mxu1 %v558_v0 }
 0x109   :  { %520 = vmatpush3.bf16.msra.mxu1 %v552_v29 }
 0x10a   :  { %521 = vmatprep.subr.bf16.mxu1 %v558_v0 }
 0x10d   :  { %522 = vmatpush3.bf16.msra.mxu1 %v553_v30 }
 0x10e   :  { %523 = vmatprep.subr.bf16.mxu1 %v558_v0 }
 0x111   :  { %524 = vmatpush3.bf16.msra.mxu1 %v554_v31 }
 0x112   :  { %525 = vmatprep.subr.bf16.mxu1 %v558_v0 }
 0x115   :  { %526 = vmatpush3.bf16.msra.mxu1 %v555_v32 }
 0x116   :  { %527 = vmatprep.subr.bf16.mxu1 %v558_v0 }
 0x119   :  { %528 = vmatpush3.bf16.msra.mxu1 %v556_v33 }
 0x11a   :  { %529 = vmatprep.subr.bf16.mxu1 %v558_v0 }
 0x11d   :  { %530 = vmatpush3.bf16.msra.mxu1 %v557_v34 }
 0x120   :  { %532 = vmatmul.mubr.bf16.vlgmr.msra.gmra.mrb[4].mxu1 %v545_v11 }
 0x1d3   :  { %v242_v36 = vpop.f32.mrb[0].mxu1 }
 0x1d4   :  { %v256_v38 = vmul.f32 %v440_v35, %v242_v36  ;;  %v513_v39 = vpop.f32.mrb[1].mxu1 }
 0x1d5   :  { %v245_v40 = vpop.f32.mrb[2].mxu1 }
 0x1d6   :  { %v265_v41 = vadd.f32 %v441_v37, %v256_v38  ;;  %v257_v42 = vmul.f32 %v440_v35, %v245_v40  ;;  %v514_v43 = vpop.f32.mrb[3].mxu1 }
 0x1d8   :  { %v267_v44 = vmax.f32 %v265_v41, 0.0  ;;  %v266_v45 = vadd.f32 %v441_v37, %v257_v42 }
 0x1da   :  { %v456_v46 = vpack.c.bf16 %v267_v44, %v267_v44  ;;  %v268_v47 = vmax.f32 %v266_v45, 0.0 }
 0x1dc   :  { %403 = vst.msk [vmem:[%s751_s10] sm:$0xf] %vm402_vm2, %v456_v46  ;;  %v457_v48 = vpack.c.bf16 %v268_v47, %v268_v47 }
 0x1de   :  { %405 = vst.msk [vmem:[%s751_s10 + $0x4] sm:$0x1] %vm404_vm3, %v457_v48 }
 0x1f3   :  { %v367_v50 = vpop.f32.mrb[4].mxu1 }
 0x1f4   :  { %v381_v52 = vmul.f32 %v450_v49, %v367_v50  ;;  %v533_v53 = vpop.f32.mrb[5].mxu1 }
 0x1f5   :  { %v370_v54 = vpop.f32.mrb[6].mxu1 }
 0x1f6   :  { %v390_v55 = vadd.f32 %v451_v51, %v381_v52  ;;  %v382_v56 = vmul.f32 %v450_v49, %v370_v54  ;;  %v534_v57 = vpop.f32.mrb[7].mxu1 }
 0x1f8   :  { %v392_v58 = vmax.f32 %v390_v55, 0.0  ;;  %v391_v59 = vadd.f32 %v451_v51, %v382_v56 }
 0x1fa   :  { %v458_v60 = vpack.c.bf16 %v392_v58, %v392_v58  ;;  %v393_v61 = vmax.f32 %v391_v59, 0.0 }
 0x1fc   :  { %414 = vst.msk [vmem:[%s754_s11] sm:$0xf] %vm402_vm2, %v458_v60  ;;  %v459_v62 = vpack.c.bf16 %v393_v61, %v393_v61 }
 0x1fe   :  { %415 = vst.msk [vmem:[%s754_s11 + $0x4] sm:$0x1] %vm404_vm3, %v459_v62 }

// kernel: ocrnet_forward.11
= control target key start
LH: loop header
LB: loop body
LE: loop exit
PB: predicated region body
PF: predicated region fallthrough
CT: control target
= control target key end

     0   :  { %vm354_vm0 = vcmask 523264   ;;  %vm602_vm1 = vcmask 519168   ;;  %s1047_s1 = inlined_call_operand.vmem [shape: bf16[128,64], index: 1, kind: input, shape index: {}]   ;;  %s1048_s0 = inlined_call_operand.vmem [shape: bf16[128,128], index: 0, kind: input, shape index: {}]   ;;  %s1049_s4 = inlined_call_operand.vmem [shape: bf16[64,64], index: 4, kind: input, shape index: {}]   ;;  %s1050_s2 = inlined_call_operand.vmem [shape: f32[1,64], index: 2, kind: input, shape index: {}]   ;;  %s1051_s3 = inlined_call_operand.vmem [shape: f32[1,64], index: 3, kind: input, shape index: {}]   ;;  %s1052_s5 = inlined_call_operand.vmem [shape: f32[1,64], index: 5, kind: input, shape index: {}]   ;;  %s1053_s6 = inlined_call_operand.vmem [shape: f32[1,64], index: 6, kind: input, shape index: {}]   ;;  %s1054_s7 = inlined_call_operand.vmem [shape: bf16[128,64], index: 7, kind: output, shape index: {}]  }
   0x1   :  { %v771_v0 = vld [vmem:[%s1047_s1] sm:$0xff]   ;;  %v772_v1 = vld [vmem:[%s1047_s1 + $0x8] sm:$0xff]   ;;  %v773_v2 = vld [vmem:[%s1047_s1 + $0x10] sm:$0xff]  }
   0x2   :  { %715 = vmatprep.subr.bf16.mxu0 %v771_v0  ;;  %v774_v3 = vld [vmem:[%s1047_s1 + $0x18] sm:$0xff]   ;;  %v779_v4 = vld [vmem:[%s1048_s0] sm:$0xff]   ;;  %v776_v6 = vld [vmem:[%s1047_s1 + $0x28] sm:$0xff]  }
   0x3   :  { %716 = vmatpush3.bf16.msra.mxu0 %v771_v0  ;;  %731 = vmatprep.mubr.bf16.mxu0 %v779_v4  ;;  %v775_v5 = vld [vmem:[%s1047_s1 + $0x20] sm:$0xff]   ;;  %v777_v8 = vld [vmem:[%s1047_s1 + $0x30] sm:$0xff]   ;;  %v778_v9 = vld [vmem:[%s1047_s1 + $0x38] sm:$0xff]  }
   0x4   :  { %717 = vmatprep.subr.bf16.mxu0 %v772_v1  ;;  %v787_v7 = vld [vmem:[%s1049_s4] sm:$0xff]   ;;  %v780_v10 = vld [vmem:[%s1048_s0 + $0x8] sm:$0xff]   ;;  %v781_v11 = vld [vmem:[%s1048_s0 + $0x10] sm:$0xff]  }
   0x5   :  { %747 = vmatprep.subr.bf16.mxu1 %v787_v7  ;;  %v782_v12 = vld [vmem:[%s1048_s0 + $0x18] sm:$0xff]   ;;  %v783_v13 = vld [vmem:[%s1048_s0 + $0x20] sm:$0xff]   ;;  %v784_v14 = vld [vmem:[%s1048_s0 + $0x28] sm:$0xff]  }
   0x6   :  { %748 = vmatpush3.bf16.msra.mxu1 %v787_v7  ;;  %v785_v15 = vld [vmem:[%s1048_s0 + $0x30] sm:$0xff]   ;;  %v786_v16 = vld [vmem:[%s1048_s0 + $0x38] sm:$0xff]   ;;  %v788_v17 = vld [vmem:[%s1049_s4 + $0x8] sm:$0xff]  }
   0x7   :  { %718 = vmatpush3.bf16.msra.mxu0 %v772_v1  ;;  %749 = vmatprep.subr.bf16.mxu1 %v788_v17  ;;  %v789_v18 = vld [vmem:[%s1049_s4 + $0x10] sm:$0xff]   ;;  %v790_v19 = vld [vmem:[%s1049_s4 + $0x18] sm:$0xff]   ;;  %v894_v20 = vld [vmem:[%s1050_s2] ss:$0 sm:$0xff] }
   0x8   :  { %719 = vmatprep.subr.bf16.mxu0 %v773_v2  ;;  %v899_v22 = vld [vmem:[%s1051_s3] ss:$0 sm:$0xff] }
   0xa   :  { %750 = vmatpush3.bf16.msra.mxu1 %v788_v17 }
   0xb   :  { %720 = vmatpush3.bf16.msra.mxu0 %v773_v2  ;;  %751 = vmatprep.subr.bf16.mxu1 %v789_v18 }
   0xc   :  { %721 = vmatprep.subr.bf16.mxu0 %v774_v3 }
   0xe   :  { %752 = vmatpush3.bf16.msra.mxu1 %v789_v18 }
   0xf   :  { %722 = vmatpush3.bf16.msra.mxu0 %v774_v3  ;;  %753 = vmatprep.subr.bf16.mxu1 %v790_v19 }
  0x10   :  { %723 = vmatprep.subr.bf16.mxu0 %v775_v5 }
  0x12   :  { %754 = vmatpush3.bf16.msra.mxu1 %v790_v19 }
  0x13   :  { %724 = vmatpush3.bf16.msra.mxu0 %v775_v5 }
  0x14   :  { %725 = vmatprep.subr.bf16.mxu0 %v776_v6 }
  0x17   :  { %726 = vmatpush3.bf16.msra.mxu0 %v776_v6 }
  0x18   :  { %727 = vmatprep.subr.bf16.mxu0 %v777_v8 }
  0x1b   :  { %728 = vmatpush3.bf16.msra.mxu0 %v777_v8 }
  0x1c   :  { %729 = vmatprep.subr.bf16.mxu0 %v778_v9 }
  0x1f   :  { %730 = vmatpush3.bf16.msra.mxu0 %v778_v9 }
  0x22   :  { %732 = vmatmul.mubr.bf16.vlgmr.msra.gmra.mrb[0].mxu0 %v780_v10 }
  0x23   :  { %735 = vmatprep.mubr.bf16.mxu0 %v781_v11 }
  0x2a   :  { %736 = vmatmul.mubr.bf16.gmra.mrb[4].mxu0 %v782_v12 }
  0x2b   :  { %739 = vmatprep.mubr.bf16.mxu0 %v783_v13 }
  0x32   :  { %740 = vmatmul.mubr.bf16.gmra.mrb[8].mxu0 %v784_v14 }
  0x33   :  { %743 = vmatprep.mubr.bf16.mxu0 %v785_v15 }
  0x3a   :  { %744 = vmatmul.mubr.bf16.gmra.mrb[12].mxu0 %v786_v16 }
  0xf5   :  { %v733_v21 = vpop.f32.mrb[0].mxu0 }
  0xf6   :  { %v261_v23 = vmul.f32 %v733_v21, %v894_v20  ;;  %v189_v24 = vpop.f32.mrb[1].mxu0 }
  0xf7   :  { %v259_v25 = vmul.f32 %v894_v20, %v189_v24  ;;  %v734_v26 = vpop.f32.mrb[2].mxu0 }
  0xf8   :  { %v284_v27 = vadd.f32 %v899_v22, %v261_v23  ;;  %v262_v28 = vmul.f32 %v734_v26, %v894_v20  ;;  %v192_v29 = vpop.f32.mrb[3].mxu0 }
  0xf9   :  { %v282_v30 = vadd.f32 %v899_v22, %v259_v25  ;;  %v260_v31 = vmul.f32 %v894_v20, %v192_v29 }
  0xfa   :  { %v285_v32 = vadd.f32 %v899_v22, %v262_v28  ;;  %v300_v34 = vmax.f32 %v284_v27, 0.0 }
  0xfb   :  { %v283_v33 = vadd.f32 %v899_v22, %v260_v31  ;;  %v298_v36 = vmax.f32 %v282_v30, 0.0 }
  0xfc   :  { %v301_v35 = vmax.f32 %v285_v32, 0.0 }
  0xfd   :  { %v299_v37 = vmax.f32 %v283_v33, 0.0  ;;  %v737_v38 = vpop.f32.mrb[4].mxu0 }
  0xfe   :  { %v315_v39 = vpack.c.bf16 %v301_v35, %v300_v34  ;;  %v265_v40 = vmul.f32 %v737_v38, %v894_v20  ;;  %v205_v41 = vpop.f32.mrb[5].mxu0 }
  0xff   :  { %v263_v42 = vmul.f32 %v894_v20, %v205_v41  ;;  %v738_v43 = vpop.f32.mrb[6].mxu0  ;;  %v314_v44 = vpack.c.bf16 %v299_v37, %v298_v36 }
 0x100   :  { %v288_v45 = vadd.f32 %v899_v22, %v265_v40  ;;  %v266_v46 = vmul.f32 %v738_v43, %v894_v20  ;;  %v208_v47 = vpop.f32.mrb[7].mxu0 }
 0x101   :  { %v286_v48 = vadd.f32 %v899_v22, %v263_v42  ;;  %v264_v49 = vmul.f32 %v894_v20, %v208_v47  ;;  %755 = vmatprep.mubr.msk.bf16.mxu1 %vm354_vm0, %v314_v44 }
 0x102   :  { %v289_v50 = vadd.f32 %v899_v22, %v266_v46  ;;  %756 = vmatmul.mubr.msk.bf16.vlgmr.msra.gmra.mrb[0].mxu1 %vm354_vm0, %v315_v39  ;;  %v304_v52 = vmax.f32 %v288_v45, 0.0 }
 0x103   :  { %v287_v51 = vadd.f32 %v899_v22, %v264_v49  ;;  %v302_v54 = vmax.f32 %v286_v48, 0.0 }
 0x104   :  { %v305_v53 = vmax.f32 %v289_v50, 0.0 }
 0x105   :  { %v303_v55 = vmax.f32 %v287_v51, 0.0  ;;  %v741_v56 = vpop.f32.mrb[8].mxu0 }
 0x106   :  { %v317_v57 = vpack.c.bf16 %v305_v53, %v304_v52  ;;  %v269_v58 = vmul.f32 %v741_v56, %v894_v20  ;;  %v221_v59 = vpop.f32.mrb[9].mxu0 }
 0x107   :  { %v316_v60 = vpack.c.bf16 %v303_v55, %v302_v54  ;;  %v267_v61 = vmul.f32 %v894_v20, %v221_v59  ;;  %v742_v62 = vpop.f32.mrb[10].mxu0 }
 0x108   :  { %v292_v63 = vadd.f32 %v899_v22, %v269_v58  ;;  %v270_v0 = vmul.f32 %v742_v62, %v894_v20  ;;  %v224_v1 = vpop.f32.mrb[11].mxu0 }
 0x109   :  { %v290_v2 = vadd.f32 %v899_v22, %v267_v61  ;;  %v268_v3 = vmul.f32 %v894_v20, %v224_v1  ;;  %759 = vmatprep.mubr.msk.bf16.mxu1 %vm354_vm0, %v316_v60 }
 0x10a   :  { %v293_v4 = vadd.f32 %v899_v22, %v270_v0  ;;  %760 = vmatmul.mubr.msk.bf16.gmra.mrb[4].mxu1 %vm354_vm0, %v317_v57  ;;  %v308_v6 = vmax.f32 %v292_v63, 0.0 }
 0x10b   :  { %v291_v5 = vadd.f32 %v899_v22, %v268_v3  ;;  %v306_v8 = vmax.f32 %v290_v2, 0.0 }
 0x10c   :  { %v309_v7 = vmax.f32 %v293_v4, 0.0 }
 0x10d   :  { %v307_v9 = vmax.f32 %v291_v5, 0.0  ;;  %v745_v10 = vpop.f32.mrb[12].mxu0 }
 0x10e   :  { %v319_v11 = vpack.c.bf16 %v309_v7, %v308_v6  ;;  %v273_v12 = vmul.f32 %v745_v10, %v894_v20  ;;  %v237_v13 = vpop.f32.mrb[13].mxu0 }
 0x10f   :  { %v318_v14 = vpack.c.bf16 %v307_v9, %v306_v8  ;;  %v271_v15 = vmul.f32 %v894_v20, %v237_v13  ;;  %v746_v16 = vpop.f32.mrb[14].mxu0 }
 0x110   :  { %v296_v17 = vadd.f32 %v899_v22, %v273_v12  ;;  %v274_v18 = vmul.f32 %v746_v16, %v894_v20  ;;  %v240_v19 = vpop.f32.mrb[15].mxu0 }
 0x111   :  { %v294_v21 = vadd.f32 %v899_v22, %v271_v15  ;;  %v272_v23 = vmul.f32 %v894_v20, %v240_v19  ;;  %763 = vmatprep.mubr.msk.bf16.mxu1 %vm354_vm0, %v318_v14  ;;  %v944_v20 = vld [vmem:[%s1052_s5] ss:$0 sm:$0xff] }
 0x112   :  { %v297_v24 = vadd.f32 %v899_v22, %v274_v18  ;;  %764 = vmatmul.mubr.msk.bf16.gmra.mrb[8].mxu1 %vm354_vm0, %v319_v11  ;;  %v312_v26 = vmax.f32 %v296_v17, 0.0 }
 0x113   :  { %v295_v25 = vadd.f32 %v899_v22, %v272_v23  ;;  %v310_v28 = vmax.f32 %v294_v21, 0.0  ;;  %v949_v22 = vld [vmem:[%s1053_s6] ss:$0 sm:$0xff] }
 0x114   :  { %v313_v27 = vmax.f32 %v297_v24, 0.0 }
 0x115   :  { %v311_v29 = vmax.f32 %v295_v25, 0.0 }
 0x116   :  { %v321_v30 = vpack.c.bf16 %v313_v27, %v312_v26 }
 0x117   :  { %v320_v31 = vpack.c.bf16 %v311_v29, %v310_v28 }
 0x119   :  { %767 = vmatprep.mubr.msk.bf16.mxu1 %vm354_vm0, %v320_v31 }
 0x11a   :  { %768 = vmatmul.mubr.msk.bf16.gmra.mrb[12].mxu1 %vm354_vm0, %v321_v30 }
 0x1d5   :  { %v757_v32 = vpop.f32.mrb[0].mxu1 }
 0x1d6   :  { %v485_v33 = vmul.f32 %v757_v32, %v944_v20  ;;  %v413_v34 = vpop.f32.mrb[1].mxu1 }
 0x1d7   :  { %v483_v35 = vmul.f32 %v944_v20, %v413_v34  ;;  %v758_v36 = vpop.f32.mrb[2].mxu1 }
 0x1d8   :  { %v508_v37 = vadd.f32 %v949_v22, %v485_v33  ;;  %v486_v38 = vmul.f32 %v758_v36, %v944_v20  ;;  %v416_v39 = vpop.f32.mrb[3].mxu1 }
 0x1d9   :  { %v506_v40 = vadd.f32 %v949_v22, %v483_v35  ;;  %v484_v41 = vmul.f32 %v944_v20, %v416_v39 }
 0x1da   :  { %v524_v42 = vmax.f32 %v508_v37, 0.0  ;;  %v509_v43 = vadd.f32 %v949_v22, %v486_v38 }
 0x1db   :  { %v522_v44 = vmax.f32 %v506_v40, 0.0  ;;  %v507_v45 = vadd.f32 %v949_v22, %v484_v41 }
 0x1dc   :  { %v673_v46 = vpack.c.bf16 %v524_v42, %v524_v42  ;;  %v525_v47 = vmax.f32 %v509_v43, 0.0 }
 0x1dd   :  { %v671_v48 = vpack.c.bf16 %v522_v44, %v522_v44  ;;  %v523_v49 = vmax.f32 %v507_v45, 0.0  ;;  %v761_v50 = vpop.f32.mrb[4].mxu1 }
 0x1de   :  { %605 = vst.msk [vmem:[%s1054_s7 + $0x8] sm:$0xf] %vm602_vm1, %v673_v46  ;;  %v674_v51 = vpack.c.bf16 %v525_v47, %v525_v47  ;;  %v489_v52 = vmul.f32 %v761_v50, %v944_v20  ;;  %v429_v53 = vpop.f32.mrb[5].mxu1 }
 0x1df   :  { %603 = vst.msk [vmem:[%s1054_s7] sm:$0xf] %vm602_vm1, %v671_v48  ;;  %v672_v54 = vpack.c.bf16 %v523_v49, %v523_v49  ;;  %v487_v55 = vmul.f32 %v944_v20, %v429_v53  ;;  %v762_v56 = vpop.f32.mrb[6].mxu1 }
 0x1e0   :  { %606 = vst.msk [vmem:[%s1054_s7 + $0xc] sm:$0xf] %vm602_vm1, %v674_v51  ;;  %v512_v57 = vadd.f32 %v949_v22, %v489_v52  ;;  %v490_v58 = vmul.f32 %v762_v56, %v944_v20  ;;  %v432_v59 = vpop.f32.mrb[7].mxu1 }
 0x1e1   :  { %604 = vst.msk [vmem:[%s1054_s7 + $0x4] sm:$0xf] %vm602_vm1, %v672_v54  ;;  %v510_v60 = vadd.f32 %v949_v22, %v487_v55  ;;  %v488_v61 = vmul.f32 %v944_v20, %v432_v59 }
 0x1e2   :  { %v528_v62 = vmax.f32 %v512_v57, 0.0  ;;  %v513_v63 = vadd.f32 %v949_v22, %v490_v58 }
 0x1e3   :  { %v526_v0 = vmax.f32 %v510_v60, 0.0  ;;  %v511_v1 = vadd.f32 %v949_v22, %v488_v61 }
 0x1e4   :  { %v677_v2 = vpack.c.bf16 %v528_v62, %v528_v62  ;;  %v529_v3 = vmax.f32 %v513_v63, 0.0 }
 0x1e5   :  { %v675_v4 = vpack.c.bf16 %v526_v0, %v526_v0  ;;  %v527_v5 = vmax.f32 %v511_v1, 0.0  ;;  %v765_v6 = vpop.f32.mrb[8].mxu1 }
 0x1e6   :  { %609 = vst.msk [vmem:[%s1054_s7 + $0x18] sm:$0xf] %vm602_vm1, %v677_v2  ;;  %v678_v7 = vpack.c.bf16 %v529_v3, %v529_v3  ;;  %v493_v8 = vmul.f32 %v765_v6, %v944_v20  ;;  %v445_v9 = vpop.f32.mrb[9].mxu1 }
 0x1e7   :  { %607 = vst.msk [vmem:[%s1054_s7 + $0x10] sm:$0xf] %vm602_vm1, %v675_v4  ;;  %v676_v10 = vpack.c.bf16 %v527_v5, %v527_v5  ;;  %v491_v11 = vmul.f32 %v944_v20, %v445_v9  ;;  %v766_v12 = vpop.f32.mrb[10].mxu1 }
 0x1e8   :  { %610 = vst.msk [vmem:[%s1054_s7 + $0x1c] sm:$0xf] %vm602_vm1, %v678_v7  ;;  %v516_v13 = vadd.f32 %v949_v22, %v493_v8  ;;  %v494_v14 = vmul.f32 %v766_v12, %v944_v20  ;;  %v448_v15 = vpop.f32.mrb[11].mxu1 }
 0x1e9   :  { %608 = vst.msk [vmem:[%s1054_s7 + $0x14] sm:$0xf] %vm602_vm1, %v676_v10  ;;  %v514_v16 = vadd.f32 %v949_v22, %v491_v11  ;;  %v492_v17 = vmul.f32 %v944_v20, %v448_v15 }
 0x1ea   :  { %v532_v18 = vmax.f32 %v516_v13, 0.0  ;;  %v517_v19 = vadd.f32 %v949_v22, %v494_v14 }
 0x1eb   :  { %v530_v21 = vmax.f32 %v514_v16, 0.0  ;;  %v515_v23 = vadd.f32 %v949_v22, %v492_v17 }
 0x1ec   :  { %v681_v24 = vpack.c.bf16 %v532_v18, %v532_v18  ;;  %v533_v25 = vmax.f32 %v517_v19, 0.0 }
 0x1ed   :  { %v679_v26 = vpack.c.bf16 %v530_v21, %v530_v21  ;;  %v531_v27 = vmax.f32 %v515_v23, 0.0  ;;  %v769_v28 = vpop.f32.mrb[12].mxu1 }
 0x1ee   :  { %613 = vst.msk [vmem:[%s1054_s7 + $0x28] sm:$0xf] %vm602_vm1, %v681_v24  ;;  %v682_v29 = vpack.c.bf16 %v533_v25, %v533_v25  ;;  %v497_v30 = vmul.f32 %v769_v28, %v944_v20  ;;  %v461_v31 = vpop.f32.mrb[13].mxu1 }
 0x1ef   :  { %611 = vst.msk [vmem:[%s1054_s7 + $0x20] sm:$0xf] %vm602_vm1, %v679_v26  ;;  %v680_v32 = vpack.c.bf16 %v531_v27, %v531_v27  ;;  %v495_v33 = vmul.f32 %v944_v20, %v461_v31  ;;  %v770_v34 = vpop.f32.mrb[14].mxu1 }
 0x1f0   :  { %614 = vst.msk [vmem:[%s1054_s7 + $0x2c] sm:$0xf] %vm602_vm1, %v682_v29  ;;  %v520_v35 = vadd.f32 %v949_v22, %v497_v30  ;;  %v498_v36 = vmul.f32 %v770_v34, %v944_v20  ;;  %v464_v37 = vpop.f32.mrb[15].mxu1 }
 0x1f1   :  { %612 = vst.msk [vmem:[%s1054_s7 + $0x24] sm:$0xf] %vm602_vm1, %v680_v32  ;;  %v518_v38 = vadd.f32 %v949_v22, %v495_v33  ;;  %v496_v39 = vmul.f32 %v944_v20, %v464_v37 }
 0x1f2   :  { %v536_v40 = vmax.f32 %v520_v35, 0.0  ;;  %v521_v41 = vadd.f32 %v949_v22, %v498_v36 }
 0x1f3   :  { %v534_v42 = vmax.f32 %v518_v38, 0.0  ;;  %v519_v43 = vadd.f32 %v949_v22, %v496_v39 }
 0x1f4   :  { %v685_v44 = vpack.c.bf16 %v536_v40, %v536_v40  ;;  %v537_v45 = vmax.f32 %v521_v41, 0.0 }
 0x1f5   :  { %v683_v46 = vpack.c.bf16 %v534_v42, %v534_v42  ;;  %v535_v47 = vmax.f32 %v519_v43, 0.0 }
 0x1f6   :  { %617 = vst.msk [vmem:[%s1054_s7 + $0x38] sm:$0xf] %vm602_vm1, %v685_v44  ;;  %v686_v48 = vpack.c.bf16 %v537_v45, %v537_v45 }
 0x1f7   :  { %615 = vst.msk [vmem:[%s1054_s7 + $0x30] sm:$0xf] %vm602_vm1, %v683_v46  ;;  %v684_v20 = vpack.c.bf16 %v535_v47, %v535_v47 }
 0x1f8   :  { %618 = vst.msk [vmem:[%s1054_s7 + $0x3c] sm:$0xf] %vm602_vm1, %v686_v48 }
 0x1f9   :  { %616 = vst.msk [vmem:[%s1054_s7 + $0x34] sm:$0xf] %vm602_vm1, %v684_v20 }

// kernel: ocrnet_forward.13
= control target key start
LH: loop header
LB: loop body
LE: loop exit
PB: predicated region body
PF: predicated region fallthrough
CT: control target
= control target key end

     0   :  { %s2086_s25 = smov 0   ;;  %s2088_s26 = smov 0   ;;  %s2279_s0 = inlined_call_operand.vmem [shape: bf16[2,64,64], index: 0, kind: input, shape index: {}]   ;;  %s2280_s1 = inlined_call_operand.vmem [shape: bf16[2,64,5], index: 1, kind: input, shape index: {}]   ;;  %s2281_s2 = inlined_call_operand.vmem [shape: bf16[2,5,64], index: 2, kind: input, shape index: {}]   ;;  %s2282_s3 = inlined_call_operand.vmem [shape: bf16[2,64,128], index: 3, kind: input, shape index: {}]   ;;  %s2283_s4 = inlined_call_operand.vmem [shape: bf16[64,128], index: 4, kind: input, shape index: {}]   ;;  %s2284_s5 = inlined_call_operand.vmem [shape: f32[1,128], index: 5, kind: input, shape index: {}]   ;;  %s2285_s6 = inlined_call_operand.vmem [shape: f32[1,128], index: 6, kind: input, shape index: {}]   ;;  %s2286_s7 = inlined_call_operand.vmem [shape: bf16[128,128], index: 7, kind: input, shape index: {}]   ;;  %s2287_s8 = inlined_call_operand.vmem [shape: bf16[128,128], index: 8, kind: input, shape index: {}]   ;;  %s2288_s9 = inlined_call_operand.vmem [shape: f32[1,128], index: 9, kind: input, shape index: {}]   ;;  %s2289_s10 = inlined_call_operand.vmem [shape: f32[1,128], index: 10, kind: input, shape index: {}]   ;;  %s2290_s11 = inlined_call_operand.vmem [shape: bf16[128,5], index: 11, kind: input, shape index: {}]   ;;  %s2291_s12 = inlined_call_operand.vmem [shape: f32[1,5], index: 12, kind: input, shape index: {}]   ;;  %s2292_s13 = inlined_call_operand.vmem [shape: f32[2,64,5], index: 13, kind: output, shape index: {}]  }
   0x1   :  { %s2090_s27 = smov 0  }
   0x2 LB: > { %s35_s28 = sadd.s32 1, %s2009_s26  ;;  %p1642_p0 = scmp.ge.s32.totalorder %s2013_s27, 1  ;;  %s2013_s27 = sphi %s2090_s27, %s23_s27   ;;  %s2009_s26 = sphi %s2088_s26, %s2294_s26   ;;  %s2005_s25 = sphi %s2086_s25, %s2293_s25  }
   0x3   : > { %p37_p1 = scmp.ge.s32.totalorder %s35_s28, 2  ;;  %p444_p2 = scmp.lt.s32.totalorder %s2013_s27, 3 }
   0x5   : > { %s2296_s28 = smov (%p37_p1, %s35_s28), 0  ;;  %p445_p3 = pnand %p1642_p0, %p444_p2 }
   0x6   : > { %p515_p4 = scmp.lt.s32.totalorder (!%p445_p3), %s2005_s25, 1  ;;  %vm615_vm0 = vcmask (!%p445_p3), 523264   ;;  %vm701_vm1 = vcmask (!%p445_p3), 39936   ;;  %vm806_vm2 = vcmask (!%p445_p3), 1041408   ;;  %vm807_vm3 = vcmask (!%p445_p3), 1042432  }
   0x7   : > { %448 = sbr.rel (%p445_p3) target bundleno = 1465 (0x5b9), region = 72 }
   0xe   : > { %s2298_s25 = smov (!%p515_p4, %s2005_s25), 1 }
   0xf   : > { %s2107_s29 = sshll.u32 %s2298_s25, 5  ;;  %s1647_s19 = sshll.u32 %s2298_s25, 2 }
  0x10   : > { %s528_s15 = scalar_lea.vmem %s2280_s1, %s2107_s29  ;;  %s522_s18 = scalar_lea.vmem %s2279_s0, %s2107_s29 }
  0x11   : > { %v1919_v0 = vld [vmem:[%s528_s15] sm:$0xff]   ;;  %v1920_v1 = vld [vmem:[%s528_s15 + $0x8] sm:$0xff]   ;;  %v1921_v2 = vld [vmem:[%s528_s15 + $0x10] sm:$0xff]   ;;  %s532_s22 = scalar_lea.vmem %s2281_s2, %s1647_s19  ;;  %s2167_s30 = scalar_lea.vmem %s2282_s3, %s2107_s29 }
  0x12   : > { %1772 = vmatprep.subr.bf16.mxu0 %v1919_v0  ;;  %v1923_v3 = vld [vmem:[%s522_s18] sm:$0xff]   ;;  %v1922_v4 = vld [vmem:[%s528_s15 + $0x18] sm:$0xff]   ;;  %v1924_v5 = vld [vmem:[%s522_s18 + $0x8] sm:$0xff]   ;;  %s1714_s16 = sshll.u32 %s2298_s25, 6 }
  0x13   : > { %1773 = vmatpush3.bf16.msra.mxu0 %v1919_v0  ;;  %1780 = vmatprep.mubr.msk.bf16.mxu0 %vm615_vm0, %v1923_v3  ;;  %v1925_v6 = vld [vmem:[%s522_s18 + $0x10] sm:$0xff]   ;;  %v1926_v7 = vld [vmem:[%s522_s18 + $0x18] sm:$0xff]  }
  0x14   : > { %1774 = vmatprep.subr.bf16.mxu0 %v1920_v1 }
  0x17   : > { %1775 = vmatpush3.bf16.msra.mxu0 %v1920_v1 }
  0x18   : > { %1776 = vmatprep.subr.bf16.mxu0 %v1921_v2 }
  0x1b   : > { %1777 = vmatpush3.bf16.msra.mxu0 %v1921_v2 }
  0x1c   : > { %1778 = vmatprep.subr.bf16.mxu0 %v1922_v4 }
  0x1f   : > { %1779 = vmatpush3.bf16.msra.mxu0 %v1922_v4 }
  0x22   : > { %1781 = vmatmul.mubr.msk.bf16.vlgmr.msra.gmra.mrb[0].mxu0 %vm615_vm0, %v1924_v5 }
  0x23   : > { %1784 = vmatprep.mubr.msk.bf16.mxu0 %vm615_vm0, %v1925_v6 }
  0x2a   : > { %1785 = vmatmul.mubr.msk.bf16.gmra.mrb[4].mxu0 %vm615_vm0, %v1926_v7 }
  0xf5   : > { %v1782_v8 = vpop.f32.mrb[0].mxu0 }
  0xf6   : > { %v695_v9 = vmul.f32 0.125, %v1782_v8  ;;  %v662_v10 = vpop.f32.mrb[1].mxu0  ;;  %v2015_v8 = vmov 65535  }
  0xf7   : > { %v693_v11 = vmul.f32 0.125, %v662_v10  ;;  %v1783_v12 = vpop.f32.mrb[2].mxu0  ;;  %v570_v10 = vld [vmem:[%s532_s22] sm:$0x7] }
  0xf8   : > { %v696_v13 = vmul.f32 0.125, %v1783_v12  ;;  %v665_v14 = vpop.f32.mrb[3].mxu0  ;;  %v708_v15 = vsel %vm701_vm1, %v695_v9, -inf }
  0xf9   : > { %v694_v16 = vmul.f32 0.125, %v665_v14  ;;  %709 = vmax.xlane.f32.xlu1 %v708_v15  ;;  %v702_v17 = vsel %vm701_vm1, %v693_v11, -inf }
  0xfa   : > { %703 = vmax.xlane.f32.xlu0 %v702_v17  ;;  %v711_v18 = vsel %vm701_vm1, %v696_v13, -inf }
  0xfb   : > { %v705_v20 = vsel %vm701_vm1, %v694_v16, -inf }
  0xfd   : > { %712 = vmax.xlane.f32.xlu1 %v711_v18  ;;  %v1786_v19 = vpop.f32.mrb[4].mxu0 }
  0xfe   : > { %706 = vmax.xlane.f32.xlu0 %v705_v20  ;;  %v678_v21 = vpop.f32.mrb[5].mxu0  ;;  %v699_v25 = vmul.f32 0.125, %v1786_v19 }
  0xff   : > { %v697_v22 = vmul.f32 0.125, %v678_v21  ;;  %v1787_v23 = vpop.f32.mrb[6].mxu0 }
 0x100   : > { %v681_v24 = vpop.f32.mrb[7].mxu0  ;;  %v700_v28 = vmul.f32 0.125, %v1787_v23  ;;  %v720_v30 = vsel %vm701_vm1, %v699_v25, -inf }
 0x101   : > { %v698_v26 = vmul.f32 0.125, %v681_v24  ;;  %v714_v27 = vsel %vm701_vm1, %v697_v22, -inf }
 0x102   : > { %715 = vmax.xlane.f32.xlu0 %v714_v27  ;;  %v723_v31 = vsel %vm701_vm1, %v700_v28, -inf }
 0x103   : > { %v717_v29 = vsel %vm701_vm1, %v698_v26, -inf }
 0x104   : > { %718 = vmax.xlane.f32.xlu1 %v717_v29 }
 0x106   : > { %721 = vmax.xlane.f32.xlu0 %v720_v30 }
 0x108   : > { %724 = vmax.xlane.f32.xlu1 %v723_v31 }
 0x186   : > { %v710_v32 = vpop.xlane.xlu1 %709 }
 0x187   : > { %v728_v33 = vsub.f32 %v695_v9, %v710_v32  ;;  %v704_v34 = vpop.xlane.xlu0 %703  ;;  %v808_v9 = vsel %vm806_vm2, 4294967295, %v2015_v8  ;;  %v1946_v8 = vld [vmem:[%s2286_s7 + $0x28] sm:$0xff]  }
 0x188   : > { %v726_v35 = vsub.f32 %v693_v11, %v704_v34  ;;  %v809_v11 = vsel %vm807_vm3, %v808_v9, 0  ;;  %v1947_v9 = vld [vmem:[%s2167_s30 + $0x10] sm:$0xff]  }
 0x189   : > { %v738_v36 = vmul.f32 1.442695, %v728_v33  ;;  %v811_v12 = vand.u32 %v809_v11, %v570_v10  ;;  %v1928_v33 = vld [vmem:[%s2283_s4 + $0x8] sm:$0xff]   ;;  %v1948_v10 = vld [vmem:[%s2167_s30 + $0x18] sm:$0xff]   ;;  %v1949_v11 = vld [vmem:[%s2286_s7 + $0x30] sm:$0xff]  }
 0x18a   : > { %v734_v37 = vmul.f32 1.442695, %v726_v35  ;;  %v713_v38 = vpop.xlane.xlu1 %712 }
 0x18b   : > { %v729_v39 = vsub.f32 %v696_v13, %v713_v38  ;;  %v707_v40 = vpop.xlane.xlu0 %706  ;;  %1788 = vmatprep.subr.bf16.mxu1 %v811_v12  ;;  %v1927_v13 = vld [vmem:[%s2283_s4] sm:$0xff]  }
 0x18c   : > { %1959 = vpow2.f32 %v734_v37  ;;  %v727_v41 = vsub.f32 %v694_v16, %v707_v40  ;;  %1789 = vmatpush3.bf16.msra.mxu1 %v811_v12  ;;  %v1929_v40 = vld [vmem:[%s2283_s4 + $0x10] sm:$0xff]   ;;  %v1950_v12 = vld [vmem:[%s2286_s7 + $0x38] sm:$0xff]  }
 0x18d   : > { %1961 = vpow2.f32 %v738_v36  ;;  %v740_v42 = vmul.f32 1.442695, %v729_v39  ;;  %1798 = vmatprep.subr.bf16.mxu1 %v1927_v13 }
 0x18e   : > { %v736_v43 = vmul.f32 1.442695, %v727_v41 }
 0x18f   : > { %v716_v44 = vpop.xlane.xlu0 %715 }
 0x190   : > { %1963 = vpow2.f32 %v736_v43  ;;  %v730_v45 = vsub.f32 %v697_v22, %v716_v44  ;;  %v1930_v44 = vld [vmem:[%s2283_s4 + $0x18] sm:$0xff]  }
 0x191   : > { %v719_v46 = vpop.xlane.xlu1 %718  ;;  %1965 = vpow2.f32 %v740_v42 }
 0x192   : > { %v742_v47 = vmul.f32 1.442695, %v730_v45  ;;  %v731_v48 = vsub.f32 %v698_v26, %v719_v46  ;;  %v1931_v45 = vld [vmem:[%s2287_s8] sm:$0xff]   ;;  %v1932_v46 = vld [vmem:[%s2287_s8 + $0x8] sm:$0xff]  }
 0x193   : > { %v722_v49 = vpop.xlane.xlu0 %721  ;;  %1814 = vmatprep.subr.bf16.mxu0 %v1931_v45 }
 0x194   : > { %1967 = vpow2.f32 %v742_v47  ;;  %v744_v50 = vmul.f32 1.442695, %v731_v48  ;;  %v732_v51 = vsub.f32 %v699_v25, %v722_v49  ;;  %1815 = vmatpush3.bf16.msra.mxu0 %v1931_v45  ;;  %v1939_v47 = vld [vmem:[%s2167_s30] sm:$0xff]   ;;  %v1933_v48 = vld [vmem:[%s2287_s8 + $0x10] sm:$0xff]   ;;  %v1934_v49 = vld [vmem:[%s2287_s8 + $0x18] sm:$0xff]  }
 0x195   : > { %v725_v52 = vpop.xlane.xlu1 %724  ;;  %1816 = vmatprep.subr.bf16.mxu0 %v1932_v46  ;;  %1830 = vmatprep.mubr.bf16.mxu0 %v1939_v47 }
 0x196   : > { %v1960_v53 = vpop.eup %1959  ;;  %1969 = vpow2.f32 %v744_v50  ;;  %v746_v54 = vmul.f32 1.442695, %v732_v51  ;;  %v733_v55 = vsub.f32 %v700_v28, %v725_v52  ;;  %v1935_v50 = vld [vmem:[%s2287_s8 + $0x20] sm:$0xff]   ;;  %v1936_v51 = vld [vmem:[%s2287_s8 + $0x28] sm:$0xff]   ;;  %v1937_v52 = vld [vmem:[%s2287_s8 + $0x30] sm:$0xff]  }
 0x197   : > { %v750_v56 = vsel %vm701_vm1, %v1960_v53, 0.0  ;;  %v1962_v57 = vpop.eup %1961 }
 0x198   : > { %1971 = vpow2.f32 %v746_v54  ;;  %v748_v58 = vmul.f32 1.442695, %v733_v55  ;;  %751 = vadd.xlane.f32.xlu0 %v750_v56  ;;  %v756_v60 = vsel %vm701_vm1, %v1962_v57, 0.0  ;;  %1817 = vmatpush3.bf16.msra.mxu0 %v1932_v46  ;;  %v1940_v54 = vld [vmem:[%s2286_s7] sm:$0xff]   ;;  %v1941_v55 = vld [vmem:[%s2167_s30 + $0x8] sm:$0xff]   ;;  %s551_s30 = scalar_lea.vmem %s2292_s13, %s1714_s16 }
 0x199   : > { %1818 = vmatprep.subr.bf16.mxu0 %v1933_v48  ;;  %v1942_v56 = vld [vmem:[%s2286_s7 + $0x8] sm:$0xff]  }
 0x19a   : > { %v1964_v59 = vpop.eup %1963  ;;  %1973 = vpow2.f32 %v748_v58  ;;  %v1944_v58 = vld [vmem:[%s2286_s7 + $0x18] sm:$0xff]  }
 0x19b   : > { %v753_v61 = vsel %vm701_vm1, %v1964_v59, 0.0  ;;  %v1966_v62 = vpop.eup %1965 }
 0x19c   : > { %757 = vadd.xlane.f32.xlu0 %v756_v60  ;;  %754 = vadd.xlane.f32.xlu1 %v753_v61  ;;  %v759_v1 = vsel %vm701_vm1, %v1966_v62, 0.0 }
 0x19d   : > { %1819 = vmatpush3.bf16.msra.mxu0 %v1933_v48 }
 0x19e   : > { %v1968_v63 = vpop.eup %1967  ;;  %1820 = vmatprep.subr.bf16.mxu0 %v1934_v49 }
 0x19f   : > { %v762_v0 = vsel %vm701_vm1, %v1968_v63, 0.0 }
 0x1a0   : > { %v1970_v2 = vpop.eup %1969  ;;  %763 = vadd.xlane.f32.xlu0 %v762_v0  ;;  %760 = vadd.xlane.f32.xlu1 %v759_v1 }
 0x1a1   : > { %v765_v5 = vsel %vm701_vm1, %v1970_v2, 0.0  ;;  %1821 = vmatpush3.bf16.msra.mxu0 %v1934_v49 }
 0x1a2   : > { %v1972_v3 = vpop.eup %1971  ;;  %1822 = vmatprep.subr.bf16.mxu0 %v1935_v50 }
 0x1a3   : > { %v768_v4 = vsel %vm701_vm1, %v1972_v3, 0.0 }
 0x1a4   : > { %v1974_v6 = vpop.eup %1973  ;;  %769 = vadd.xlane.f32.xlu0 %v768_v4  ;;  %766 = vadd.xlane.f32.xlu1 %v765_v5 }
 0x1a5   : > { %v771_v7 = vsel %vm701_vm1, %v1974_v6, 0.0  ;;  %1823 = vmatpush3.bf16.msra.mxu0 %v1935_v50 }
 0x1a6   : > { %1824 = vmatprep.subr.bf16.mxu0 %v1936_v51 }
 0x1a8   : > { %772 = vadd.xlane.f32.xlu1 %v771_v7 }
 0x1a9   : > { %1825 = vmatpush3.bf16.msra.mxu0 %v1936_v51 }
 0x1aa   : > { %1826 = vmatprep.subr.bf16.mxu0 %v1937_v52 }
 0x1ad   : > { %1827 = vmatpush3.bf16.msra.mxu0 %v1937_v52 }
 0x225   : > { %v752_v14 = vpop.xlane.xlu0 %751 }
 0x226   : > { %1975 = vrcp.f32 %v752_v14  ;;  %v1952_v14 = vld [vmem:[%s2290_s11 + $0x8] sm:$0xff]  }
 0x229   : > { %v758_v15 = vpop.xlane.xlu0 %757  ;;  %v755_v16 = vpop.xlane.xlu1 %754 }
 0x22a   : > { %1977 = vrcp.f32 %v755_v16  ;;  %v1954_v16 = vld [vmem:[%s2290_s11 + $0x18] sm:$0xff]  }
 0x22b   : > { %1979 = vrcp.f32 %v758_v15  ;;  %v1953_v15 = vld [vmem:[%s2290_s11 + $0x10] sm:$0xff]  }
 0x22d   : > { %v764_v17 = vpop.xlane.xlu0 %763  ;;  %v761_v18 = vpop.xlane.xlu1 %760 }
 0x22e   : > { %1981 = vrcp.f32 %v761_v18  ;;  %v1676_v18 = vld [vmem:[%s2284_s5] ss:$0 sm:$0xff] }
 0x22f   : > { %1983 = vrcp.f32 %v764_v17  ;;  %v1955_v17 = vld [vmem:[%s2290_s11 + $0x20] sm:$0xff]  }
 0x230   : > { %v1976_v21 = vpop.eup %1975 }
 0x231   : > { %v770_v19 = vpop.xlane.xlu0 %769  ;;  %v767_v20 = vpop.xlane.xlu1 %766  ;;  %v782_v24 = vmul.f32 %v1976_v21, %v1960_v53  ;;  %v1938_v53 = vld [vmem:[%s2287_s8 + $0x38] sm:$0xff]  }
 0x232   : > { %1985 = vrcp.f32 %v767_v20  ;;  %1828 = vmatprep.subr.bf16.mxu0 %v1938_v53  ;;  %v1677_v20 = vld [vmem:[%s2285_s6] ss:$0 sm:$0xff] }
 0x233   : > { %1987 = vrcp.f32 %v770_v19  ;;  %1829 = vmatpush3.bf16.msra.mxu0 %v1938_v53 }
 0x234   : > { %v1978_v22 = vpop.eup %1977  ;;  %1838 = vmatprep.subr.bf16.mxu0 %v1940_v54 }
 0x235   : > { %v773_v23 = vpop.xlane.xlu1 %772  ;;  %v783_v25 = vmul.f32 %v1978_v22, %v1964_v59  ;;  %v1980_v26 = vpop.eup %1979  ;;  %v1945_v59 = vld [vmem:[%s2286_s7 + $0x20] sm:$0xff]  }
 0x236   : > { %1989 = vrcp.f32 %v773_v23  ;;  %v784_v29 = vmul.f32 %v1980_v26, %v1962_v57  ;;  %1831 = vmatmul.mubr.bf16.vlgmr.msra.gmra.mrb[8].mxu0 %v1941_v55  ;;  %v1943_v57 = vld [vmem:[%s2286_s7 + $0x10] sm:$0xff]  }
 0x237   : > { %v790_v27 = vpack.c.bf16 %v783_v25, %v782_v24  ;;  %1839 = vmatpush3.bf16.msra.mxu0 %v1940_v54  ;;  %1834 = vmatprep.mubr.bf16.mxu0 %v1947_v9 }
 0x238   : > { %v1982_v28 = vpop.eup %1981  ;;  %1840 = vmatprep.subr.bf16.mxu0 %v1942_v56 }
 0x239   : > { %1790 = vmatprep.mubr.msk.bf16.mxu1 %vm701_vm1, %v790_v27  ;;  %v785_v30 = vmul.f32 %v1982_v28, %v1966_v62  ;;  %v1984_v31 = vpop.eup %1983 }
 0x23a   : > { %v786_v36 = vmul.f32 %v1984_v31, %v1968_v63 }
 0x23b   : > { %v791_v32 = vpack.c.bf16 %v785_v30, %v784_v29  ;;  %1841 = vmatpush3.bf16.msra.mxu0 %v1942_v56  ;;  %v1956_v56 = vld [vmem:[%s2290_s11 + $0x28] sm:$0xff]  }
 0x23c   : > { %v1986_v34 = vpop.eup %1985  ;;  %1842 = vmatprep.subr.bf16.mxu0 %v1943_v57 }
 0x23d   : > { %v1988_v35 = vpop.eup %1987  ;;  %1791 = vmatmul.mubr.msk.bf16.vlgmr.msra.gmra.mrb[0].mxu1 %vm701_vm1, %v791_v32  ;;  %v787_v37 = vmul.f32 %v1986_v34, %v1970_v2 }
 0x23e   : > { %1799 = vmatpush3.bf16.msra.mxu1 %v1927_v13  ;;  %v788_v41 = vmul.f32 %v1988_v35, %v1972_v3  ;;  %1835 = vmatmul.mubr.bf16.gmra.mrb[12].mxu0 %v1948_v10  ;;  %v1951_v13 = vld [vmem:[%s2290_s11] sm:$0xff]  }
 0x23f   : > { %v792_v39 = vpack.c.bf16 %v787_v37, %v786_v36  ;;  %1800 = vmatprep.subr.bf16.mxu1 %v1928_v33  ;;  %1843 = vmatpush3.bf16.msra.mxu0 %v1943_v57  ;;  %v1957_v57 = vld [vmem:[%s2290_s11 + $0x30] sm:$0xff]  }
 0x240   : > { %v1990_v38 = vpop.eup %1989  ;;  %1844 = vmatprep.subr.bf16.mxu0 %v1944_v58 }
 0x241   : > { %v789_v42 = vmul.f32 %v1990_v38, %v1974_v6  ;;  %1794 = vmatprep.mubr.msk.bf16.mxu1 %vm701_vm1, %v792_v39 }
 0x242   : > { %1801 = vmatpush3.bf16.msra.mxu1 %v1928_v33 }
 0x243   : > { %v793_v43 = vpack.c.bf16 %v789_v42, %v788_v41  ;;  %1802 = vmatprep.subr.bf16.mxu1 %v1929_v40  ;;  %1845 = vmatpush3.bf16.msra.mxu0 %v1944_v58  ;;  %v1958_v58 = vld [vmem:[%s2290_s11 + $0x38] sm:$0xff]  }
 0x244   : > { %1846 = vmatprep.subr.bf16.mxu0 %v1945_v59 }
 0x245   : > { %1795 = vmatmul.mubr.msk.bf16.gmra.mrb[4].mxu1 %vm701_vm1, %v793_v43 }
 0x246   : > { %1803 = vmatpush3.bf16.msra.mxu1 %v1929_v40 }
 0x247   : > { %1804 = vmatprep.subr.bf16.mxu1 %v1930_v44  ;;  %1847 = vmatpush3.bf16.msra.mxu0 %v1945_v59  ;;  %v1698_v59 = vld [vmem:[%s2288_s9] ss:$0 sm:$0xff] }
 0x248   : > { %1848 = vmatprep.subr.bf16.mxu0 %v1946_v8 }
 0x24a   : > { %1805 = vmatpush3.bf16.msra.mxu1 %v1930_v44 }
 0x24b   : > { %1849 = vmatpush3.bf16.msra.mxu0 %v1946_v8  ;;  %1862 = vmatprep.subr.bf16.mxu1 %v1951_v13 }
 0x24c   : > { %1850 = vmatprep.subr.bf16.mxu0 %v1949_v11 }
 0x24f   : > { %1851 = vmatpush3.bf16.msra.mxu0 %v1949_v11 }
 0x250   : > { %1852 = vmatprep.subr.bf16.mxu0 %v1950_v12 }
 0x253   : > { %1853 = vmatpush3.bf16.msra.mxu0 %v1950_v12 }
 0x310   : > { %v1792_v60 = vpop.f32.mrb[0].mxu1 }
 0x311   : > { %v847_v61 = vpop.f32.mrb[1].mxu1 }
 0x312   : > { %v1793_v62 = vpop.f32.mrb[2].mxu1 }
 0x313   : > { %v879_v63 = vpack.c.bf16 %v1793_v62, %v1792_v60  ;;  %v850_v0 = vpop.f32.mrb[3].mxu1 }
 0x314   : > { %v878_v1 = vpack.c.bf16 %v850_v0, %v847_v61  ;;  %v1699_v61 = vld [vmem:[%s2289_s10] ss:$0 sm:$0xff] }
 0x316   : > { %1806 = vmatprep.mubr.msk.bf16.mxu1 %vm615_vm0, %v878_v1 }
 0x317   : > { %1807 = vmatmul.mubr.msk.bf16.vlgmr.msra.gmra.mrb[8].mxu1 %vm615_vm0, %v879_v63 }
 0x318   : > { %v1796_v2 = vpop.f32.mrb[4].mxu1  ;;  %1863 = vmatpush3.bf16.msra.mxu1 %v1951_v13 }
 0x319   : > { %v863_v3 = vpop.f32.mrb[5].mxu1  ;;  %1864 = vmatprep.subr.bf16.mxu1 %v1952_v14 }
 0x31a   : > { %v1797_v4 = vpop.f32.mrb[6].mxu1 }
 0x31b   : > { %v881_v5 = vpack.c.bf16 %v1797_v4, %v1796_v2  ;;  %v866_v6 = vpop.f32.mrb[7].mxu1 }
 0x31c   : > { %v880_v7 = vpack.c.bf16 %v866_v6, %v863_v3  ;;  %1865 = vmatpush3.bf16.msra.mxu1 %v1952_v14 }
 0x31d   : > { %1866 = vmatprep.subr.bf16.mxu1 %v1953_v15 }
 0x31e   : > { %1810 = vmatprep.mubr.msk.bf16.mxu1 %vm615_vm0, %v880_v7 }
 0x31f   : > { %1811 = vmatmul.mubr.msk.bf16.gmra.mrb[12].mxu1 %vm615_vm0, %v881_v5 }
 0x320   : > { %1867 = vmatpush3.bf16.msra.mxu1 %v1953_v15 }
 0x321   : > { %1868 = vmatprep.subr.bf16.mxu1 %v1954_v16 }
 0x324   : > { %1869 = vmatpush3.bf16.msra.mxu1 %v1954_v16 }
 0x325   : > { %1870 = vmatprep.subr.bf16.mxu1 %v1955_v17 }
 0x328   : > { %1871 = vmatpush3.bf16.msra.mxu1 %v1955_v17 }
 0x329   : > { %1872 = vmatprep.subr.bf16.mxu1 %v1956_v56 }
 0x32c   : > { %1873 = vmatpush3.bf16.msra.mxu1 %v1956_v56 }
 0x32d   : > { %1874 = vmatprep.subr.bf16.mxu1 %v1957_v57 }
 0x330   : > { %1875 = vmatpush3.bf16.msra.mxu1 %v1957_v57 }
 0x331   : > { %1876 = vmatprep.subr.bf16.mxu1 %v1958_v58 }
 0x334   : > { %1877 = vmatpush3.bf16.msra.mxu1 %v1958_v58 }
 0x3ea   : > { %v1808_v19 = vpop.f32.mrb[8].mxu1 }
 0x3eb   : > { %v1000_v21 = vmul.f32 %v1808_v19, %v1676_v18  ;;  %v960_v22 = vpop.f32.mrb[9].mxu1 }
 0x3ec   : > { %v998_v23 = vmul.f32 %v1676_v18, %v960_v22  ;;  %v1809_v24 = vpop.f32.mrb[10].mxu1 }
 0x3ed   : > { %v1015_v25 = vadd.f32 %v1677_v20, %v1000_v21  ;;  %v1001_v26 = vmul.f32 %v1809_v24, %v1676_v18  ;;  %v963_v27 = vpop.f32.mrb[11].mxu1 }
 0x3ee   : > { %v1013_v28 = vadd.f32 %v1677_v20, %v998_v23  ;;  %v999_v29 = vmul.f32 %v1676_v18, %v963_v27 }
 0x3ef   : > { %v1016_v30 = vadd.f32 %v1677_v20, %v1001_v26  ;;  %v1023_v32 = vmax.f32 %v1015_v25, 0.0 }
 0x3f0   : > { %v1014_v31 = vadd.f32 %v1677_v20, %v999_v29  ;;  %v1021_v34 = vmax.f32 %v1013_v28, 0.0 }
 0x3f1   : > { %v1024_v33 = vmax.f32 %v1016_v30, 0.0 }
 0x3f2   : > { %v1022_v35 = vmax.f32 %v1014_v31, 0.0  ;;  %v1812_v36 = vpop.f32.mrb[12].mxu1 }
 0x3f3   : > { %v1030_v37 = vpack.c.bf16 %v1024_v33, %v1023_v32  ;;  %v1004_v38 = vmul.f32 %v1812_v36, %v1676_v18  ;;  %v976_v39 = vpop.f32.mrb[13].mxu1  ;;  %v1700_v33 = vld [vmem:[%s2291_s12] ss:$0 sm:$0xff] }
 0x3f4   : > { %v1002_v40 = vmul.f32 %v1676_v18, %v976_v39  ;;  %v1813_v41 = vpop.f32.mrb[14].mxu1  ;;  %v1029_v42 = vpack.c.bf16 %v1022_v35, %v1021_v34 }
 0x3f5   : > { %v1019_v43 = vadd.f32 %v1677_v20, %v1004_v38  ;;  %v1005_v44 = vmul.f32 %v1813_v41, %v1676_v18  ;;  %v979_v45 = vpop.f32.mrb[15].mxu1 }
 0x3f6   : > { %v1017_v46 = vadd.f32 %v1677_v20, %v1002_v40  ;;  %v1003_v47 = vmul.f32 %v1676_v18, %v979_v45  ;;  %1854 = vmatprep.mubr.bf16.mxu0 %v1029_v42 }
 0x3f7   : > { %v1020_v48 = vadd.f32 %v1677_v20, %v1005_v44  ;;  %1855 = vmatmul.mubr.bf16.vlgmr.msra.gmra.mrb[8].mxu0 %v1030_v37  ;;  %v1027_v50 = vmax.f32 %v1019_v43, 0.0 }
 0x3f8   : > { %v1018_v49 = vadd.f32 %v1677_v20, %v1003_v47  ;;  %v1025_v52 = vmax.f32 %v1017_v46, 0.0 }
 0x3f9   : > { %v1028_v51 = vmax.f32 %v1020_v48, 0.0 }
 0x3fa   : > { %v1026_v53 = vmax.f32 %v1018_v49, 0.0 }
 0x3fb   : > { %v1032_v54 = vpack.c.bf16 %v1028_v51, %v1027_v50 }
 0x3fc   : > { %v1031_v55 = vpack.c.bf16 %v1026_v53, %v1025_v52 }
 0x3fe   : > { %1858 = vmatprep.mubr.bf16.mxu0 %v1031_v55 }
 0x3ff   : > { %1859 = vmatmul.mubr.bf16.gmra.mrb[12].mxu0 %v1032_v54 }
 0x4ca   : > { %v1856_v60 = vpop.f32.mrb[8].mxu0 }
 0x4cb   : > { %v1332_v62 = vmul.f32 %v1856_v60, %v1698_v59  ;;  %v1292_v63 = vpop.f32.mrb[9].mxu0 }
 0x4cc   : > { %v1330_v0 = vmul.f32 %v1698_v59, %v1292_v63  ;;  %v1857_v1 = vpop.f32.mrb[10].mxu0 }
 0x4cd   : > { %v1347_v2 = vadd.f32 %v1699_v61, %v1332_v62  ;;  %v1333_v3 = vmul.f32 %v1857_v1, %v1698_v59  ;;  %v1295_v4 = vpop.f32.mrb[11].mxu0 }
 0x4ce   : > { %v1345_v5 = vadd.f32 %v1699_v61, %v1330_v0  ;;  %v1331_v6 = vmul.f32 %v1698_v59, %v1295_v4 }
 0x4cf   : > { %v1348_v7 = vadd.f32 %v1699_v61, %v1333_v3  ;;  %v1355_v9 = vmax.f32 %v1347_v2, 0.0 }
 0x4d0   : > { %v1346_v8 = vadd.f32 %v1699_v61, %v1331_v6  ;;  %v1353_v11 = vmax.f32 %v1345_v5, 0.0 }
 0x4d1   : > { %v1356_v10 = vmax.f32 %v1348_v7, 0.0 }
 0x4d2   : > { %v1354_v12 = vmax.f32 %v1346_v8, 0.0  ;;  %v1860_v13 = vpop.f32.mrb[12].mxu0 }
 0x4d3   : > { %v1362_v14 = vpack.c.bf16 %v1356_v10, %v1355_v9  ;;  %v1336_v15 = vmul.f32 %v1860_v13, %v1698_v59  ;;  %v1308_v16 = vpop.f32.mrb[13].mxu0 }
 0x4d4   : > { %v1334_v17 = vmul.f32 %v1698_v59, %v1308_v16  ;;  %v1861_v18 = vpop.f32.mrb[14].mxu0  ;;  %v1361_v19 = vpack.c.bf16 %v1354_v12, %v1353_v11 }
 0x4d5   : > { %v1351_v20 = vadd.f32 %v1699_v61, %v1336_v15  ;;  %v1337_v21 = vmul.f32 %v1861_v18, %v1698_v59  ;;  %v1311_v22 = vpop.f32.mrb[15].mxu0 }
 0x4d6   : > { %v1349_v23 = vadd.f32 %v1699_v61, %v1334_v17  ;;  %v1335_v24 = vmul.f32 %v1698_v59, %v1311_v22  ;;  %1878 = vmatprep.mubr.bf16.mxu1 %v1361_v19 }
 0x4d7   : > { %v1352_v25 = vadd.f32 %v1699_v61, %v1337_v21  ;;  %1879 = vmatmul.mubr.bf16.vlgmr.msra.gmra.mrb[16].mxu1 %v1362_v14  ;;  %v1359_v27 = vmax.f32 %v1351_v20, 0.0 }
 0x4d8   : > { %v1350_v26 = vadd.f32 %v1699_v61, %v1335_v24  ;;  %v1357_v29 = vmax.f32 %v1349_v23, 0.0 }
 0x4d9   : > { %v1360_v28 = vmax.f32 %v1352_v25, 0.0 }
 0x4da   : > { %v1358_v30 = vmax.f32 %v1350_v26, 0.0 }
 0x4db   : > { %v1364_v31 = vpack.c.bf16 %v1360_v28, %v1359_v27 }
 0x4dc   : > { %v1363_v32 = vpack.c.bf16 %v1358_v30, %v1357_v29 }
 0x4de   : > { %1882 = vmatprep.mubr.bf16.mxu1 %v1363_v32 }
 0x4df   : > { %1883 = vmatmul.mubr.bf16.gmra.mrb[20].mxu1 %v1364_v31 }
 0x5aa   : > { %v1880_v34 = vpop.f32.mrb[16].mxu1 }
 0x5ab   : > { %v1479_v35 = vadd.f32 %v1880_v34, %v1700_v33  ;;  %v1470_v36 = vpop.f32.mrb[17].mxu1 }
 0x5ac   : > { %v1471_v37 = vadd.f32 %v1700_v33, %v1470_v36  ;;  %v1881_v38 = vpop.f32.mrb[18].mxu1 }
 0x5ad   : > { %1503 = vst.msk [vmem:[%s551_s30 + $0x10] sm:$0xff] %vm701_vm1, %v1479_v35  ;;  %v1482_v39 = vadd.f32 %v1881_v38, %v1700_v33  ;;  %v1473_v40 = vpop.f32.mrb[19].mxu1 }
 0x5ae   : > { %1501 = vst.msk [vmem:[%s551_s30] sm:$0xff] %vm701_vm1, %v1471_v37  ;;  %v1474_v41 = vadd.f32 %v1700_v33, %v1473_v40 }
 0x5af   : > { %1504 = vst.msk [vmem:[%s551_s30 + $0x18] sm:$0xff] %vm701_vm1, %v1482_v39 }
 0x5b0   : > { %1502 = vst.msk [vmem:[%s551_s30 + $0x8] sm:$0xff] %vm701_vm1, %v1474_v41 }
 0x5b2   : > { %v1884_v42 = vpop.f32.mrb[20].mxu1 }
 0x5b3   : > { %v1495_v43 = vadd.f32 %v1884_v42, %v1700_v33  ;;  %v1486_v44 = vpop.f32.mrb[21].mxu1 }
 0x5b4   : > { %v1487_v45 = vadd.f32 %v1700_v33, %v1486_v44  ;;  %v1885_v46 = vpop.f32.mrb[22].mxu1 }
 0x5b5   : > { %1507 = vst.msk [vmem:[%s551_s30 + $0x30] sm:$0xff] %vm701_vm1, %v1495_v43  ;;  %v1498_v47 = vadd.f32 %v1885_v46, %v1700_v33  ;;  %v1489_v48 = vpop.f32.mrb[23].mxu1 }
 0x5b6   : > { %1505 = vst.msk [vmem:[%s551_s30 + $0x20] sm:$0xff] %vm701_vm1, %v1487_v45  ;;  %v1490_v49 = vadd.f32 %v1700_v33, %v1489_v48 }
 0x5b7   : > { %1508 = vst.msk [vmem:[%s551_s30 + $0x38] sm:$0xff] %vm701_vm1, %v1498_v47 }
 0x5b8   : > { %1506 = vst.msk [vmem:[%s551_s30 + $0x28] sm:$0xff] %vm701_vm1, %v1490_v49 }
 0x5b9 PF: > { %s23_s27 = sadd.s32 1, %s2013_s27   ;;  %s2293_s25 = smov %s2009_s26 }
 0x5ba   : > { %p20_p5 = scmp.ge.s32.totalorder %s23_s27, 4   ;;  %s2294_s26 = smov %s2296_s28 }
 0x5bc   :  { %22 = sbr.rel (!%p20_p5) target bundleno = 2 (0x2), region = 111 }

</bundles_post_ra>
